<compile_context>
chip_gen: v7x
topology: tpu7x:2x2x1
jax: 0.10.0
libtpu: 0.0.40
codegen_flags: <defaults>
</compile_context>

<pallas_src>
import functools
import math

import jax
import jax.numpy as jnp
from jax import lax
from jax.experimental import pallas as pl
from jax.experimental.pallas import tpu as pltpu

LANE = 128


# --------------------------- conv (im2col + Pallas matmul) -------------------

def _matmul_kernel(a_ref, b_ref, o_ref):
    # (TM, K) @ (K, lanes) -> (TM, lanes) on the MXU, lane-dense output.
    o_ref[...] = jnp.dot(a_ref[...], b_ref[...],
                         preferred_element_type=jnp.float32).astype(o_ref.dtype)


def conv2d_im2col_pallas(x, w, *, stride, dilation, padding, lanes):
    """NCHW conv2d.  Returns activations laid out (OH, B, OW, lanes), with the
    output channels zero-padded up to `lanes` (a multiple of 128)."""
    B, Cin, H, W = x.shape
    Cout, _, KH, KW = w.shape
    ph, pw = padding
    sh, sw = stride
    dh, dw = dilation

    xp = jnp.pad(x, ((0, 0), (0, 0), (ph, ph), (pw, pw)))
    Hp, Wp = xp.shape[2], xp.shape[3]
    OH = (Hp - (dh * (KH - 1) + 1)) // sh + 1
    OW = (Wp - (dw * (KW - 1) + 1)) // sw + 1

    cols = []
    for i in range(KH):
        for j in range(KW):
            sl = xp[:, :,
                    i * dh: i * dh + (OH - 1) * sh + 1: sh,
                    j * dw: j * dw + (OW - 1) * sw + 1: sw]
            cols.append(sl)                                 # (B, Cin, OH, OW)
    # ordering (Cin, KH, KW) matches w.reshape(Cout, Cin*KH*KW)
    patches = jnp.stack(cols, axis=2)                       # (B, Cin, KH*KW, OH, OW)
    patches = patches.reshape(B, Cin * KH * KW, OH, OW)
    # row order (OH, B, OW) == (T, B, N_full): the layout the recurrence consumes
    patches = patches.transpose(2, 0, 3, 1).reshape(B * OH * OW, Cin * KH * KW)

    K = Cin * KH * KW
    M = B * OH * OW
    # lane-pad the weight matrix so the matmul output is lane-dense
    w_flat = w.reshape(Cout, K).T                           # (K, Cout)
    w_pad = jnp.pad(w_flat, ((0, 0), (0, lanes - Cout)))    # (K, lanes)

    # pad rows to a multiple of 128 and pick a big (512/256/128) row tile
    Mp = ((M + LANE - 1) // LANE) * LANE
    if Mp != M:
        patches = jnp.pad(patches, ((0, Mp - M), (0, 0)))
    TM = 512 if Mp % 512 == 0 else (256 if Mp % 256 == 0 else 128)
    TM = min(TM, Mp)

    out = pl.pallas_call(
        _matmul_kernel,
        out_shape=jax.ShapeDtypeStruct((Mp, lanes), jnp.float32),
        grid_spec=pltpu.PrefetchScalarGridSpec(
            num_scalar_prefetch=0,
            grid=(Mp // TM,),
            in_specs=[pl.BlockSpec((TM, K), lambda i: (i, 0)),
                      pl.BlockSpec((K, lanes), lambda i: (0, 0))],
            out_specs=pl.BlockSpec((TM, lanes), lambda i: (i, 0)),
        ),
        compiler_params=pltpu.CompilerParams(
            dimension_semantics=("parallel",)),
    )(patches, w_pad)

    return out[:M].reshape(OH, B, OW, lanes)                # (T, B, OW, lanes)


# --------------------------- spiking recurrence kernel -----------------------

def _make_spike_kernel(bn, lanes, t_chunk):
    def kernel(beta_ref, conv_ref, d_ref, invn_ref, b_ref,
               spk_out_ref, loss_ref, mem_sc, spk_sc):
        chunk = pl.program_id(0)

        @pl.when(chunk == 0)
        def _():
            mem_sc[...] = jnp.zeros_like(mem_sc)
            spk_sc[...] = jnp.zeros_like(spk_sc)
            loss_ref[...] = jnp.zeros_like(loss_ref)

        # scalars from SMEM, read once; lane-vector broadcasts hoisted out of
        # the time loop (JAX does not CSE broadcast_in_dim).
        beta = beta_ref[0]
        one_minus_beta = 1.0 - beta
        d_mat = d_ref[...]                                    # (lanes, lanes)
        invn_b = jnp.broadcast_to(invn_ref[...], (bn, lanes))
        bias_b = jnp.broadcast_to(b_ref[...], (bn, lanes))

        def step(t, carry):
            # reset term: spk @ d   (== torch.einsum('abc,bd->adc'))
            rst = jnp.dot(spk_sc[...], d_mat,
                          preferred_element_type=jnp.float32)
            mem = (mem_sc[...] - rst) * beta + conv_ref[t] * one_minus_beta
            mthr = mem * invn_b - bias_b
            spk = (mthr > 0.0).astype(jnp.float32)            # spike_fn forward
            mem_sc[...] = mem
            spk_sc[...] = spk
            spk_out_ref[t] = spk                              # lane-dense store
            return carry

        lax.fori_loop(0, t_chunk, step, 0, unroll=True)

        # spikes are {0,1}: sum(spk) == sum(spk**2); 0.5/total applied in wrapper
        loss_ref[...] = loss_ref[...] + jnp.sum(spk_out_ref[...])

    return kernel


# --------------------------- layer wrapper -----------------------------------

def spiking_conv_layer(x, w, beta, b, *, nb_outputs, kernel_size, dilation,
                       stride, eps=1e-8, flatten_output=False):
    B = x.shape[0]
    Cout = w.shape[0]
    LP = ((Cout + LANE - 1) // LANE) * LANE                  # lane-padded channels

    pad = tuple(int(math.ceil((k - 1) * d / 2))
                for k, d in zip(kernel_size, dilation))
    conv_full = conv2d_im2col_pallas(x, w, stride=stride, dilation=dilation,
                                     padding=pad, lanes=LP)  # (T, B, OW, LP)
    conv_crop = conv_full[:, :, :nb_outputs, :]              # crop last spatial axis
    T, _, N, _ = conv_crop.shape
    BN = B * N
    conv_seq = conv_crop.reshape(T, BN, LP)                  # no extra transpose

    # per-channel quantities, zero-padded to the lane width.  Padded channels:
    # conv=0, d rows/cols=0, invn=0, bias=1  =>  mem stays 0, mthr=-1, never spike.
    d = jnp.einsum('abcd,ebcd->ae', w, w)                    # (Cout, Cout)
    d_pad = jnp.zeros((LP, LP), jnp.float32).at[:Cout, :Cout].set(d)
    norm = jnp.sum(w * w, axis=(1, 2, 3))                    # (Cout,)
    invn_pad = jnp.zeros((1, LP), jnp.float32).at[0, :Cout].set(1.0 / (norm + eps))
    b_pad = jnp.ones((1, LP), jnp.float32).at[0, :Cout].set(b)
    beta_arr = jnp.reshape(beta, (1,)).astype(jnp.float32)

    # time-chunking: whole T in one invocation when small, else modest chunks
    # (keeps double-buffered blocks small enough for v7x's 64 MiB VMEM).
    if T <= 32:
        t_chunk = T
    else:
        t_chunk = next(c for c in (32, 16, 8, 4, 2, 1) if T % c == 0)
    num_chunks = T // t_chunk

    kernel = _make_spike_kernel(BN, LP, t_chunk)
    # TODO(synk): on v7x the independent B*N rows could additionally be sharded
    # across the two TensorCores with a leading "parallel" grid axis.
    spk_seq, loss_sum = pl.pallas_call(
        kernel,
        out_shape=(jax.ShapeDtypeStruct((T, BN, LP), jnp.float32),
                   jax.ShapeDtypeStruct((1, 1), jnp.float32)),
        grid_spec=pltpu.PrefetchScalarGridSpec(
            num_scalar_prefetch=0,
            grid=(num_chunks,),
            in_specs=[pl.BlockSpec(memory_space=pltpu.MemorySpace.SMEM),  # beta
                      pl.BlockSpec((t_chunk, BN, LP), lambda c: (c, 0, 0)),
                      pl.BlockSpec((LP, LP), lambda c: (0, 0)),
                      pl.BlockSpec((1, LP), lambda c: (0, 0)),
                      pl.BlockSpec((1, LP), lambda c: (0, 0))],
            out_specs=(pl.BlockSpec((t_chunk, BN, LP), lambda c: (c, 0, 0)),
                       pl.BlockSpec((1, 1), lambda c: (0, 0))),
            scratch_shapes=[pltpu.VMEM((BN, LP), jnp.float32),    # mem
                            pltpu.VMEM((BN, LP), jnp.float32)]),  # spk
        compiler_params=pltpu.CompilerParams(
            dimension_semantics=("arbitrary",)),   # true recurrence + loss accum
    )(beta_arr, conv_seq, d_pad, invn_pad, b_pad)

    # back to the PyTorch layout (B, Cout, T, N); drop the lane padding
    spk_rec = spk_seq.reshape(T, B, N, LP)[..., :Cout].transpose(1, 3, 0, 2)

    total = float(T * B * Cout * N)
    loss = 0.5 * loss_sum[0, 0] / total                       # == 0.5*mean(spk**2)

    if flatten_output:
        output = spk_rec.transpose(0, 2, 1, 3).reshape(B, T, Cout * N)
    else:
        output = spk_rec
    return output, loss


# --------------------------- deterministic parameter init --------------------

def init_params(key, in_channels, out_channels, kernel_size,
                w_init_mean, w_init_std):
    kw_, kb_, kbeta_ = jax.random.split(key, 3)
    fan = in_channels * kernel_size[0] * kernel_size[1]
    w = w_init_mean + w_init_std * math.sqrt(1.0 / fan) * jax.random.normal(
        kw_, (out_channels, in_channels, *kernel_size), dtype=jnp.float32)
    beta = jnp.clip(0.7 + 0.01 * jax.random.normal(kbeta_, (1,),
                                                   dtype=jnp.float32), 0.0, 1.0)
    b = jnp.maximum(1.0 + 0.01 * jax.random.normal(kb_, (out_channels,),
                                                   dtype=jnp.float32), 0.0)
    return w, beta, b


# --------------------------- main --------------------------------------------

if __name__ == "__main__":
    key = jax.random.PRNGKey(0)
    kx, kp = jax.random.split(key)

    B, Cin, H, W = 2, 4, 16, 16
    Cout = 8
    kernel_size = (3, 3)
    dilation = (1, 1)
    stride = (1, 1)
    nb_inputs = 16      # not used in forward (matches the PyTorch module)
    nb_outputs = 16     # crop of the last spatial axis after the conv

    x = jax.random.normal(kx, (B, Cin, H, W), dtype=jnp.float32)
    w, beta, b = init_params(kp, Cin, Cout, kernel_size,
                             w_init_mean=0.0, w_init_std=1.0)

    fwd = jax.jit(functools.partial(
        spiking_conv_layer, nb_outputs=nb_outputs, kernel_size=kernel_size,
        dilation=dilation, stride=stride, flatten_output=False))

    spk_rec, loss = fwd(x, w, beta, b)
    jax.block_until_ready((spk_rec, loss))

    assert spk_rec.shape == (B, Cout, H, nb_outputs)
    assert spk_rec.dtype == jnp.float32 and loss.dtype == jnp.float32
    print("KERNEL_OK")
</pallas_src>

<mosaic_0001>
module attributes {stable_mosaic.version = 11 : i64} {
  func.func @_matmul_kernel(%arg0: i32, %arg1: memref<512x36xf32, #tpu.memory_space<vmem>>, %arg2: memref<36x128xf32, #tpu.memory_space<vmem>>, %arg3: memref<512x128xf32, #tpu.memory_space<vmem>>) attributes {dimension_semantics = [#tpu.dimension_semantics<parallel>], iteration_bounds = array<i64: 1>, scalar_prefetch = 0 : i64, scratch_operands = 0 : i64, tpu.core_type = #tpu.core_type<tc>, window_params = [{transform_indices = @transform_0, window_bounds = array<i64: 512, 36>}, {pipeline_mode = #tpu.pipeline_mode<synchronous>, transform_indices = @transform_1, window_bounds = array<i64: 36, 128>}, {transform_indices = @transform_2, window_bounds = array<i64: 512, 128>}]} {
    %c0 = arith.constant 0 : index
    %c0_0 = arith.constant 0 : index
    %0 = vector.load %arg1[%c0, %c0_0] : memref<512x36xf32, #tpu.memory_space<vmem>>, vector<512x36xf32>
    %c0_1 = arith.constant 0 : index
    %c0_2 = arith.constant 0 : index
    %1 = vector.load %arg2[%c0_1, %c0_2] : memref<36x128xf32, #tpu.memory_space<vmem>>, vector<36x128xf32>
    %cst = arith.constant dense<0.000000e+00> : vector<512x128xf32>
    %2 = tpu.matmul %0, %1, %cst {dimension_numbers = #tpu.dot_dimension_numbers<[1], [0], [0], [1], [0, 0, 1, 1], [], []>} : vector<512x36xf32>, vector<36x128xf32>, vector<512x128xf32> -> vector<512x128xf32>
    %c0_3 = arith.constant 0 : index
    %c0_4 = arith.constant 0 : index
    %3 = vector.load %arg3[%c0_3, %c0_4] : memref<512x128xf32, #tpu.memory_space<vmem>>, vector<512x128xf32>
    tpu.vector_store %arg3[%c0_3, %c0_4], %2 {strides = array<i32>} : memref<512x128xf32, #tpu.memory_space<vmem>>, vector<512x128xf32>,
    return
  }
  func.func @transform_0(%arg0: i32) -> (i32, i32) {
    %c0_i32 = arith.constant 0 : i32
    %c0_i32_0 = arith.constant 0 : i32
    return %arg0, %c0_i32 : i32, i32
  }
  func.func @transform_1(%arg0: i32) -> (i32, i32) {
    %c0_i32 = arith.constant 0 : i32
    %c0_i32_0 = arith.constant 0 : i32
    %c0_i32_1 = arith.constant 0 : i32
    return %c0_i32, %c0_i32_0 : i32, i32
  }
  func.func @transform_2(%arg0: i32) -> (i32, i32) {
    %c0_i32 = arith.constant 0 : i32
    %c0_i32_0 = arith.constant 0 : i32
    return %arg0, %c0_i32 : i32, i32
  }
}

module attributes {stable_mosaic.version = 11 : i64} {
  func.func @kernel(%arg0: i32, %arg1: memref<1xf32, #tpu.memory_space<smem>>, %arg2: memref<16x32x128xf32, #tpu.memory_space<vmem>>, %arg3: memref<128x128xf32, #tpu.memory_space<vmem>>, %arg4: memref<1x128xf32, #tpu.memory_space<vmem>>, %arg5: memref<1x128xf32, #tpu.memory_space<vmem>>, %arg6: memref<16x32x128xf32, #tpu.memory_space<vmem>>, %arg7: memref<1x1xf32, #tpu.memory_space<vmem>>, %arg8: memref<32x128xf32, #tpu.memory_space<vmem>>, %arg9: memref<32x128xf32, #tpu.memory_space<vmem>>) attributes {dimension_semantics = [#tpu.dimension_semantics<arbitrary>], iteration_bounds = array<i64: 1>, scalar_prefetch = 0 : i64, scratch_operands = 2 : i64, tpu.core_type = #tpu.core_type<tc>, window_params = [{transform_indices = @transform_0, window_bounds = array<i64: 1>}, {transform_indices = @transform_1, window_bounds = array<i64: 16, 32, 128>}, {pipeline_mode = #tpu.pipeline_mode<synchronous>, transform_indices = @transform_2, window_bounds = array<i64: 128, 128>}, {pipeline_mode = #tpu.pipeline_mode<synchronous>, transform_indices = @transform_3, window_bounds = array<i64: 1, 128>}, {pipeline_mode = #tpu.pipeline_mode<synchronous>, transform_indices = @transform_4, window_bounds = array<i64: 1, 128>}, {transform_indices = @transform_5, window_bounds = array<i64: 16, 32, 128>}, {pipeline_mode = #tpu.pipeline_mode<synchronous>, transform_indices = @transform_6, window_bounds = array<i64: 1, 1>}]} {
    %c0_i32 = arith.constant 0 : i32
    %0 = arith.cmpi eq, %arg0, %c0_i32 : i32
    %1 = arith.extui %0 : i1 to i32
    %c0_i32_0 = arith.constant 0 : i32
    %2 = arith.cmpi ne, %1, %c0_i32_0 : i32
    scf.if %2 {
      %cst_240 = arith.constant 0.000000e+00 : f32
      %405 = vector.broadcast %cst_240 : f32 to vector<32x128xf32>
      %c0_241 = arith.constant 0 : index
      %c0_242 = arith.constant 0 : index
      %406 = vector.load %arg8[%c0_241, %c0_242] : memref<32x128xf32, #tpu.memory_space<vmem>>, vector<32x128xf32>
      tpu.vector_store %arg8[%c0_241, %c0_242], %405 {strides = array<i32>} : memref<32x128xf32, #tpu.memory_space<vmem>>, vector<32x128xf32>,
      %cst_243 = arith.constant 0.000000e+00 : f32
      %407 = vector.broadcast %cst_243 : f32 to vector<32x128xf32>
      %c0_244 = arith.constant 0 : index
      %c0_245 = arith.constant 0 : index
      %408 = vector.load %arg9[%c0_244, %c0_245] : memref<32x128xf32, #tpu.memory_space<vmem>>, vector<32x128xf32>
      tpu.vector_store %arg9[%c0_244, %c0_245], %407 {strides = array<i32>} : memref<32x128xf32, #tpu.memory_space<vmem>>, vector<32x128xf32>,
      %cst_246 = arith.constant 0.000000e+00 : f32
      %409 = vector.broadcast %cst_246 : f32 to vector<1x1xf32>
      %c0_247 = arith.constant 0 : index
      %c0_248 = arith.constant 0 : index
      %410 = vector.load %arg7[%c0_247, %c0_248] : memref<1x1xf32, #tpu.memory_space<vmem>>, vector<1x1xf32>
      tpu.vector_store %arg7[%c0_247, %c0_248], %409 {strides = array<i32>} : memref<1x1xf32, #tpu.memory_space<vmem>>, vector<1x1xf32>,
    } else {
    }
    %c0 = arith.constant 0 : index
    %3 = memref.load %arg1[%c0] : memref<1xf32, #tpu.memory_space<smem>>
    %cst = arith.constant 1.000000e+00 : f32
    %4 = arith.subf %cst, %3 : f32
    %c0_1 = arith.constant 0 : index
    %c0_2 = arith.constant 0 : index
    %5 = vector.load %arg3[%c0_1, %c0_2] : memref<128x128xf32, #tpu.memory_space<vmem>>, vector<128x128xf32>
    %c0_3 = arith.constant 0 : index
    %c0_4 = arith.constant 0 : index
    %6 = vector.load %arg4[%c0_3, %c0_4] : memref<1x128xf32, #tpu.memory_space<vmem>>, vector<1x128xf32>
    %7 = vector.shape_cast %6 : vector<1x128xf32> to vector<1x128xf32>
    %8 = vector.broadcast %7 : vector<1x128xf32> to vector<32x128xf32>
    %c0_5 = arith.constant 0 : index
    %c0_6 = arith.constant 0 : index
    %9 = vector.load %arg5[%c0_5, %c0_6] : memref<1x128xf32, #tpu.memory_space<vmem>>, vector<1x128xf32>
    %10 = vector.shape_cast %9 : vector<1x128xf32> to vector<1x128xf32>
    %11 = vector.broadcast %10 : vector<1x128xf32> to vector<32x128xf32>
    %c0_i32_7 = arith.constant 0 : i32
    %c0_8 = arith.constant 0 : index
    %c0_9 = arith.constant 0 : index
    %12 = vector.load %arg9[%c0_8, %c0_9] : memref<32x128xf32, #tpu.memory_space<vmem>>, vector<32x128xf32>
    %cst_10 = arith.constant dense<0.000000e+00> : vector<32x128xf32>
    %13 = tpu.matmul %12, %5, %cst_10 {dimension_numbers = #tpu.dot_dimension_numbers<[1], [0], [0], [1], [0, 0, 1, 1], [], []>} : vector<32x128xf32>, vector<128x128xf32>, vector<32x128xf32> -> vector<32x128xf32>
    %c0_11 = arith.constant 0 : index
    %c0_12 = arith.constant 0 : index
    %14 = vector.load %arg8[%c0_11, %c0_12] : memref<32x128xf32, #tpu.memory_space<vmem>>, vector<32x128xf32>
    %15 = arith.subf %14, %13 : vector<32x128xf32>
    %16 = vector.broadcast %3 : f32 to vector<32x128xf32>
    %17 = arith.mulf %15, %16 : vector<32x128xf32>
    %18 = arith.index_cast %c0_i32_7 : i32 to index
    %c0_13 = arith.constant 0 : index
    %c0_14 = arith.constant 0 : index
    %19 = vector.load %arg2[%18, %c0_13, %c0_14] : memref<16x32x128xf32, #tpu.memory_space<vmem>>, vector<1x32x128xf32>
    %20 = vector.shape_cast %19 : vector<1x32x128xf32> to vector<32x128xf32>
    %21 = vector.broadcast %4 : f32 to vector<32x128xf32>
    %22 = arith.mulf %20, %21 : vector<32x128xf32>
    %23 = arith.addf %17, %22 : vector<32x128xf32>
    %24 = arith.mulf %23, %8 : vector<32x128xf32>
    %25 = arith.subf %24, %11 : vector<32x128xf32>
    %cst_15 = arith.constant 0.000000e+00 : f32
    %26 = vector.broadcast %cst_15 : f32 to vector<32x128xf32>
    %27 = arith.cmpf ogt, %25, %26 : vector<32x128xf32>
    %28 = arith.extui %27 : vector<32x128xi1> to vector<32x128xi32>
    %29 = arith.sitofp %28 : vector<32x128xi32> to vector<32x128xf32>
    %c0_16 = arith.constant 0 : index
    %c0_17 = arith.constant 0 : index
    %30 = vector.load %arg8[%c0_16, %c0_17] : memref<32x128xf32, #tpu.memory_space<vmem>>, vector<32x128xf32>
    tpu.vector_store %arg8[%c0_16, %c0_17], %23 {strides = array<i32>} : memref<32x128xf32, #tpu.memory_space<vmem>>, vector<32x128xf32>,
    %c0_18 = arith.constant 0 : index
    %c0_19 = arith.constant 0 : index
    %31 = vector.load %arg9[%c0_18, %c0_19] : memref<32x128xf32, #tpu.memory_space<vmem>>, vector<32x128xf32>
    tpu.vector_store %arg9[%c0_18, %c0_19], %29 {strides = array<i32>} : memref<32x128xf32, #tpu.memory_space<vmem>>, vector<32x128xf32>,
    %32 = arith.index_cast %c0_i32_7 : i32 to index
    %c0_20 = arith.constant 0 : index
    %c0_21 = arith.constant 0 : index
    %33 = vector.load %arg6[%32, %c0_20, %c0_21] : memref<16x32x128xf32, #tpu.memory_space<vmem>>, vector<1x32x128xf32>
    %34 = vector.shape_cast %33 : vector<1x32x128xf32> to vector<32x128xf32>
    %35 = vector.shape_cast %29 : vector<32x128xf32> to vector<1x32x128xf32>
    tpu.vector_store %arg6[%32, %c0_20, %c0_21], %35 {strides = array<i32>} : memref<16x32x128xf32, #tpu.memory_space<vmem>>, vector<1x32x128xf32>,
    %c1_i32 = arith.constant 1 : i32
    %c0_22 = arith.constant 0 : index
    %c0_23 = arith.constant 0 : index
    %36 = vector.load %arg9[%c0_22, %c0_23] : memref<32x128xf32, #tpu.memory_space<vmem>>, vector<32x128xf32>
    %cst_24 = arith.constant dense<0.000000e+00> : vector<32x128xf32>
    %37 = tpu.matmul %36, %5, %cst_24 {dimension_numbers = #tpu.dot_dimension_numbers<[1], [0], [0], [1], [0, 0, 1, 1], [], []>} : vector<32x128xf32>, vector<128x128xf32>, vector<32x128xf32> -> vector<32x128xf32>
    %c0_25 = arith.constant 0 : index
    %c0_26 = arith.constant 0 : index
    %38 = vector.load %arg8[%c0_25, %c0_26] : memref<32x128xf32, #tpu.memory_space<vmem>>, vector<32x128xf32>
    %39 = arith.subf %38, %37 : vector<32x128xf32>
    %40 = vector.broadcast %3 : f32 to vector<32x128xf32>
    %41 = arith.mulf %39, %40 : vector<32x128xf32>
    %42 = arith.index_cast %c1_i32 : i32 to index
    %c0_27 = arith.constant 0 : index
    %c0_28 = arith.constant 0 : index
    %43 = vector.load %arg2[%42, %c0_27, %c0_28] : memref<16x32x128xf32, #tpu.memory_space<vmem>>, vector<1x32x128xf32>
    %44 = vector.shape_cast %43 : vector<1x32x128xf32> to vector<32x128xf32>
    %45 = vector.broadcast %4 : f32 to vector<32x128xf32>
    %46 = arith.mulf %44, %45 : vector<32x128xf32>
    %47 = arith.addf %41, %46 : vector<32x128xf32>
    %48 = arith.mulf %47, %8 : vector<32x128xf32>
    %49 = arith.subf %48, %11 : vector<32x128xf32>
    %cst_29 = arith.constant 0.000000e+00 : f32
    %50 = vector.broadcast %cst_29 : f32 to vector<32x128xf32>
    %51 = arith.cmpf ogt, %49, %50 : vector<32x128xf32>
    %52 = arith.extui %51 : vector<32x128xi1> to vector<32x128xi32>
    %53 = arith.sitofp %52 : vector<32x128xi32> to vector<32x128xf32>
    %c0_30 = arith.constant 0 : index
    %c0_31 = arith.constant 0 : index
    %54 = vector.load %arg8[%c0_30, %c0_31] : memref<32x128xf32, #tpu.memory_space<vmem>>, vector<32x128xf32>
    tpu.vector_store %arg8[%c0_30, %c0_31], %47 {strides = array<i32>} : memref<32x128xf32, #tpu.memory_space<vmem>>, vector<32x128xf32>,
    %c0_32 = arith.constant 0 : index
    %c0_33 = arith.constant 0 : index
    %55 = vector.load %arg9[%c0_32, %c0_33] : memref<32x128xf32, #tpu.memory_space<vmem>>, vector<32x128xf32>
    tpu.vector_store %arg9[%c0_32, %c0_33], %53 {strides = array<i32>} : memref<32x128xf32, #tpu.memory_space<vmem>>, vector<32x128xf32>,
    %56 = arith.index_cast %c1_i32 : i32 to index
    %c0_34 = arith.constant 0 : index
    %c0_35 = arith.constant 0 : index
    %57 = vector.load %arg6[%56, %c0_34, %c0_35] : memref<16x32x128xf32, #tpu.memory_space<vmem>>, vector<1x32x128xf32>
    %58 = vector.shape_cast %57 : vector<1x32x128xf32> to vector<32x128xf32>
    %59 = vector.shape_cast %53 : vector<32x128xf32> to vector<1x32x128xf32>
    tpu.vector_store %arg6[%56, %c0_34, %c0_35], %59 {strides = array<i32>} : memref<16x32x128xf32, #tpu.memory_space<vmem>>, vector<1x32x128xf32>,
    %c2_i32 = arith.constant 2 : i32
    %c0_36 = arith.constant 0 : index
    %c0_37 = arith.constant 0 : index
    %60 = vector.load %arg9[%c0_36, %c0_37] : memref<32x128xf32, #tpu.memory_space<vmem>>, vector<32x128xf32>
    %cst_38 = arith.constant dense<0.000000e+00> : vector<32x128xf32>
    %61 = tpu.matmul %60, %5, %cst_38 {dimension_numbers = #tpu.dot_dimension_numbers<[1], [0], [0], [1], [0, 0, 1, 1], [], []>} : vector<32x128xf32>, vector<128x128xf32>, vector<32x128xf32> -> vector<32x128xf32>
    %c0_39 = arith.constant 0 : index
    %c0_40 = arith.constant 0 : index
    %62 = vector.load %arg8[%c0_39, %c0_40] : memref<32x128xf32, #tpu.memory_space<vmem>>, vector<32x128xf32>
    %63 = arith.subf %62, %61 : vector<32x128xf32>
    %64 = vector.broadcast %3 : f32 to vector<32x128xf32>
    %65 = arith.mulf %63, %64 : vector<32x128xf32>
    %66 = arith.index_cast %c2_i32 : i32 to index
    %c0_41 = arith.constant 0 : index
    %c0_42 = arith.constant 0 : index
    %67 = vector.load %arg2[%66, %c0_41, %c0_42] : memref<16x32x128xf32, #tpu.memory_space<vmem>>, vector<1x32x128xf32>
    %68 = vector.shape_cast %67 : vector<1x32x128xf32> to vector<32x128xf32>
    %69 = vector.broadcast %4 : f32 to vector<32x128xf32>
    %70 = arith.mulf %68, %69 : vector<32x128xf32>
    %71 = arith.addf %65, %70 : vector<32x128xf32>
    %72 = arith.mulf %71, %8 : vector<32x128xf32>
    %73 = arith.subf %72, %11 : vector<32x128xf32>
    %cst_43 = arith.constant 0.000000e+00 : f32
    %74 = vector.broadcast %cst_43 : f32 to vector<32x128xf32>
    %75 = arith.cmpf ogt, %73, %74 : vector<32x128xf32>
    %76 = arith.extui %75 : vector<32x128xi1> to vector<32x128xi32>
    %77 = arith.sitofp %76 : vector<32x128xi32> to vector<32x128xf32>
    %c0_44 = arith.constant 0 : index
    %c0_45 = arith.constant 0 : index
    %78 = vector.load %arg8[%c0_44, %c0_45] : memref<32x128xf32, #tpu.memory_space<vmem>>, vector<32x128xf32>
    tpu.vector_store %arg8[%c0_44, %c0_45], %71 {strides = array<i32>} : memref<32x128xf32, #tpu.memory_space<vmem>>, vector<32x128xf32>,
    %c0_46 = arith.constant 0 : index
    %c0_47 = arith.constant 0 : index
    %79 = vector.load %arg9[%c0_46, %c0_47] : memref<32x128xf32, #tpu.memory_space<vmem>>, vector<32x128xf32>
    tpu.vector_store %arg9[%c0_46, %c0_47], %77 {strides = array<i32>} : memref<32x128xf32, #tpu.memory_space<vmem>>, vector<32x128xf32>,
    %80 = arith.index_cast %c2_i32 : i32 to index
    %c0_48 = arith.constant 0 : index
    %c0_49 = arith.constant 0 : index
    %81 = vector.load %arg6[%80, %c0_48, %c0_49] : memref<16x32x128xf32, #tpu.memory_space<vmem>>, vector<1x32x128xf32>
    %82 = vector.shape_cast %81 : vector<1x32x128xf32> to vector<32x128xf32>
    %83 = vector.shape_cast %77 : vector<32x128xf32> to vector<1x32x128xf32>
    tpu.vector_store %arg6[%80, %c0_48, %c0_49], %83 {strides = array<i32>} : memref<16x32x128xf32, #tpu.memory_space<vmem>>, vector<1x32x128xf32>,
    %c3_i32 = arith.constant 3 : i32
    %c0_50 = arith.constant 0 : index
    %c0_51 = arith.constant 0 : index
    %84 = vector.load %arg9[%c0_50, %c0_51] : memref<32x128xf32, #tpu.memory_space<vmem>>, vector<32x128xf32>
    %cst_52 = arith.constant dense<0.000000e+00> : vector<32x128xf32>
    %85 = tpu.matmul %84, %5, %cst_52 {dimension_numbers = #tpu.dot_dimension_numbers<[1], [0], [0], [1], [0, 0, 1, 1], [], []>} : vector<32x128xf32>, vector<128x128xf32>, vector<32x128xf32> -> vector<32x128xf32>
    %c0_53 = arith.constant 0 : index
    %c0_54 = arith.constant 0 : index
    %86 = vector.load %arg8[%c0_53, %c0_54] : memref<32x128xf32, #tpu.memory_space<vmem>>, vector<32x128xf32>
    %87 = arith.subf %86, %85 : vector<32x128xf32>
    %88 = vector.broadcast %3 : f32 to vector<32x128xf32>
    %89 = arith.mulf %87, %88 : vector<32x128xf32>
    %90 = arith.index_cast %c3_i32 : i32 to index
    %c0_55 = arith.constant 0 : index
    %c0_56 = arith.constant 0 : index
    %91 = vector.load %arg2[%90, %c0_55, %c0_56] : memref<16x32x128xf32, #tpu.memory_space<vmem>>, vector<1x32x128xf32>
    %92 = vector.shape_cast %91 : vector<1x32x128xf32> to vector<32x128xf32>
    %93 = vector.broadcast %4 : f32 to vector<32x128xf32>
    %94 = arith.mulf %92, %93 : vector<32x128xf32>
    %95 = arith.addf %89, %94 : vector<32x128xf32>
    %96 = arith.mulf %95, %8 : vector<32x128xf32>
    %97 = arith.subf %96, %11 : vector<32x128xf32>
    %cst_57 = arith.constant 0.000000e+00 : f32
    %98 = vector.broadcast %cst_57 : f32 to vector<32x128xf32>
    %99 = arith.cmpf ogt, %97, %98 : vector<32x128xf32>
    %100 = arith.extui %99 : vector<32x128xi1> to vector<32x128xi32>
    %101 = arith.sitofp %100 : vector<32x128xi32> to vector<32x128xf32>
    %c0_58 = arith.constant 0 : index
    %c0_59 = arith.constant 0 : index
    %102 = vector.load %arg8[%c0_58, %c0_59] : memref<32x128xf32, #tpu.memory_space<vmem>>, vector<32x128xf32>
    tpu.vector_store %arg8[%c0_58, %c0_59], %95 {strides = array<i32>} : memref<32x128xf32, #tpu.memory_space<vmem>>, vector<32x128xf32>,
    %c0_60 = arith.constant 0 : index
    %c0_61 = arith.constant 0 : index
    %103 = vector.load %arg9[%c0_60, %c0_61] : memref<32x128xf32, #tpu.memory_space<vmem>>, vector<32x128xf32>
    tpu.vector_store %arg9[%c0_60, %c0_61], %101 {strides = array<i32>} : memref<32x128xf32, #tpu.memory_space<vmem>>, vector<32x128xf32>,
    %104 = arith.index_cast %c3_i32 : i32 to index
    %c0_62 = arith.constant 0 : index
    %c0_63 = arith.constant 0 : index
    %105 = vector.load %arg6[%104, %c0_62, %c0_63] : memref<16x32x128xf32, #tpu.memory_space<vmem>>, vector<1x32x128xf32>
    %106 = vector.shape_cast %105 : vector<1x32x128xf32> to vector<32x128xf32>
    %107 = vector.shape_cast %101 : vector<32x128xf32> to vector<1x32x128xf32>
    tpu.vector_store %arg6[%104, %c0_62, %c0_63], %107 {strides = array<i32>} : memref<16x32x128xf32, #tpu.memory_space<vmem>>, vector<1x32x128xf32>,
    %c4_i32 = arith.constant 4 : i32
    %c0_64 = arith.constant 0 : index
    %c0_65 = arith.constant 0 : index
    %108 = vector.load %arg9[%c0_64, %c0_65] : memref<32x128xf32, #tpu.memory_space<vmem>>, vector<32x128xf32>
    %cst_66 = arith.constant dense<0.000000e+00> : vector<32x128xf32>
    %109 = tpu.matmul %108, %5, %cst_66 {dimension_numbers = #tpu.dot_dimension_numbers<[1], [0], [0], [1], [0, 0, 1, 1], [], []>} : vector<32x128xf32>, vector<128x128xf32>, vector<32x128xf32> -> vector<32x128xf32>
    %c0_67 = arith.constant 0 : index
    %c0_68 = arith.constant 0 : index
    %110 = vector.load %arg8[%c0_67, %c0_68] : memref<32x128xf32, #tpu.memory_space<vmem>>, vector<32x128xf32>
    %111 = arith.subf %110, %109 : vector<32x128xf32>
    %112 = vector.broadcast %3 : f32 to vector<32x128xf32>
    %113 = arith.mulf %111, %112 : vector<32x128xf32>
    %114 = arith.index_cast %c4_i32 : i32 to index
    %c0_69 = arith.constant 0 : index
    %c0_70 = arith.constant 0 : index
    %115 = vector.load %arg2[%114, %c0_69, %c0_70] : memref<16x32x128xf32, #tpu.memory_space<vmem>>, vector<1x32x128xf32>
    %116 = vector.shape_cast %115 : vector<1x32x128xf32> to vector<32x128xf32>
    %117 = vector.broadcast %4 : f32 to vector<32x128xf32>
    %118 = arith.mulf %116, %117 : vector<32x128xf32>
    %119 = arith.addf %113, %118 : vector<32x128xf32>
    %120 = arith.mulf %119, %8 : vector<32x128xf32>
    %121 = arith.subf %120, %11 : vector<32x128xf32>
    %cst_71 = arith.constant 0.000000e+00 : f32
    %122 = vector.broadcast %cst_71 : f32 to vector<32x128xf32>
    %123 = arith.cmpf ogt, %121, %122 : vector<32x128xf32>
    %124 = arith.extui %123 : vector<32x128xi1> to vector<32x128xi32>
    %125 = arith.sitofp %124 : vector<32x128xi32> to vector<32x128xf32>
    %c0_72 = arith.constant 0 : index
    %c0_73 = arith.constant 0 : index
    %126 = vector.load %arg8[%c0_72, %c0_73] : memref<32x128xf32, #tpu.memory_space<vmem>>, vector<32x128xf32>
    tpu.vector_store %arg8[%c0_72, %c0_73], %119 {strides = array<i32>} : memref<32x128xf32, #tpu.memory_space<vmem>>, vector<32x128xf32>,
    %c0_74 = arith.constant 0 : index
    %c0_75 = arith.constant 0 : index
    %127 = vector.load %arg9[%c0_74, %c0_75] : memref<32x128xf32, #tpu.memory_space<vmem>>, vector<32x128xf32>
    tpu.vector_store %arg9[%c0_74, %c0_75], %125 {strides = array<i32>} : memref<32x128xf32, #tpu.memory_space<vmem>>, vector<32x128xf32>,
    %128 = arith.index_cast %c4_i32 : i32 to index
    %c0_76 = arith.constant 0 : index
    %c0_77 = arith.constant 0 : index
    %129 = vector.load %arg6[%128, %c0_76, %c0_77] : memref<16x32x128xf32, #tpu.memory_space<vmem>>, vector<1x32x128xf32>
    %130 = vector.shape_cast %129 : vector<1x32x128xf32> to vector<32x128xf32>
    %131 = vector.shape_cast %125 : vector<32x128xf32> to vector<1x32x128xf32>
    tpu.vector_store %arg6[%128, %c0_76, %c0_77], %131 {strides = array<i32>} : memref<16x32x128xf32, #tpu.memory_space<vmem>>, vector<1x32x128xf32>,
    %c5_i32 = arith.constant 5 : i32
    %c0_78 = arith.constant 0 : index
    %c0_79 = arith.constant 0 : index
    %132 = vector.load %arg9[%c0_78, %c0_79] : memref<32x128xf32, #tpu.memory_space<vmem>>, vector<32x128xf32>
    %cst_80 = arith.constant dense<0.000000e+00> : vector<32x128xf32>
    %133 = tpu.matmul %132, %5, %cst_80 {dimension_numbers = #tpu.dot_dimension_numbers<[1], [0], [0], [1], [0, 0, 1, 1], [], []>} : vector<32x128xf32>, vector<128x128xf32>, vector<32x128xf32> -> vector<32x128xf32>
    %c0_81 = arith.constant 0 : index
    %c0_82 = arith.constant 0 : index
    %134 = vector.load %arg8[%c0_81, %c0_82] : memref<32x128xf32, #tpu.memory_space<vmem>>, vector<32x128xf32>
    %135 = arith.subf %134, %133 : vector<32x128xf32>
    %136 = vector.broadcast %3 : f32 to vector<32x128xf32>
    %137 = arith.mulf %135, %136 : vector<32x128xf32>
    %138 = arith.index_cast %c5_i32 : i32 to index
    %c0_83 = arith.constant 0 : index
    %c0_84 = arith.constant 0 : index
    %139 = vector.load %arg2[%138, %c0_83, %c0_84] : memref<16x32x128xf32, #tpu.memory_space<vmem>>, vector<1x32x128xf32>
    %140 = vector.shape_cast %139 : vector<1x32x128xf32> to vector<32x128xf32>
    %141 = vector.broadcast %4 : f32 to vector<32x128xf32>
    %142 = arith.mulf %140, %141 : vector<32x128xf32>
    %143 = arith.addf %137, %142 : vector<32x128xf32>
    %144 = arith.mulf %143, %8 : vector<32x128xf32>
    %145 = arith.subf %144, %11 : vector<32x128xf32>
    %cst_85 = arith.constant 0.000000e+00 : f32
    %146 = vector.broadcast %cst_85 : f32 to vector<32x128xf32>
    %147 = arith.cmpf ogt, %145, %146 : vector<32x128xf32>
    %148 = arith.extui %147 : vector<32x128xi1> to vector<32x128xi32>
    %149 = arith.sitofp %148 : vector<32x128xi32> to vector<32x128xf32>
    %c0_86 = arith.constant 0 : index
    %c0_87 = arith.constant 0 : index
    %150 = vector.load %arg8[%c0_86, %c0_87] : memref<32x128xf32, #tpu.memory_space<vmem>>, vector<32x128xf32>
    tpu.vector_store %arg8[%c0_86, %c0_87], %143 {strides = array<i32>} : memref<32x128xf32, #tpu.memory_space<vmem>>, vector<32x128xf32>,
    %c0_88 = arith.constant 0 : index
    %c0_89 = arith.constant 0 : index
    %151 = vector.load %arg9[%c0_88, %c0_89] : memref<32x128xf32, #tpu.memory_space<vmem>>, vector<32x128xf32>
    tpu.vector_store %arg9[%c0_88, %c0_89], %149 {strides = array<i32>} : memref<32x128xf32, #tpu.memory_space<vmem>>, vector<32x128xf32>,
    %152 = arith.index_cast %c5_i32 : i32 to index
    %c0_90 = arith.constant 0 : index
    %c0_91 = arith.constant 0 : index
    %153 = vector.load %arg6[%152, %c0_90, %c0_91] : memref<16x32x128xf32, #tpu.memory_space<vmem>>, vector<1x32x128xf32>
    %154 = vector.shape_cast %153 : vector<1x32x128xf32> to vector<32x128xf32>
    %155 = vector.shape_cast %149 : vector<32x128xf32> to vector<1x32x128xf32>
    tpu.vector_store %arg6[%152, %c0_90, %c0_91], %155 {strides = array<i32>} : memref<16x32x128xf32, #tpu.memory_space<vmem>>, vector<1x32x128xf32>,
    %c6_i32 = arith.constant 6 : i32
    %c0_92 = arith.constant 0 : index
    %c0_93 = arith.constant 0 : index
    %156 = vector.load %arg9[%c0_92, %c0_93] : memref<32x128xf32, #tpu.memory_space<vmem>>, vector<32x128xf32>
    %cst_94 = arith.constant dense<0.000000e+00> : vector<32x128xf32>
    %157 = tpu.matmul %156, %5, %cst_94 {dimension_numbers = #tpu.dot_dimension_numbers<[1], [0], [0], [1], [0, 0, 1, 1], [], []>} : vector<32x128xf32>, vector<128x128xf32>, vector<32x128xf32> -> vector<32x128xf32>
    %c0_95 = arith.constant 0 : index
    %c0_96 = arith.constant 0 : index
    %158 = vector.load %arg8[%c0_95, %c0_96] : memref<32x128xf32, #tpu.memory_space<vmem>>, vector<32x128xf32>
    %159 = arith.subf %158, %157 : vector<32x128xf32>
    %160 = vector.broadcast %3 : f32 to vector<32x128xf32>
    %161 = arith.mulf %159, %160 : vector<32x128xf32>
    %162 = arith.index_cast %c6_i32 : i32 to index
    %c0_97 = arith.constant 0 : index
    %c0_98 = arith.constant 0 : index
    %163 = vector.load %arg2[%162, %c0_97, %c0_98] : memref<16x32x128xf32, #tpu.memory_space<vmem>>, vector<1x32x128xf32>
    %164 = vector.shape_cast %163 : vector<1x32x128xf32> to vector<32x128xf32>
    %165 = vector.broadcast %4 : f32 to vector<32x128xf32>
    %166 = arith.mulf %164, %165 : vector<32x128xf32>
    %167 = arith.addf %161, %166 : vector<32x128xf32>
    %168 = arith.mulf %167, %8 : vector<32x128xf32>
    %169 = arith.subf %168, %11 : vector<32x128xf32>
    %cst_99 = arith.constant 0.000000e+00 : f32
    %170 = vector.broadcast %cst_99 : f32 to vector<32x128xf32>
    %171 = arith.cmpf ogt, %169, %170 : vector<32x128xf32>
    %172 = arith.extui %171 : vector<32x128xi1> to vector<32x128xi32>
    %173 = arith.sitofp %172 : vector<32x128xi32> to vector<32x128xf32>
    %c0_100 = arith.constant 0 : index
    %c0_101 = arith.constant 0 : index
    %174 = vector.load %arg8[%c0_100, %c0_101] : memref<32x128xf32, #tpu.memory_space<vmem>>, vector<32x128xf32>
    tpu.vector_store %arg8[%c0_100, %c0_101], %167 {strides = array<i32>} : memref<32x128xf32, #tpu.memory_space<vmem>>, vector<32x128xf32>,
    %c0_102 = arith.constant 0 : index
    %c0_103 = arith.constant 0 : index
    %175 = vector.load %arg9[%c0_102, %c0_103] : memref<32x128xf32, #tpu.memory_space<vmem>>, vector<32x128xf32>
    tpu.vector_store %arg9[%c0_102, %c0_103], %173 {strides = array<i32>} : memref<32x128xf32, #tpu.memory_space<vmem>>, vector<32x128xf32>,
    %176 = arith.index_cast %c6_i32 : i32 to index
    %c0_104 = arith.constant 0 : index
    %c0_105 = arith.constant 0 : index
    %177 = vector.load %arg6[%176, %c0_104, %c0_105] : memref<16x32x128xf32, #tpu.memory_space<vmem>>, vector<1x32x128xf32>
    %178 = vector.shape_cast %177 : vector<1x32x128xf32> to vector<32x128xf32>
    %179 = vector.shape_cast %173 : vector<32x128xf32> to vector<1x32x128xf32>
    tpu.vector_store %arg6[%176, %c0_104, %c0_105], %179 {strides = array<i32>} : memref<16x32x128xf32, #tpu.memory_space<vmem>>, vector<1x32x128xf32>,
    %c7_i32 = arith.constant 7 : i32
    %c0_106 = arith.constant 0 : index
    %c0_107 = arith.constant 0 : index
    %180 = vector.load %arg9[%c0_106, %c0_107] : memref<32x128xf32, #tpu.memory_space<vmem>>, vector<32x128xf32>
    %cst_108 = arith.constant dense<0.000000e+00> : vector<32x128xf32>
    %181 = tpu.matmul %180, %5, %cst_108 {dimension_numbers = #tpu.dot_dimension_numbers<[1], [0], [0], [1], [0, 0, 1, 1], [], []>} : vector<32x128xf32>, vector<128x128xf32>, vector<32x128xf32> -> vector<32x128xf32>
    %c0_109 = arith.constant 0 : index
    %c0_110 = arith.constant 0 : index
    %182 = vector.load %arg8[%c0_109, %c0_110] : memref<32x128xf32, #tpu.memory_space<vmem>>, vector<32x128xf32>
    %183 = arith.subf %182, %181 : vector<32x128xf32>
    %184 = vector.broadcast %3 : f32 to vector<32x128xf32>
    %185 = arith.mulf %183, %184 : vector<32x128xf32>
    %186 = arith.index_cast %c7_i32 : i32 to index
    %c0_111 = arith.constant 0 : index
    %c0_112 = arith.constant 0 : index
    %187 = vector.load %arg2[%186, %c0_111, %c0_112] : memref<16x32x128xf32, #tpu.memory_space<vmem>>, vector<1x32x128xf32>
    %188 = vector.shape_cast %187 : vector<1x32x128xf32> to vector<32x128xf32>
    %189 = vector.broadcast %4 : f32 to vector<32x128xf32>
    %190 = arith.mulf %188, %189 : vector<32x128xf32>
    %191 = arith.addf %185, %190 : vector<32x128xf32>
    %192 = arith.mulf %191, %8 : vector<32x128xf32>
    %193 = arith.subf %192, %11 : vector<32x128xf32>
    %cst_113 = arith.constant 0.000000e+00 : f32
    %194 = vector.broadcast %cst_113 : f32 to vector<32x128xf32>
    %195 = arith.cmpf ogt, %193, %194 : vector<32x128xf32>
    %196 = arith.extui %195 : vector<32x128xi1> to vector<32x128xi32>
    %197 = arith.sitofp %196 : vector<32x128xi32> to vector<32x128xf32>
    %c0_114 = arith.constant 0 : index
    %c0_115 = arith.constant 0 : index
    %198 = vector.load %arg8[%c0_114, %c0_115] : memref<32x128xf32, #tpu.memory_space<vmem>>, vector<32x128xf32>
    tpu.vector_store %arg8[%c0_114, %c0_115], %191 {strides = array<i32>} : memref<32x128xf32, #tpu.memory_space<vmem>>, vector<32x128xf32>,
    %c0_116 = arith.constant 0 : index
    %c0_117 = arith.constant 0 : index
    %199 = vector.load %arg9[%c0_116, %c0_117] : memref<32x128xf32, #tpu.memory_space<vmem>>, vector<32x128xf32>
    tpu.vector_store %arg9[%c0_116, %c0_117], %197 {strides = array<i32>} : memref<32x128xf32, #tpu.memory_space<vmem>>, vector<32x128xf32>,
    %200 = arith.index_cast %c7_i32 : i32 to index
    %c0_118 = arith.constant 0 : index
    %c0_119 = arith.constant 0 : index
    %201 = vector.load %arg6[%200, %c0_118, %c0_119] : memref<16x32x128xf32, #tpu.memory_space<vmem>>, vector<1x32x128xf32>
    %202 = vector.shape_cast %201 : vector<1x32x128xf32> to vector<32x128xf32>
    %203 = vector.shape_cast %197 : vector<32x128xf32> to vector<1x32x128xf32>
    tpu.vector_store %arg6[%200, %c0_118, %c0_119], %203 {strides = array<i32>} : memref<16x32x128xf32, #tpu.memory_space<vmem>>, vector<1x32x128xf32>,
    %c8_i32 = arith.constant 8 : i32
    %c0_120 = arith.constant 0 : index
    %c0_121 = arith.constant 0 : index
    %204 = vector.load %arg9[%c0_120, %c0_121] : memref<32x128xf32, #tpu.memory_space<vmem>>, vector<32x128xf32>
    %cst_122 = arith.constant dense<0.000000e+00> : vector<32x128xf32>
    %205 = tpu.matmul %204, %5, %cst_122 {dimension_numbers = #tpu.dot_dimension_numbers<[1], [0], [0], [1], [0, 0, 1, 1], [], []>} : vector<32x128xf32>, vector<128x128xf32>, vector<32x128xf32> -> vector<32x128xf32>
    %c0_123 = arith.constant 0 : index
    %c0_124 = arith.constant 0 : index
    %206 = vector.load %arg8[%c0_123, %c0_124] : memref<32x128xf32, #tpu.memory_space<vmem>>, vector<32x128xf32>
    %207 = arith.subf %206, %205 : vector<32x128xf32>
    %208 = vector.broadcast %3 : f32 to vector<32x128xf32>
    %209 = arith.mulf %207, %208 : vector<32x128xf32>
    %210 = arith.index_cast %c8_i32 : i32 to index
    %c0_125 = arith.constant 0 : index
    %c0_126 = arith.constant 0 : index
    %211 = vector.load %arg2[%210, %c0_125, %c0_126] : memref<16x32x128xf32, #tpu.memory_space<vmem>>, vector<1x32x128xf32>
    %212 = vector.shape_cast %211 : vector<1x32x128xf32> to vector<32x128xf32>
    %213 = vector.broadcast %4 : f32 to vector<32x128xf32>
    %214 = arith.mulf %212, %213 : vector<32x128xf32>
    %215 = arith.addf %209, %214 : vector<32x128xf32>
    %216 = arith.mulf %215, %8 : vector<32x128xf32>
    %217 = arith.subf %216, %11 : vector<32x128xf32>
    %cst_127 = arith.constant 0.000000e+00 : f32
    %218 = vector.broadcast %cst_127 : f32 to vector<32x128xf32>
    %219 = arith.cmpf ogt, %217, %218 : vector<32x128xf32>
    %220 = arith.extui %219 : vector<32x128xi1> to vector<32x128xi32>
    %221 = arith.sitofp %220 : vector<32x128xi32> to vector<32x128xf32>
    %c0_128 = arith.constant 0 : index
    %c0_129 = arith.constant 0 : index
    %222 = vector.load %arg8[%c0_128, %c0_129] : memref<32x128xf32, #tpu.memory_space<vmem>>, vector<32x128xf32>
    tpu.vector_store %arg8[%c0_128, %c0_129], %215 {strides = array<i32>} : memref<32x128xf32, #tpu.memory_space<vmem>>, vector<32x128xf32>,
    %c0_130 = arith.constant 0 : index
    %c0_131 = arith.constant 0 : index
    %223 = vector.load %arg9[%c0_130, %c0_131] : memref<32x128xf32, #tpu.memory_space<vmem>>, vector<32x128xf32>
    tpu.vector_store %arg9[%c0_130, %c0_131], %221 {strides = array<i32>} : memref<32x128xf32, #tpu.memory_space<vmem>>, vector<32x128xf32>,
    %224 = arith.index_cast %c8_i32 : i32 to index
    %c0_132 = arith.constant 0 : index
    %c0_133 = arith.constant 0 : index
    %225 = vector.load %arg6[%224, %c0_132, %c0_133] : memref<16x32x128xf32, #tpu.memory_space<vmem>>, vector<1x32x128xf32>
    %226 = vector.shape_cast %225 : vector<1x32x128xf32> to vector<32x128xf32>
    %227 = vector.shape_cast %221 : vector<32x128xf32> to vector<1x32x128xf32>
    tpu.vector_store %arg6[%224, %c0_132, %c0_133], %227 {strides = array<i32>} : memref<16x32x128xf32, #tpu.memory_space<vmem>>, vector<1x32x128xf32>,
    %c9_i32 = arith.constant 9 : i32
    %c0_134 = arith.constant 0 : index
    %c0_135 = arith.constant 0 : index
    %228 = vector.load %arg9[%c0_134, %c0_135] : memref<32x128xf32, #tpu.memory_space<vmem>>, vector<32x128xf32>
    %cst_136 = arith.constant dense<0.000000e+00> : vector<32x128xf32>
    %229 = tpu.matmul %228, %5, %cst_136 {dimension_numbers = #tpu.dot_dimension_numbers<[1], [0], [0], [1], [0, 0, 1, 1], [], []>} : vector<32x128xf32>, vector<128x128xf32>, vector<32x128xf32> -> vector<32x128xf32>
    %c0_137 = arith.constant 0 : index
    %c0_138 = arith.constant 0 : index
    %230 = vector.load %arg8[%c0_137, %c0_138] : memref<32x128xf32, #tpu.memory_space<vmem>>, vector<32x128xf32>
    %231 = arith.subf %230, %229 : vector<32x128xf32>
    %232 = vector.broadcast %3 : f32 to vector<32x128xf32>
    %233 = arith.mulf %231, %232 : vector<32x128xf32>
    %234 = arith.index_cast %c9_i32 : i32 to index
    %c0_139 = arith.constant 0 : index
    %c0_140 = arith.constant 0 : index
    %235 = vector.load %arg2[%234, %c0_139, %c0_140] : memref<16x32x128xf32, #tpu.memory_space<vmem>>, vector<1x32x128xf32>
    %236 = vector.shape_cast %235 : vector<1x32x128xf32> to vector<32x128xf32>
    %237 = vector.broadcast %4 : f32 to vector<32x128xf32>
    %238 = arith.mulf %236, %237 : vector<32x128xf32>
    %239 = arith.addf %233, %238 : vector<32x128xf32>
    %240 = arith.mulf %239, %8 : vector<32x128xf32>
    %241 = arith.subf %240, %11 : vector<32x128xf32>
    %cst_141 = arith.constant 0.000000e+00 : f32
    %242 = vector.broadcast %cst_141 : f32 to vector<32x128xf32>
    %243 = arith.cmpf ogt, %241, %242 : vector<32x128xf32>
    %244 = arith.extui %243 : vector<32x128xi1> to vector<32x128xi32>
    %245 = arith.sitofp %244 : vector<32x128xi32> to vector<32x128xf32>
    %c0_142 = arith.constant 0 : index
    %c0_143 = arith.constant 0 : index
    %246 = vector.load %arg8[%c0_142, %c0_143] : memref<32x128xf32, #tpu.memory_space<vmem>>, vector<32x128xf32>
    tpu.vector_store %arg8[%c0_142, %c0_143], %239 {strides = array<i32>} : memref<32x128xf32, #tpu.memory_space<vmem>>, vector<32x128xf32>,
    %c0_144 = arith.constant 0 : index
    %c0_145 = arith.constant 0 : index
    %247 = vector.load %arg9[%c0_144, %c0_145] : memref<32x128xf32, #tpu.memory_space<vmem>>, vector<32x128xf32>
    tpu.vector_store %arg9[%c0_144, %c0_145], %245 {strides = array<i32>} : memref<32x128xf32, #tpu.memory_space<vmem>>, vector<32x128xf32>,
    %248 = arith.index_cast %c9_i32 : i32 to index
    %c0_146 = arith.constant 0 : index
    %c0_147 = arith.constant 0 : index
    %249 = vector.load %arg6[%248, %c0_146, %c0_147] : memref<16x32x128xf32, #tpu.memory_space<vmem>>, vector<1x32x128xf32>
    %250 = vector.shape_cast %249 : vector<1x32x128xf32> to vector<32x128xf32>
    %251 = vector.shape_cast %245 : vector<32x128xf32> to vector<1x32x128xf32>
    tpu.vector_store %arg6[%248, %c0_146, %c0_147], %251 {strides = array<i32>} : memref<16x32x128xf32, #tpu.memory_space<vmem>>, vector<1x32x128xf32>,
    %c10_i32 = arith.constant 10 : i32
    %c0_148 = arith.constant 0 : index
    %c0_149 = arith.constant 0 : index
    %252 = vector.load %arg9[%c0_148, %c0_149] : memref<32x128xf32, #tpu.memory_space<vmem>>, vector<32x128xf32>
    %cst_150 = arith.constant dense<0.000000e+00> : vector<32x128xf32>
    %253 = tpu.matmul %252, %5, %cst_150 {dimension_numbers = #tpu.dot_dimension_numbers<[1], [0], [0], [1], [0, 0, 1, 1], [], []>} : vector<32x128xf32>, vector<128x128xf32>, vector<32x128xf32> -> vector<32x128xf32>
    %c0_151 = arith.constant 0 : index
    %c0_152 = arith.constant 0 : index
    %254 = vector.load %arg8[%c0_151, %c0_152] : memref<32x128xf32, #tpu.memory_space<vmem>>, vector<32x128xf32>
    %255 = arith.subf %254, %253 : vector<32x128xf32>
    %256 = vector.broadcast %3 : f32 to vector<32x128xf32>
    %257 = arith.mulf %255, %256 : vector<32x128xf32>
    %258 = arith.index_cast %c10_i32 : i32 to index
    %c0_153 = arith.constant 0 : index
    %c0_154 = arith.constant 0 : index
    %259 = vector.load %arg2[%258, %c0_153, %c0_154] : memref<16x32x128xf32, #tpu.memory_space<vmem>>, vector<1x32x128xf32>
    %260 = vector.shape_cast %259 : vector<1x32x128xf32> to vector<32x128xf32>
    %261 = vector.broadcast %4 : f32 to vector<32x128xf32>
    %262 = arith.mulf %260, %261 : vector<32x128xf32>
    %263 = arith.addf %257, %262 : vector<32x128xf32>
    %264 = arith.mulf %263, %8 : vector<32x128xf32>
    %265 = arith.subf %264, %11 : vector<32x128xf32>
    %cst_155 = arith.constant 0.000000e+00 : f32
    %266 = vector.broadcast %cst_155 : f32 to vector<32x128xf32>
    %267 = arith.cmpf ogt, %265, %266 : vector<32x128xf32>
    %268 = arith.extui %267 : vector<32x128xi1> to vector<32x128xi32>
    %269 = arith.sitofp %268 : vector<32x128xi32> to vector<32x128xf32>
    %c0_156 = arith.constant 0 : index
    %c0_157 = arith.constant 0 : index
    %270 = vector.load %arg8[%c0_156, %c0_157] : memref<32x128xf32, #tpu.memory_space<vmem>>, vector<32x128xf32>
    tpu.vector_store %arg8[%c0_156, %c0_157], %263 {strides = array<i32>} : memref<32x128xf32, #tpu.memory_space<vmem>>, vector<32x128xf32>,
    %c0_158 = arith.constant 0 : index
    %c0_159 = arith.constant 0 : index
    %271 = vector.load %arg9[%c0_158, %c0_159] : memref<32x128xf32, #tpu.memory_space<vmem>>, vector<32x128xf32>
    tpu.vector_store %arg9[%c0_158, %c0_159], %269 {strides = array<i32>} : memref<32x128xf32, #tpu.memory_space<vmem>>, vector<32x128xf32>,
    %272 = arith.index_cast %c10_i32 : i32 to index
    %c0_160 = arith.constant 0 : index
    %c0_161 = arith.constant 0 : index
    %273 = vector.load %arg6[%272, %c0_160, %c0_161] : memref<16x32x128xf32, #tpu.memory_space<vmem>>, vector<1x32x128xf32>
    %274 = vector.shape_cast %273 : vector<1x32x128xf32> to vector<32x128xf32>
    %275 = vector.shape_cast %269 : vector<32x128xf32> to vector<1x32x128xf32>
    tpu.vector_store %arg6[%272, %c0_160, %c0_161], %275 {strides = array<i32>} : memref<16x32x128xf32, #tpu.memory_space<vmem>>, vector<1x32x128xf32>,
    %c11_i32 = arith.constant 11 : i32
    %c0_162 = arith.constant 0 : index
    %c0_163 = arith.constant 0 : index
    %276 = vector.load %arg9[%c0_162, %c0_163] : memref<32x128xf32, #tpu.memory_space<vmem>>, vector<32x128xf32>
    %cst_164 = arith.constant dense<0.000000e+00> : vector<32x128xf32>
    %277 = tpu.matmul %276, %5, %cst_164 {dimension_numbers = #tpu.dot_dimension_numbers<[1], [0], [0], [1], [0, 0, 1, 1], [], []>} : vector<32x128xf32>, vector<128x128xf32>, vector<32x128xf32> -> vector<32x128xf32>
    %c0_165 = arith.constant 0 : index
    %c0_166 = arith.constant 0 : index
    %278 = vector.load %arg8[%c0_165, %c0_166] : memref<32x128xf32, #tpu.memory_space<vmem>>, vector<32x128xf32>
    %279 = arith.subf %278, %277 : vector<32x128xf32>
    %280 = vector.broadcast %3 : f32 to vector<32x128xf32>
    %281 = arith.mulf %279, %280 : vector<32x128xf32>
    %282 = arith.index_cast %c11_i32 : i32 to index
    %c0_167 = arith.constant 0 : index
    %c0_168 = arith.constant 0 : index
    %283 = vector.load %arg2[%282, %c0_167, %c0_168] : memref<16x32x128xf32, #tpu.memory_space<vmem>>, vector<1x32x128xf32>
    %284 = vector.shape_cast %283 : vector<1x32x128xf32> to vector<32x128xf32>
    %285 = vector.broadcast %4 : f32 to vector<32x128xf32>
    %286 = arith.mulf %284, %285 : vector<32x128xf32>
    %287 = arith.addf %281, %286 : vector<32x128xf32>
    %288 = arith.mulf %287, %8 : vector<32x128xf32>
    %289 = arith.subf %288, %11 : vector<32x128xf32>
    %cst_169 = arith.constant 0.000000e+00 : f32
    %290 = vector.broadcast %cst_169 : f32 to vector<32x128xf32>
    %291 = arith.cmpf ogt, %289, %290 : vector<32x128xf32>
    %292 = arith.extui %291 : vector<32x128xi1> to vector<32x128xi32>
    %293 = arith.sitofp %292 : vector<32x128xi32> to vector<32x128xf32>
    %c0_170 = arith.constant 0 : index
    %c0_171 = arith.constant 0 : index
    %294 = vector.load %arg8[%c0_170, %c0_171] : memref<32x128xf32, #tpu.memory_space<vmem>>, vector<32x128xf32>
    tpu.vector_store %arg8[%c0_170, %c0_171], %287 {strides = array<i32>} : memref<32x128xf32, #tpu.memory_space<vmem>>, vector<32x128xf32>,
    %c0_172 = arith.constant 0 : index
    %c0_173 = arith.constant 0 : index
    %295 = vector.load %arg9[%c0_172, %c0_173] : memref<32x128xf32, #tpu.memory_space<vmem>>, vector<32x128xf32>
    tpu.vector_store %arg9[%c0_172, %c0_173], %293 {strides = array<i32>} : memref<32x128xf32, #tpu.memory_space<vmem>>, vector<32x128xf32>,
    %296 = arith.index_cast %c11_i32 : i32 to index
    %c0_174 = arith.constant 0 : index
    %c0_175 = arith.constant 0 : index
    %297 = vector.load %arg6[%296, %c0_174, %c0_175] : memref<16x32x128xf32, #tpu.memory_space<vmem>>, vector<1x32x128xf32>
    %298 = vector.shape_cast %297 : vector<1x32x128xf32> to vector<32x128xf32>
    %299 = vector.shape_cast %293 : vector<32x128xf32> to vector<1x32x128xf32>
    tpu.vector_store %arg6[%296, %c0_174, %c0_175], %299 {strides = array<i32>} : memref<16x32x128xf32, #tpu.memory_space<vmem>>, vector<1x32x128xf32>,
    %c12_i32 = arith.constant 12 : i32
    %c0_176 = arith.constant 0 : index
    %c0_177 = arith.constant 0 : index
    %300 = vector.load %arg9[%c0_176, %c0_177] : memref<32x128xf32, #tpu.memory_space<vmem>>, vector<32x128xf32>
    %cst_178 = arith.constant dense<0.000000e+00> : vector<32x128xf32>
    %301 = tpu.matmul %300, %5, %cst_178 {dimension_numbers = #tpu.dot_dimension_numbers<[1], [0], [0], [1], [0, 0, 1, 1], [], []>} : vector<32x128xf32>, vector<128x128xf32>, vector<32x128xf32> -> vector<32x128xf32>
    %c0_179 = arith.constant 0 : index
    %c0_180 = arith.constant 0 : index
    %302 = vector.load %arg8[%c0_179, %c0_180] : memref<32x128xf32, #tpu.memory_space<vmem>>, vector<32x128xf32>
    %303 = arith.subf %302, %301 : vector<32x128xf32>
    %304 = vector.broadcast %3 : f32 to vector<32x128xf32>
    %305 = arith.mulf %303, %304 : vector<32x128xf32>
    %306 = arith.index_cast %c12_i32 : i32 to index
    %c0_181 = arith.constant 0 : index
    %c0_182 = arith.constant 0 : index
    %307 = vector.load %arg2[%306, %c0_181, %c0_182] : memref<16x32x128xf32, #tpu.memory_space<vmem>>, vector<1x32x128xf32>
    %308 = vector.shape_cast %307 : vector<1x32x128xf32> to vector<32x128xf32>
    %309 = vector.broadcast %4 : f32 to vector<32x128xf32>
    %310 = arith.mulf %308, %309 : vector<32x128xf32>
    %311 = arith.addf %305, %310 : vector<32x128xf32>
    %312 = arith.mulf %311, %8 : vector<32x128xf32>
    %313 = arith.subf %312, %11 : vector<32x128xf32>
    %cst_183 = arith.constant 0.000000e+00 : f32
    %314 = vector.broadcast %cst_183 : f32 to vector<32x128xf32>
    %315 = arith.cmpf ogt, %313, %314 : vector<32x128xf32>
    %316 = arith.extui %315 : vector<32x128xi1> to vector<32x128xi32>
    %317 = arith.sitofp %316 : vector<32x128xi32> to vector<32x128xf32>
    %c0_184 = arith.constant 0 : index
    %c0_185 = arith.constant 0 : index
    %318 = vector.load %arg8[%c0_184, %c0_185] : memref<32x128xf32, #tpu.memory_space<vmem>>, vector<32x128xf32>
    tpu.vector_store %arg8[%c0_184, %c0_185], %311 {strides = array<i32>} : memref<32x128xf32, #tpu.memory_space<vmem>>, vector<32x128xf32>,
    %c0_186 = arith.constant 0 : index
    %c0_187 = arith.constant 0 : index
    %319 = vector.load %arg9[%c0_186, %c0_187] : memref<32x128xf32, #tpu.memory_space<vmem>>, vector<32x128xf32>
    tpu.vector_store %arg9[%c0_186, %c0_187], %317 {strides = array<i32>} : memref<32x128xf32, #tpu.memory_space<vmem>>, vector<32x128xf32>,
    %320 = arith.index_cast %c12_i32 : i32 to index
    %c0_188 = arith.constant 0 : index
    %c0_189 = arith.constant 0 : index
    %321 = vector.load %arg6[%320, %c0_188, %c0_189] : memref<16x32x128xf32, #tpu.memory_space<vmem>>, vector<1x32x128xf32>
    %322 = vector.shape_cast %321 : vector<1x32x128xf32> to vector<32x128xf32>
    %323 = vector.shape_cast %317 : vector<32x128xf32> to vector<1x32x128xf32>
    tpu.vector_store %arg6[%320, %c0_188, %c0_189], %323 {strides = array<i32>} : memref<16x32x128xf32, #tpu.memory_space<vmem>>, vector<1x32x128xf32>,
    %c13_i32 = arith.constant 13 : i32
    %c0_190 = arith.constant 0 : index
    %c0_191 = arith.constant 0 : index
    %324 = vector.load %arg9[%c0_190, %c0_191] : memref<32x128xf32, #tpu.memory_space<vmem>>, vector<32x128xf32>
    %cst_192 = arith.constant dense<0.000000e+00> : vector<32x128xf32>
    %325 = tpu.matmul %324, %5, %cst_192 {dimension_numbers = #tpu.dot_dimension_numbers<[1], [0], [0], [1], [0, 0, 1, 1], [], []>} : vector<32x128xf32>, vector<128x128xf32>, vector<32x128xf32> -> vector<32x128xf32>
    %c0_193 = arith.constant 0 : index
    %c0_194 = arith.constant 0 : index
    %326 = vector.load %arg8[%c0_193, %c0_194] : memref<32x128xf32, #tpu.memory_space<vmem>>, vector<32x128xf32>
    %327 = arith.subf %326, %325 : vector<32x128xf32>
    %328 = vector.broadcast %3 : f32 to vector<32x128xf32>
    %329 = arith.mulf %327, %328 : vector<32x128xf32>
    %330 = arith.index_cast %c13_i32 : i32 to index
    %c0_195 = arith.constant 0 : index
    %c0_196 = arith.constant 0 : index
    %331 = vector.load %arg2[%330, %c0_195, %c0_196] : memref<16x32x128xf32, #tpu.memory_space<vmem>>, vector<1x32x128xf32>
    %332 = vector.shape_cast %331 : vector<1x32x128xf32> to vector<32x128xf32>
    %333 = vector.broadcast %4 : f32 to vector<32x128xf32>
    %334 = arith.mulf %332, %333 : vector<32x128xf32>
    %335 = arith.addf %329, %334 : vector<32x128xf32>
    %336 = arith.mulf %335, %8 : vector<32x128xf32>
    %337 = arith.subf %336, %11 : vector<32x128xf32>
    %cst_197 = arith.constant 0.000000e+00 : f32
    %338 = vector.broadcast %cst_197 : f32 to vector<32x128xf32>
    %339 = arith.cmpf ogt, %337, %338 : vector<32x128xf32>
    %340 = arith.extui %339 : vector<32x128xi1> to vector<32x128xi32>
    %341 = arith.sitofp %340 : vector<32x128xi32> to vector<32x128xf32>
    %c0_198 = arith.constant 0 : index
    %c0_199 = arith.constant 0 : index
    %342 = vector.load %arg8[%c0_198, %c0_199] : memref<32x128xf32, #tpu.memory_space<vmem>>, vector<32x128xf32>
    tpu.vector_store %arg8[%c0_198, %c0_199], %335 {strides = array<i32>} : memref<32x128xf32, #tpu.memory_space<vmem>>, vector<32x128xf32>,
    %c0_200 = arith.constant 0 : index
    %c0_201 = arith.constant 0 : index
    %343 = vector.load %arg9[%c0_200, %c0_201] : memref<32x128xf32, #tpu.memory_space<vmem>>, vector<32x128xf32>
    tpu.vector_store %arg9[%c0_200, %c0_201], %341 {strides = array<i32>} : memref<32x128xf32, #tpu.memory_space<vmem>>, vector<32x128xf32>,
    %344 = arith.index_cast %c13_i32 : i32 to index
    %c0_202 = arith.constant 0 : index
    %c0_203 = arith.constant 0 : index
    %345 = vector.load %arg6[%344, %c0_202, %c0_203] : memref<16x32x128xf32, #tpu.memory_space<vmem>>, vector<1x32x128xf32>
    %346 = vector.shape_cast %345 : vector<1x32x128xf32> to vector<32x128xf32>
    %347 = vector.shape_cast %341 : vector<32x128xf32> to vector<1x32x128xf32>
    tpu.vector_store %arg6[%344, %c0_202, %c0_203], %347 {strides = array<i32>} : memref<16x32x128xf32, #tpu.memory_space<vmem>>, vector<1x32x128xf32>,
    %c14_i32 = arith.constant 14 : i32
    %c0_204 = arith.constant 0 : index
    %c0_205 = arith.constant 0 : index
    %348 = vector.load %arg9[%c0_204, %c0_205] : memref<32x128xf32, #tpu.memory_space<vmem>>, vector<32x128xf32>
    %cst_206 = arith.constant dense<0.000000e+00> : vector<32x128xf32>
    %349 = tpu.matmul %348, %5, %cst_206 {dimension_numbers = #tpu.dot_dimension_numbers<[1], [0], [0], [1], [0, 0, 1, 1], [], []>} : vector<32x128xf32>, vector<128x128xf32>, vector<32x128xf32> -> vector<32x128xf32>
    %c0_207 = arith.constant 0 : index
    %c0_208 = arith.constant 0 : index
    %350 = vector.load %arg8[%c0_207, %c0_208] : memref<32x128xf32, #tpu.memory_space<vmem>>, vector<32x128xf32>
    %351 = arith.subf %350, %349 : vector<32x128xf32>
    %352 = vector.broadcast %3 : f32 to vector<32x128xf32>
    %353 = arith.mulf %351, %352 : vector<32x128xf32>
    %354 = arith.index_cast %c14_i32 : i32 to index
    %c0_209 = arith.constant 0 : index
    %c0_210 = arith.constant 0 : index
    %355 = vector.load %arg2[%354, %c0_209, %c0_210] : memref<16x32x128xf32, #tpu.memory_space<vmem>>, vector<1x32x128xf32>
    %356 = vector.shape_cast %355 : vector<1x32x128xf32> to vector<32x128xf32>
    %357 = vector.broadcast %4 : f32 to vector<32x128xf32>
    %358 = arith.mulf %356, %357 : vector<32x128xf32>
    %359 = arith.addf %353, %358 : vector<32x128xf32>
    %360 = arith.mulf %359, %8 : vector<32x128xf32>
    %361 = arith.subf %360, %11 : vector<32x128xf32>
    %cst_211 = arith.constant 0.000000e+00 : f32
    %362 = vector.broadcast %cst_211 : f32 to vector<32x128xf32>
    %363 = arith.cmpf ogt, %361, %362 : vector<32x128xf32>
    %364 = arith.extui %363 : vector<32x128xi1> to vector<32x128xi32>
    %365 = arith.sitofp %364 : vector<32x128xi32> to vector<32x128xf32>
    %c0_212 = arith.constant 0 : index
    %c0_213 = arith.constant 0 : index
    %366 = vector.load %arg8[%c0_212, %c0_213] : memref<32x128xf32, #tpu.memory_space<vmem>>, vector<32x128xf32>
    tpu.vector_store %arg8[%c0_212, %c0_213], %359 {strides = array<i32>} : memref<32x128xf32, #tpu.memory_space<vmem>>, vector<32x128xf32>,
    %c0_214 = arith.constant 0 : index
    %c0_215 = arith.constant 0 : index
    %367 = vector.load %arg9[%c0_214, %c0_215] : memref<32x128xf32, #tpu.memory_space<vmem>>, vector<32x128xf32>
    tpu.vector_store %arg9[%c0_214, %c0_215], %365 {strides = array<i32>} : memref<32x128xf32, #tpu.memory_space<vmem>>, vector<32x128xf32>,
    %368 = arith.index_cast %c14_i32 : i32 to index
    %c0_216 = arith.constant 0 : index
    %c0_217 = arith.constant 0 : index
    %369 = vector.load %arg6[%368, %c0_216, %c0_217] : memref<16x32x128xf32, #tpu.memory_space<vmem>>, vector<1x32x128xf32>
    %370 = vector.shape_cast %369 : vector<1x32x128xf32> to vector<32x128xf32>
    %371 = vector.shape_cast %365 : vector<32x128xf32> to vector<1x32x128xf32>
    tpu.vector_store %arg6[%368, %c0_216, %c0_217], %371 {strides = array<i32>} : memref<16x32x128xf32, #tpu.memory_space<vmem>>, vector<1x32x128xf32>,
    %c15_i32 = arith.constant 15 : i32
    %c0_218 = arith.constant 0 : index
    %c0_219 = arith.constant 0 : index
    %372 = vector.load %arg9[%c0_218, %c0_219] : memref<32x128xf32, #tpu.memory_space<vmem>>, vector<32x128xf32>
    %cst_220 = arith.constant dense<0.000000e+00> : vector<32x128xf32>
    %373 = tpu.matmul %372, %5, %cst_220 {dimension_numbers = #tpu.dot_dimension_numbers<[1], [0], [0], [1], [0, 0, 1, 1], [], []>} : vector<32x128xf32>, vector<128x128xf32>, vector<32x128xf32> -> vector<32x128xf32>
    %c0_221 = arith.constant 0 : index
    %c0_222 = arith.constant 0 : index
    %374 = vector.load %arg8[%c0_221, %c0_222] : memref<32x128xf32, #tpu.memory_space<vmem>>, vector<32x128xf32>
    %375 = arith.subf %374, %373 : vector<32x128xf32>
    %376 = vector.broadcast %3 : f32 to vector<32x128xf32>
    %377 = arith.mulf %375, %376 : vector<32x128xf32>
    %378 = arith.index_cast %c15_i32 : i32 to index
    %c0_223 = arith.constant 0 : index
    %c0_224 = arith.constant 0 : index
    %379 = vector.load %arg2[%378, %c0_223, %c0_224] : memref<16x32x128xf32, #tpu.memory_space<vmem>>, vector<1x32x128xf32>
    %380 = vector.shape_cast %379 : vector<1x32x128xf32> to vector<32x128xf32>
    %381 = vector.broadcast %4 : f32 to vector<32x128xf32>
    %382 = arith.mulf %380, %381 : vector<32x128xf32>
    %383 = arith.addf %377, %382 : vector<32x128xf32>
    %384 = arith.mulf %383, %8 : vector<32x128xf32>
    %385 = arith.subf %384, %11 : vector<32x128xf32>
    %cst_225 = arith.constant 0.000000e+00 : f32
    %386 = vector.broadcast %cst_225 : f32 to vector<32x128xf32>
    %387 = arith.cmpf ogt, %385, %386 : vector<32x128xf32>
    %388 = arith.extui %387 : vector<32x128xi1> to vector<32x128xi32>
    %389 = arith.sitofp %388 : vector<32x128xi32> to vector<32x128xf32>
    %c0_226 = arith.constant 0 : index
    %c0_227 = arith.constant 0 : index
    %390 = vector.load %arg8[%c0_226, %c0_227] : memref<32x128xf32, #tpu.memory_space<vmem>>, vector<32x128xf32>
    tpu.vector_store %arg8[%c0_226, %c0_227], %383 {strides = array<i32>} : memref<32x128xf32, #tpu.memory_space<vmem>>, vector<32x128xf32>,
    %c0_228 = arith.constant 0 : index
    %c0_229 = arith.constant 0 : index
    %391 = vector.load %arg9[%c0_228, %c0_229] : memref<32x128xf32, #tpu.memory_space<vmem>>, vector<32x128xf32>
    tpu.vector_store %arg9[%c0_228, %c0_229], %389 {strides = array<i32>} : memref<32x128xf32, #tpu.memory_space<vmem>>, vector<32x128xf32>,
    %392 = arith.index_cast %c15_i32 : i32 to index
    %c0_230 = arith.constant 0 : index
    %c0_231 = arith.constant 0 : index
    %393 = vector.load %arg6[%392, %c0_230, %c0_231] : memref<16x32x128xf32, #tpu.memory_space<vmem>>, vector<1x32x128xf32>
    %394 = vector.shape_cast %393 : vector<1x32x128xf32> to vector<32x128xf32>
    %395 = vector.shape_cast %389 : vector<32x128xf32> to vector<1x32x128xf32>
    tpu.vector_store %arg6[%392, %c0_230, %c0_231], %395 {strides = array<i32>} : memref<16x32x128xf32, #tpu.memory_space<vmem>>, vector<1x32x128xf32>,
    %c16_i32 = arith.constant 16 : i32
    %c0_232 = arith.constant 0 : index
    %c0_233 = arith.constant 0 : index
    %396 = vector.load %arg7[%c0_232, %c0_233] : memref<1x1xf32, #tpu.memory_space<vmem>>, vector<1x1xf32>
    %c0_234 = arith.constant 0 : index
    %c0_235 = arith.constant 0 : index
    %c0_236 = arith.constant 0 : index
    %397 = vector.load %arg6[%c0_234, %c0_235, %c0_236] : memref<16x32x128xf32, #tpu.memory_space<vmem>>, vector<16x32x128xf32>
    %398 = vector.shape_cast %397 : vector<16x32x128xf32> to vector<1x16x32x128xf32>
    %cst_237 = arith.constant dense<0.000000e+00> : vector<1xf32>
    %399 = vector.multi_reduction <add>, %398, %cst_237 [1, 2, 3] : vector<1x16x32x128xf32> to vector<1xf32>
    %400 = vector.shape_cast %399 : vector<1xf32> to vector<1x1x1x1xf32>
    %401 = vector.extract %400[0, 0, 0, 0] : f32 from vector<1x1x1x1xf32>
    %402 = vector.broadcast %401 : f32 to vector<1x1xf32>
    %403 = arith.addf %396, %402 : vector<1x1xf32>
    %c0_238 = arith.constant 0 : index
    %c0_239 = arith.constant 0 : index
    %404 = vector.load %arg7[%c0_238, %c0_239] : memref<1x1xf32, #tpu.memory_space<vmem>>, vector<1x1xf32>
    tpu.vector_store %arg7[%c0_238, %c0_239], %403 {strides = array<i32>} : memref<1x1xf32, #tpu.memory_space<vmem>>, vector<1x1xf32>,
    return
  }
  func.func @transform_0(%arg0: i32) -> i32 {
    %c0_i32 = arith.constant 0 : i32
    %c0_i32_0 = arith.constant 0 : i32
    return %c0_i32 : i32
  }
  func.func @transform_1(%arg0: i32) -> (i32, i32, i32) {
    %c0_i32 = arith.constant 0 : i32
    %c0_i32_0 = arith.constant 0 : i32
    %c0_i32_1 = arith.constant 0 : i32
    return %arg0, %c0_i32, %c0_i32_0 : i32, i32, i32
  }
  func.func @transform_2(%arg0: i32) -> (i32, i32) {
    %c0_i32 = arith.constant 0 : i32
    %c0_i32_0 = arith.constant 0 : i32
    %c0_i32_1 = arith.constant 0 : i32
    return %c0_i32, %c0_i32_0 : i32, i32
  }
  func.func @transform_3(%arg0: i32) -> (i32, i32) {
    %c0_i32 = arith.constant 0 : i32
    %c0_i32_0 = arith.constant 0 : i32
    %c0_i32_1 = arith.constant 0 : i32
    return %c0_i32, %c0_i32_0 : i32, i32
  }
  func.func @transform_4(%arg0: i32) -> (i32, i32) {
    %c0_i32 = arith.constant 0 : i32
    %c0_i32_0 = arith.constant 0 : i32
    %c0_i32_1 = arith.constant 0 : i32
    return %c0_i32, %c0_i32_0 : i32, i32
  }
  func.func @transform_5(%arg0: i32) -> (i32, i32, i32) {
    %c0_i32 = arith.constant 0 : i32
    %c0_i32_0 = arith.constant 0 : i32
    %c0_i32_1 = arith.constant 0 : i32
    return %arg0, %c0_i32, %c0_i32_0 : i32, i32, i32
  }
  func.func @transform_6(%arg0: i32) -> (i32, i32) {
    %c0_i32 = arith.constant 0 : i32
    %c0_i32_0 = arith.constant 0 : i32
    %c0_i32_1 = arith.constant 0 : i32
    return %c0_i32, %c0_i32_0 : i32, i32
  }
}

</mosaic_0001>

<bundles_post_ra>
// kernel: spiking_conv_layer.2
= control target key start
LH: loop header
LB: loop body
LE: loop exit
PB: predicated region body
PF: predicated region fallthrough
CT: control target
= control target key end

     0   :  { %vm80_vm0 = vcmask 293888   ;;  %vm273_vm1 = vcmask 1043456   ;;  %s1462_s1 = inlined_call_operand.vmem [shape: f32[36,128], index: 1, kind: input, shape index: {}]   ;;  %s1463_s0 = inlined_call_operand.vmem [shape: f32[512,36], index: 0, kind: input, shape index: {}]   ;;  %s1464_s2 = inlined_call_operand.vmem [shape: f32[512,128], index: 2, kind: output, shape index: {}]  }
   0x1   :  { %v75_v0 = vld [vmem:[%s1462_s1] sm:$0xff]  ;;  %v76_v1 = vld [vmem:[%s1462_s1 + $0x8] sm:$0xff]  ;;  %v77_v2 = vld [vmem:[%s1462_s1 + $0x10] sm:$0xff] }
   0x2   :  { %v970_v3 = vpack.c.bf16 %v76_v1, %v75_v0  ;;  %v78_v4 = vld [vmem:[%s1462_s1 + $0x18] sm:$0xff]  ;;  %v11_v5 = vld [vmem:[%s1463_s0] sm:$0xff]  ;;  %v12_v9 = vld [vmem:[%s1463_s0 + $0x8] sm:$0xff] }
   0x3   :  { %v974_v6 = vpack.c.bf16 %v78_v4, %v77_v2  ;;  %874 = vmatprep.mubr.msk.f32.mxu0 %vm80_vm0, %v11_v5  ;;  %v43_v7 = vld [vmem:[%s1463_s0 + $0x100] sm:$0xff]  ;;  %v44_v10 = vld [vmem:[%s1463_s0 + $0x108] sm:$0xff]  ;;  %v13_v11 = vld [vmem:[%s1463_s0 + $0x10] sm:$0xff] }
   0x4   :  { %971 = vmatprep.subr.bf16.mxu0 %v970_v3  ;;  %978 = vmatprep.subr.bf16.mxu1 %v970_v3  ;;  %v79_v8 = vld [vmem:[%s1462_s1 + $0x20] sm:$0xf]  ;;  %v45_v12 = vld [vmem:[%s1463_s0 + $0x110] sm:$0xff]  ;;  %v14_v13 = vld [vmem:[%s1463_s0 + $0x18] sm:$0xff] }
   0x5   :  { %973 = vmatpush3.bf16.msra.mxu0 %v970_v3  ;;  %981 = vmatpush3.bf16.msra.mxu1 %v970_v3  ;;  %v46_v14 = vld [vmem:[%s1463_s0 + $0x118] sm:$0xff]  ;;  %v15_v15 = vld [vmem:[%s1463_s0 + $0x20] sm:$0xff]  ;;  %v16_v17 = vld [vmem:[%s1463_s0 + $0x28] sm:$0xff] }
   0x6   :  { %975 = vmatprep.subr.bf16.mxu0 %v974_v6  ;;  %979 = vmatprep.subr.bf16.mxu1 %v974_v6  ;;  %v47_v16 = vld [vmem:[%s1463_s0 + $0x120] sm:$0xff]  ;;  %v48_v18 = vld [vmem:[%s1463_s0 + $0x128] sm:$0xff]  ;;  %v17_v19 = vld [vmem:[%s1463_s0 + $0x30] sm:$0xff] }
   0x7   :  { %922 = vmatprep.mubr.msk.f32.mxu1 %vm80_vm0, %v43_v7  ;;  %v49_v20 = vld [vmem:[%s1463_s0 + $0x130] sm:$0xff]  ;;  %v18_v21 = vld [vmem:[%s1463_s0 + $0x38] sm:$0xff]  ;;  %v19_v23 = vld [vmem:[%s1463_s0 + $0x40] sm:$0xff] }
   0x8   :  { %v50_v22 = vld [vmem:[%s1463_s0 + $0x138] sm:$0xff]  ;;  %v51_v24 = vld [vmem:[%s1463_s0 + $0x140] sm:$0xff]  ;;  %v20_v25 = vld [vmem:[%s1463_s0 + $0x48] sm:$0xff] }
   0x9   :  { %977 = vmatpush3.bf16.msra.mxu0 %v974_v6  ;;  %982 = vmatpush3.bf16.msra.mxu1 %v974_v6  ;;  %v52_v26 = vld [vmem:[%s1463_s0 + $0x148] sm:$0xff]  ;;  %v21_v27 = vld [vmem:[%s1463_s0 + $0x50] sm:$0xff]  ;;  %v22_v29 = vld [vmem:[%s1463_s0 + $0x58] sm:$0xff] }
   0xa   :  { %872 = vmatprep.subr.msk.mxu0 %vm273_vm1, %v79_v8  ;;  %980 = vmatprep.subr.msk.mxu1 %vm273_vm1, %v79_v8  ;;  %v53_v28 = vld [vmem:[%s1463_s0 + $0x150] sm:$0xff]  ;;  %v54_v30 = vld [vmem:[%s1463_s0 + $0x158] sm:$0xff]  ;;  %v23_v31 = vld [vmem:[%s1463_s0 + $0x60] sm:$0xff] }
   0xb   :  { %v55_v32 = vld [vmem:[%s1463_s0 + $0x160] sm:$0xff]  ;;  %v24_v33 = vld [vmem:[%s1463_s0 + $0x68] sm:$0xff]  ;;  %v25_v35 = vld [vmem:[%s1463_s0 + $0x70] sm:$0xff] }
   0xc   :  { %v56_v34 = vld [vmem:[%s1463_s0 + $0x168] sm:$0xff]  ;;  %v57_v36 = vld [vmem:[%s1463_s0 + $0x170] sm:$0xff]  ;;  %v26_v37 = vld [vmem:[%s1463_s0 + $0x78] sm:$0xff] }
   0xd   :  { %873 = vmatpush3.msk.msra.mxu0 %vm273_vm1, %v79_v8  ;;  %983 = vmatpush3.msk.msra.mxu1 %vm273_vm1, %v79_v8  ;;  %v58_v38 = vld [vmem:[%s1463_s0 + $0x178] sm:$0xff]  ;;  %v27_v39 = vld [vmem:[%s1463_s0 + $0x80] sm:$0xff]  ;;  %v28_v41 = vld [vmem:[%s1463_s0 + $0x88] sm:$0xff] }
   0xe   :  { %875 = vmatmul.mubr.msk.f32.vlgmr.msra.gmra.mrb[0].mxu0 %vm80_vm0, %v12_v9  ;;  %923 = vmatmul.mubr.msk.f32.vlgmr.msra.gmra.mrb[0].mxu1 %vm80_vm0, %v44_v10  ;;  %v59_v40 = vld [vmem:[%s1463_s0 + $0x180] sm:$0xff]  ;;  %v60_v42 = vld [vmem:[%s1463_s0 + $0x188] sm:$0xff]  ;;  %v29_v43 = vld [vmem:[%s1463_s0 + $0x90] sm:$0xff] }
   0xf   :  { %877 = vmatprep.mubr.msk.f32.mxu0 %vm80_vm0, %v13_v11  ;;  %925 = vmatprep.mubr.msk.f32.mxu1 %vm80_vm0, %v45_v12  ;;  %v61_v44 = vld [vmem:[%s1463_s0 + $0x190] sm:$0xff]  ;;  %v30_v45 = vld [vmem:[%s1463_s0 + $0x98] sm:$0xff]  ;;  %v31_v47 = vld [vmem:[%s1463_s0 + $0xa0] sm:$0xff] }
  0x10   :  { %v62_v46 = vld [vmem:[%s1463_s0 + $0x198] sm:$0xff]  ;;  %v63_v48 = vld [vmem:[%s1463_s0 + $0x1a0] sm:$0xff]  ;;  %v32_v49 = vld [vmem:[%s1463_s0 + $0xa8] sm:$0xff] }
  0x11   :  { %v64_v50 = vld [vmem:[%s1463_s0 + $0x1a8] sm:$0xff]  ;;  %v33_v51 = vld [vmem:[%s1463_s0 + $0xb0] sm:$0xff]  ;;  %v34_v53 = vld [vmem:[%s1463_s0 + $0xb8] sm:$0xff] }
  0x12   :  { %878 = vmatmul.mubr.msk.f32.gmra.mrb[2].mxu0 %vm80_vm0, %v14_v13  ;;  %926 = vmatmul.mubr.msk.f32.gmra.mrb[2].mxu1 %vm80_vm0, %v46_v14  ;;  %v65_v52 = vld [vmem:[%s1463_s0 + $0x1b0] sm:$0xff]  ;;  %v66_v54 = vld [vmem:[%s1463_s0 + $0x1b8] sm:$0xff]  ;;  %v35_v55 = vld [vmem:[%s1463_s0 + $0xc0] sm:$0xff] }
  0x13   :  { %880 = vmatprep.mubr.msk.f32.mxu0 %vm80_vm0, %v15_v15  ;;  %928 = vmatprep.mubr.msk.f32.mxu1 %vm80_vm0, %v47_v16  ;;  %v67_v56 = vld [vmem:[%s1463_s0 + $0x1c0] sm:$0xff]  ;;  %v36_v57 = vld [vmem:[%s1463_s0 + $0xc8] sm:$0xff]  ;;  %v37_v59 = vld [vmem:[%s1463_s0 + $0xd0] sm:$0xff] }
  0x14   :  { %v68_v58 = vld [vmem:[%s1463_s0 + $0x1c8] sm:$0xff]  ;;  %v69_v60 = vld [vmem:[%s1463_s0 + $0x1d0] sm:$0xff]  ;;  %v38_v61 = vld [vmem:[%s1463_s0 + $0xd8] sm:$0xff] }
  0x15   :  { %v70_v62 = vld [vmem:[%s1463_s0 + $0x1d8] sm:$0xff]  ;;  %v39_v63 = vld [vmem:[%s1463_s0 + $0xe0] sm:$0xff]  ;;  %v40_v1 = vld [vmem:[%s1463_s0 + $0xe8] sm:$0xff] }
  0x16   :  { %881 = vmatmul.mubr.msk.f32.gmra.mrb[4].mxu0 %vm80_vm0, %v16_v17  ;;  %929 = vmatmul.mubr.msk.f32.gmra.mrb[4].mxu1 %vm80_vm0, %v48_v18  ;;  %v71_v0 = vld [vmem:[%s1463_s0 + $0x1e0] sm:$0xff]  ;;  %v72_v2 = vld [vmem:[%s1463_s0 + $0x1e8] sm:$0xff]  ;;  %v41_v3 = vld [vmem:[%s1463_s0 + $0xf0] sm:$0xff] }
  0x17   :  { %883 = vmatprep.mubr.msk.f32.mxu0 %vm80_vm0, %v17_v19  ;;  %931 = vmatprep.mubr.msk.f32.mxu1 %vm80_vm0, %v49_v20  ;;  %v73_v4 = vld [vmem:[%s1463_s0 + $0x1f0] sm:$0xff]  ;;  %v42_v5 = vld [vmem:[%s1463_s0 + $0xf8] sm:$0xff] }
  0x18   :  { %v74_v6 = vld [vmem:[%s1463_s0 + $0x1f8] sm:$0xff] }
  0x1a   :  { %884 = vmatmul.mubr.msk.f32.gmra.mrb[6].mxu0 %vm80_vm0, %v18_v21  ;;  %932 = vmatmul.mubr.msk.f32.gmra.mrb[6].mxu1 %vm80_vm0, %v50_v22 }
  0x1b   :  { %886 = vmatprep.mubr.msk.f32.mxu0 %vm80_vm0, %v19_v23  ;;  %934 = vmatprep.mubr.msk.f32.mxu1 %vm80_vm0, %v51_v24 }
  0x1e   :  { %887 = vmatmul.mubr.msk.f32.gmra.mrb[8].mxu0 %vm80_vm0, %v20_v25  ;;  %935 = vmatmul.mubr.msk.f32.gmra.mrb[8].mxu1 %vm80_vm0, %v52_v26 }
  0x1f   :  { %889 = vmatprep.mubr.msk.f32.mxu0 %vm80_vm0, %v21_v27  ;;  %937 = vmatprep.mubr.msk.f32.mxu1 %vm80_vm0, %v53_v28 }
  0x22   :  { %890 = vmatmul.mubr.msk.f32.gmra.mrb[10].mxu0 %vm80_vm0, %v22_v29  ;;  %938 = vmatmul.mubr.msk.f32.gmra.mrb[10].mxu1 %vm80_vm0, %v54_v30 }
  0x23   :  { %892 = vmatprep.mubr.msk.f32.mxu0 %vm80_vm0, %v23_v31  ;;  %940 = vmatprep.mubr.msk.f32.mxu1 %vm80_vm0, %v55_v32 }
  0x26   :  { %893 = vmatmul.mubr.msk.f32.gmra.mrb[12].mxu0 %vm80_vm0, %v24_v33  ;;  %941 = vmatmul.mubr.msk.f32.gmra.mrb[12].mxu1 %vm80_vm0, %v56_v34 }
  0x27   :  { %895 = vmatprep.mubr.msk.f32.mxu0 %vm80_vm0, %v25_v35  ;;  %943 = vmatprep.mubr.msk.f32.mxu1 %vm80_vm0, %v57_v36 }
  0x2a   :  { %896 = vmatmul.mubr.msk.f32.gmra.mrb[14].mxu0 %vm80_vm0, %v26_v37  ;;  %944 = vmatmul.mubr.msk.f32.gmra.mrb[14].mxu1 %vm80_vm0, %v58_v38 }
  0x2b   :  { %898 = vmatprep.mubr.msk.f32.mxu0 %vm80_vm0, %v27_v39  ;;  %946 = vmatprep.mubr.msk.f32.mxu1 %vm80_vm0, %v59_v40 }
  0x2e   :  { %899 = vmatmul.mubr.msk.f32.gmra.mrb[16].mxu0 %vm80_vm0, %v28_v41  ;;  %947 = vmatmul.mubr.msk.f32.gmra.mrb[16].mxu1 %vm80_vm0, %v60_v42 }
  0x2f   :  { %901 = vmatprep.mubr.msk.f32.mxu0 %vm80_vm0, %v29_v43  ;;  %949 = vmatprep.mubr.msk.f32.mxu1 %vm80_vm0, %v61_v44 }
  0x32   :  { %902 = vmatmul.mubr.msk.f32.gmra.mrb[18].mxu0 %vm80_vm0, %v30_v45  ;;  %950 = vmatmul.mubr.msk.f32.gmra.mrb[18].mxu1 %vm80_vm0, %v62_v46 }
  0x33   :  { %904 = vmatprep.mubr.msk.f32.mxu0 %vm80_vm0, %v31_v47  ;;  %952 = vmatprep.mubr.msk.f32.mxu1 %vm80_vm0, %v63_v48 }
  0x36   :  { %905 = vmatmul.mubr.msk.f32.gmra.mrb[20].mxu0 %vm80_vm0, %v32_v49  ;;  %953 = vmatmul.mubr.msk.f32.gmra.mrb[20].mxu1 %vm80_vm0, %v64_v50 }
  0x37   :  { %907 = vmatprep.mubr.msk.f32.mxu0 %vm80_vm0, %v33_v51  ;;  %955 = vmatprep.mubr.msk.f32.mxu1 %vm80_vm0, %v65_v52 }
  0x3a   :  { %908 = vmatmul.mubr.msk.f32.gmra.mrb[22].mxu0 %vm80_vm0, %v34_v53  ;;  %956 = vmatmul.mubr.msk.f32.gmra.mrb[22].mxu1 %vm80_vm0, %v66_v54 }
  0x3b   :  { %910 = vmatprep.mubr.msk.f32.mxu0 %vm80_vm0, %v35_v55  ;;  %958 = vmatprep.mubr.msk.f32.mxu1 %vm80_vm0, %v67_v56 }
  0x3e   :  { %911 = vmatmul.mubr.msk.f32.gmra.mrb[24].mxu0 %vm80_vm0, %v36_v57  ;;  %959 = vmatmul.mubr.msk.f32.gmra.mrb[24].mxu1 %vm80_vm0, %v68_v58 }
  0x3f   :  { %913 = vmatprep.mubr.msk.f32.mxu0 %vm80_vm0, %v37_v59  ;;  %961 = vmatprep.mubr.msk.f32.mxu1 %vm80_vm0, %v69_v60 }
  0x42   :  { %914 = vmatmul.mubr.msk.f32.gmra.mrb[26].mxu0 %vm80_vm0, %v38_v61  ;;  %962 = vmatmul.mubr.msk.f32.gmra.mrb[26].mxu1 %vm80_vm0, %v70_v62 }
  0x43   :  { %916 = vmatprep.mubr.msk.f32.mxu0 %vm80_vm0, %v39_v63  ;;  %964 = vmatprep.mubr.msk.f32.mxu1 %vm80_vm0, %v71_v0 }
  0x46   :  { %917 = vmatmul.mubr.msk.f32.gmra.mrb[28].mxu0 %vm80_vm0, %v40_v1  ;;  %965 = vmatmul.mubr.msk.f32.gmra.mrb[28].mxu1 %vm80_vm0, %v72_v2 }
  0x47   :  { %919 = vmatprep.mubr.msk.f32.mxu0 %vm80_vm0, %v41_v3  ;;  %967 = vmatprep.mubr.msk.f32.mxu1 %vm80_vm0, %v73_v4 }
  0x4a   :  { %920 = vmatmul.mubr.msk.f32.gmra.mrb[30].mxu0 %vm80_vm0, %v42_v5  ;;  %968 = vmatmul.mubr.msk.f32.gmra.mrb[30].mxu1 %vm80_vm0, %v74_v6 }
  0xe1   :  { %v876_v7 = vpop.f32.mrb[0].mxu0  ;;  %v924_v8 = vpop.f32.mrb[0].mxu1 }
  0xe2   :  { %663 = vst [vmem:[%s1464_s2 + $0x8] sm:$0xff] %v876_v7  ;;  %695 = vst [vmem:[%s1464_s2 + $0x108] sm:$0xff] %v924_v8  ;;  %v343_v9 = vpop.f32.mrb[1].mxu0  ;;  %v503_v10 = vpop.f32.mrb[1].mxu1 }
  0xe3   :  { %662 = vst [vmem:[%s1464_s2] sm:$0xff] %v343_v9  ;;  %694 = vst [vmem:[%s1464_s2 + $0x100] sm:$0xff] %v503_v10 }
  0xe5   :  { %v879_v11 = vpop.f32.mrb[2].mxu0  ;;  %v927_v12 = vpop.f32.mrb[2].mxu1 }
  0xe6   :  { %665 = vst [vmem:[%s1464_s2 + $0x18] sm:$0xff] %v879_v11  ;;  %697 = vst [vmem:[%s1464_s2 + $0x118] sm:$0xff] %v927_v12  ;;  %v353_v13 = vpop.f32.mrb[3].mxu0  ;;  %v513_v14 = vpop.f32.mrb[3].mxu1 }
  0xe7   :  { %664 = vst [vmem:[%s1464_s2 + $0x10] sm:$0xff] %v353_v13  ;;  %696 = vst [vmem:[%s1464_s2 + $0x110] sm:$0xff] %v513_v14 }
  0xe9   :  { %v882_v15 = vpop.f32.mrb[4].mxu0  ;;  %v930_v16 = vpop.f32.mrb[4].mxu1 }
  0xea   :  { %667 = vst [vmem:[%s1464_s2 + $0x28] sm:$0xff] %v882_v15  ;;  %699 = vst [vmem:[%s1464_s2 + $0x128] sm:$0xff] %v930_v16  ;;  %v363_v17 = vpop.f32.mrb[5].mxu0  ;;  %v523_v18 = vpop.f32.mrb[5].mxu1 }
  0xeb   :  { %666 = vst [vmem:[%s1464_s2 + $0x20] sm:$0xff] %v363_v17  ;;  %698 = vst [vmem:[%s1464_s2 + $0x120] sm:$0xff] %v523_v18 }
  0xed   :  { %v885_v19 = vpop.f32.mrb[6].mxu0  ;;  %v933_v20 = vpop.f32.mrb[6].mxu1 }
  0xee   :  { %669 = vst [vmem:[%s1464_s2 + $0x38] sm:$0xff] %v885_v19  ;;  %701 = vst [vmem:[%s1464_s2 + $0x138] sm:$0xff] %v933_v20  ;;  %v373_v21 = vpop.f32.mrb[7].mxu0  ;;  %v533_v22 = vpop.f32.mrb[7].mxu1 }
  0xef   :  { %668 = vst [vmem:[%s1464_s2 + $0x30] sm:$0xff] %v373_v21  ;;  %700 = vst [vmem:[%s1464_s2 + $0x130] sm:$0xff] %v533_v22 }
  0xf1   :  { %v888_v23 = vpop.f32.mrb[8].mxu0  ;;  %v936_v24 = vpop.f32.mrb[8].mxu1 }
  0xf2   :  { %671 = vst [vmem:[%s1464_s2 + $0x48] sm:$0xff] %v888_v23  ;;  %703 = vst [vmem:[%s1464_s2 + $0x148] sm:$0xff] %v936_v24  ;;  %v383_v25 = vpop.f32.mrb[9].mxu0  ;;  %v543_v26 = vpop.f32.mrb[9].mxu1 }
  0xf3   :  { %670 = vst [vmem:[%s1464_s2 + $0x40] sm:$0xff] %v383_v25  ;;  %702 = vst [vmem:[%s1464_s2 + $0x140] sm:$0xff] %v543_v26 }
  0xf5   :  { %v891_v27 = vpop.f32.mrb[10].mxu0  ;;  %v939_v28 = vpop.f32.mrb[10].mxu1 }
  0xf6   :  { %673 = vst [vmem:[%s1464_s2 + $0x58] sm:$0xff] %v891_v27  ;;  %705 = vst [vmem:[%s1464_s2 + $0x158] sm:$0xff] %v939_v28  ;;  %v393_v29 = vpop.f32.mrb[11].mxu0  ;;  %v553_v30 = vpop.f32.mrb[11].mxu1 }
  0xf7   :  { %672 = vst [vmem:[%s1464_s2 + $0x50] sm:$0xff] %v393_v29  ;;  %704 = vst [vmem:[%s1464_s2 + $0x150] sm:$0xff] %v553_v30 }
  0xf9   :  { %v894_v31 = vpop.f32.mrb[12].mxu0  ;;  %v942_v32 = vpop.f32.mrb[12].mxu1 }
  0xfa   :  { %675 = vst [vmem:[%s1464_s2 + $0x68] sm:$0xff] %v894_v31  ;;  %707 = vst [vmem:[%s1464_s2 + $0x168] sm:$0xff] %v942_v32  ;;  %v403_v33 = vpop.f32.mrb[13].mxu0  ;;  %v563_v34 = vpop.f32.mrb[13].mxu1 }
  0xfb   :  { %674 = vst [vmem:[%s1464_s2 + $0x60] sm:$0xff] %v403_v33  ;;  %706 = vst [vmem:[%s1464_s2 + $0x160] sm:$0xff] %v563_v34 }
  0xfd   :  { %v897_v35 = vpop.f32.mrb[14].mxu0  ;;  %v945_v36 = vpop.f32.mrb[14].mxu1 }
  0xfe   :  { %677 = vst [vmem:[%s1464_s2 + $0x78] sm:$0xff] %v897_v35  ;;  %709 = vst [vmem:[%s1464_s2 + $0x178] sm:$0xff] %v945_v36  ;;  %v413_v37 = vpop.f32.mrb[15].mxu0  ;;  %v573_v38 = vpop.f32.mrb[15].mxu1 }
  0xff   :  { %676 = vst [vmem:[%s1464_s2 + $0x70] sm:$0xff] %v413_v37  ;;  %708 = vst [vmem:[%s1464_s2 + $0x170] sm:$0xff] %v573_v38 }
 0x101   :  { %v900_v39 = vpop.f32.mrb[16].mxu0  ;;  %v948_v40 = vpop.f32.mrb[16].mxu1 }
 0x102   :  { %679 = vst [vmem:[%s1464_s2 + $0x88] sm:$0xff] %v900_v39  ;;  %711 = vst [vmem:[%s1464_s2 + $0x188] sm:$0xff] %v948_v40  ;;  %v423_v41 = vpop.f32.mrb[17].mxu0  ;;  %v583_v42 = vpop.f32.mrb[17].mxu1 }
 0x103   :  { %678 = vst [vmem:[%s1464_s2 + $0x80] sm:$0xff] %v423_v41  ;;  %710 = vst [vmem:[%s1464_s2 + $0x180] sm:$0xff] %v583_v42 }
 0x105   :  { %v903_v43 = vpop.f32.mrb[18].mxu0  ;;  %v951_v44 = vpop.f32.mrb[18].mxu1 }
 0x106   :  { %681 = vst [vmem:[%s1464_s2 + $0x98] sm:$0xff] %v903_v43  ;;  %713 = vst [vmem:[%s1464_s2 + $0x198] sm:$0xff] %v951_v44  ;;  %v433_v45 = vpop.f32.mrb[19].mxu0  ;;  %v593_v46 = vpop.f32.mrb[19].mxu1 }
 0x107   :  { %680 = vst [vmem:[%s1464_s2 + $0x90] sm:$0xff] %v433_v45  ;;  %712 = vst [vmem:[%s1464_s2 + $0x190] sm:$0xff] %v593_v46 }
 0x109   :  { %v906_v47 = vpop.f32.mrb[20].mxu0  ;;  %v954_v48 = vpop.f32.mrb[20].mxu1 }
 0x10a   :  { %683 = vst [vmem:[%s1464_s2 + $0xa8] sm:$0xff] %v906_v47  ;;  %715 = vst [vmem:[%s1464_s2 + $0x1a8] sm:$0xff] %v954_v48  ;;  %v443_v49 = vpop.f32.mrb[21].mxu0  ;;  %v603_v50 = vpop.f32.mrb[21].mxu1 }
 0x10b   :  { %682 = vst [vmem:[%s1464_s2 + $0xa0] sm:$0xff] %v443_v49  ;;  %714 = vst [vmem:[%s1464_s2 + $0x1a0] sm:$0xff] %v603_v50 }
 0x10d   :  { %v909_v51 = vpop.f32.mrb[22].mxu0  ;;  %v957_v52 = vpop.f32.mrb[22].mxu1 }
 0x10e   :  { %685 = vst [vmem:[%s1464_s2 + $0xb8] sm:$0xff] %v909_v51  ;;  %717 = vst [vmem:[%s1464_s2 + $0x1b8] sm:$0xff] %v957_v52  ;;  %v453_v53 = vpop.f32.mrb[23].mxu0  ;;  %v613_v54 = vpop.f32.mrb[23].mxu1 }
 0x10f   :  { %684 = vst [vmem:[%s1464_s2 + $0xb0] sm:$0xff] %v453_v53  ;;  %716 = vst [vmem:[%s1464_s2 + $0x1b0] sm:$0xff] %v613_v54 }
 0x111   :  { %v912_v55 = vpop.f32.mrb[24].mxu0  ;;  %v960_v56 = vpop.f32.mrb[24].mxu1 }
 0x112   :  { %687 = vst [vmem:[%s1464_s2 + $0xc8] sm:$0xff] %v912_v55  ;;  %719 = vst [vmem:[%s1464_s2 + $0x1c8] sm:$0xff] %v960_v56  ;;  %v463_v57 = vpop.f32.mrb[25].mxu0  ;;  %v623_v58 = vpop.f32.mrb[25].mxu1 }
 0x113   :  { %686 = vst [vmem:[%s1464_s2 + $0xc0] sm:$0xff] %v463_v57  ;;  %718 = vst [vmem:[%s1464_s2 + $0x1c0] sm:$0xff] %v623_v58 }
 0x115   :  { %v915_v59 = vpop.f32.mrb[26].mxu0  ;;  %v963_v60 = vpop.f32.mrb[26].mxu1 }
 0x116   :  { %689 = vst [vmem:[%s1464_s2 + $0xd8] sm:$0xff] %v915_v59  ;;  %721 = vst [vmem:[%s1464_s2 + $0x1d8] sm:$0xff] %v963_v60  ;;  %v473_v61 = vpop.f32.mrb[27].mxu0  ;;  %v633_v62 = vpop.f32.mrb[27].mxu1 }
 0x117   :  { %688 = vst [vmem:[%s1464_s2 + $0xd0] sm:$0xff] %v473_v61  ;;  %720 = vst [vmem:[%s1464_s2 + $0x1d0] sm:$0xff] %v633_v62 }
 0x119   :  { %v918_v63 = vpop.f32.mrb[28].mxu0  ;;  %v966_v0 = vpop.f32.mrb[28].mxu1 }
 0x11a   :  { %691 = vst [vmem:[%s1464_s2 + $0xe8] sm:$0xff] %v918_v63  ;;  %723 = vst [vmem:[%s1464_s2 + $0x1e8] sm:$0xff] %v966_v0  ;;  %v483_v1 = vpop.f32.mrb[29].mxu0  ;;  %v643_v2 = vpop.f32.mrb[29].mxu1 }
 0x11b   :  { %690 = vst [vmem:[%s1464_s2 + $0xe0] sm:$0xff] %v483_v1  ;;  %722 = vst [vmem:[%s1464_s2 + $0x1e0] sm:$0xff] %v643_v2 }
 0x11d   :  { %v921_v3 = vpop.f32.mrb[30].mxu0  ;;  %v969_v4 = vpop.f32.mrb[30].mxu1 }
 0x11e   :  { %693 = vst [vmem:[%s1464_s2 + $0xf8] sm:$0xff] %v921_v3  ;;  %725 = vst [vmem:[%s1464_s2 + $0x1f8] sm:$0xff] %v969_v4  ;;  %v493_v5 = vpop.f32.mrb[31].mxu0  ;;  %v653_v6 = vpop.f32.mrb[31].mxu1 }
 0x11f   :  { %692 = vst [vmem:[%s1464_s2 + $0xf0] sm:$0xff] %v493_v5  ;;  %724 = vst [vmem:[%s1464_s2 + $0x1f0] sm:$0xff] %v653_v6 }

// kernel: spiking_conv_layer.3
= control target key start
LH: loop header
LB: loop body
LE: loop exit
PB: predicated region body
PF: predicated region fallthrough
CT: control target
= control target key end

     0   :  { %v4298_v5 = vmov 0.0   ;;  %s5669_s0 = inlined_call_operand.<no memory space> [shape: f32[1], index: 0, kind: input, shape index: {}]   ;;  %s5670_s1 = inlined_call_operand.vmem [shape: f32[16,32,128], index: 1, kind: input, shape index: {}]   ;;  %s5671_s2 = inlined_call_operand.vmem [shape: f32[128,128], index: 2, kind: input, shape index: {}]   ;;  %s5672_s3 = inlined_call_operand.vmem [shape: f32[1,128], index: 3, kind: input, shape index: {}]   ;;  %s5673_s4 = inlined_call_operand.vmem [shape: f32[1,128], index: 4, kind: input, shape index: {}]   ;;  %s5674_s5 = inlined_call_operand.vmem [shape: f32[16,32,128], index: 5, kind: output, shape index: {0}]   ;;  %s5675_s6 = inlined_call_operand.hbm [shape: f32[1,1], index: 6, kind: output, shape index: {1}]  }
   0x1   :  { %v40_v0 = vld [vmem:[%s5671_s2] sm:$0xff]  ;;  %v41_v1 = vld [vmem:[%s5671_s2 + $0x8] sm:$0xff]  ;;  %v42_v2 = vld [vmem:[%s5671_s2 + $0x10] sm:$0xff]  ;;  %3179 = vmatprep.mubr.f32.mxu0 %v4298_v5 }
   0x2   :  { %v4345_v3 = vpack.c.bf16 %v41_v1, %v40_v0  ;;  %v43_v4 = vld [vmem:[%s5671_s2 + $0x18] sm:$0xff]  ;;  %v44_v7 = vld [vmem:[%s5671_s2 + $0x20] sm:$0xff]  ;;  %v45_v8 = vld [vmem:[%s5671_s2 + $0x28] sm:$0xff] }
   0x3   :  { %v4351_v6 = vpack.c.bf16 %v43_v4, %v42_v2  ;;  %v4364_v9 = vpack.c.bf16 %v45_v8, %v44_v7 }
   0x4   :  { %3756 = vmatprep.subr.bf16.mxu0 %v4345_v3  ;;  %3788 = vmatprep.subr.bf16.mxu1 %v4345_v3 }
   0x5   :  { %3758 = vmatpush3.bf16.msra.mxu0 %v4345_v3  ;;  %3790 = vmatpush3.bf16.msra.mxu1 %v4345_v3 }
   0x6   :  { %3760 = vmatprep.subr.bf16.mxu0 %v4351_v6  ;;  %3792 = vmatprep.subr.bf16.mxu1 %v4351_v6 }
   0x7   :  { %13 = vsyncpa [#allocation6], 0  ;;  %v46_v10 = vld [vmem:[%s5671_s2 + $0x30] sm:$0xff]  ;;  %v47_v11 = vld [vmem:[%s5671_s2 + $0x38] sm:$0xff]  ;;  %s39_s30 = ssub.f32 1.0, %s5669_s0  ;;  %v4468_v29 = vstv %s5669_s0  ;;  %v4299_v61 = vmov 1.0  }
   0x8   :  { %v4376_v12 = vpack.c.bf16 %v47_v11, %v46_v10  ;;  %v48_v13 = vld [vmem:[%s5671_s2 + $0x40] sm:$0xff]  ;;  %v49_v14 = vld [vmem:[%s5671_s2 + $0x48] sm:$0xff]  ;;  %v50_v16 = vld [vmem:[%s5671_s2 + $0x50] sm:$0xff]  ;;  %s4300_s27 = smov [#allocation5]  }
   0x9   :  { %3762 = vmatpush3.bf16.msra.mxu0 %v4351_v6  ;;  %3794 = vmatpush3.bf16.msra.mxu1 %v4351_v6  ;;  %v4388_v15 = vpack.c.bf16 %v49_v14, %v48_v13  ;;  %v51_v17 = vld [vmem:[%s5671_s2 + $0x58] sm:$0xff]  ;;  %v52_v19 = vld [vmem:[%s5671_s2 + $0x60] sm:$0xff]  ;;  %v53_v20 = vld [vmem:[%s5671_s2 + $0x68] sm:$0xff]  ;;  %v4460_v26 = vstv %s39_s30  ;;  %s2571_s28 = sshll.u32 %s4300_s27, 4  ;;  %s2572_s28 = int_to_ptr.vmem [resolvable:$true] %s2571_s28 }
   0xa   :  { %3764 = vmatprep.subr.bf16.mxu0 %v4364_v9  ;;  %3796 = vmatprep.subr.bf16.mxu1 %v4364_v9  ;;  %v4400_v18 = vpack.c.bf16 %v51_v17, %v50_v16  ;;  %v4412_v21 = vpack.c.bf16 %v53_v20, %v52_v19  ;;  %v54_v22 = vld [vmem:[%s5671_s2 + $0x70] sm:$0xff]  ;;  %v55_v23 = vld [vmem:[%s5671_s2 + $0x78] sm:$0xff]  ;;  %v173_v25 = vld [vmem:[%s5670_s1 + $0x8] sm:$0xff]  ;;  %s4278_s29 = scalar_lea.vmem %s2572_s28, 32  ;;  %p4279_p1 = scmp.lt.s32.totalorder %s2572_s28, %s2572_s28 }
   0xb   :  { %v4424_v24 = vpack.c.bf16 %v55_v23, %v54_v22  ;;  %v172_v27 = vld [vmem:[%s5670_s1] sm:$0xff]  ;;  %v178_v31 = vmul.f32 %v4460_v26, %v173_v25  ;;  %v175_v35 = vld [vmem:[%s5670_s1 + $0x18] sm:$0xff]  ;;  %v174_v37 = vld [vmem:[%s5670_s1 + $0x10] sm:$0xff] }
   0xc   :  { %v177_v34 = vmul.f32 %v4460_v26, %v172_v27  ;;  %v4483_v40 = vld [vmem:[%s5672_s3] ss:$0 sm:$0xff]  ;;  %v180_v43 = vmul.f32 %v4460_v26, %v175_v35  ;;  %v179_v47 = vmul.f32 %v4460_v26, %v174_v37  ;;  %v2588_v8 = vld [vmem:[%s5670_s1 + $0x28] sm:$0xff]  ;;  %v2590_v20 = vld [vmem:[%s5670_s1 + $0x38] sm:$0xff] }
   0xd   :  { %3766 = vmatpush3.bf16.msra.mxu0 %v4364_v9  ;;  %3798 = vmatpush3.bf16.msra.mxu1 %v4364_v9  ;;  %v4494_v48 = vld [vmem:[%s5673_s4] ss:$0 sm:$0xff]  ;;  %v324_v14 = vmul.f32 %v2588_v8, %v4460_v26  ;;  %v2589_v23 = vld [vmem:[%s5670_s1 + $0x30] sm:$0xff] }
   0xe   :  { %3768 = vmatprep.subr.bf16.mxu0 %v4376_v12  ;;  %3800 = vmatprep.subr.bf16.mxu1 %v4376_v12  ;;  %v2587_v10 = vld [vmem:[%s5670_s1 + $0x20] sm:$0xff]  ;;  %v325_v35 = vmul.f32 %v2589_v23, %v4460_v26  ;;  %v2601_v8 = vld [vmem:[%s5670_s1 + $0x50] sm:$0xff] }
   0xf   :  { %v323_v19 = vmul.f32 %v2587_v10, %v4460_v26 }
  0x11   :  { %3770 = vmatpush3.bf16.msra.mxu0 %v4376_v12  ;;  %3802 = vmatpush3.bf16.msra.mxu1 %v4376_v12 }
  0x12   :  { %3772 = vmatprep.subr.bf16.mxu0 %v4388_v15  ;;  %3804 = vmatprep.subr.bf16.mxu1 %v4388_v15 }
  0x15   :  { %3774 = vmatpush3.bf16.msra.mxu0 %v4388_v15  ;;  %3806 = vmatpush3.bf16.msra.mxu1 %v4388_v15 }
  0x16   :  { %3776 = vmatprep.subr.bf16.mxu0 %v4400_v18  ;;  %3808 = vmatprep.subr.bf16.mxu1 %v4400_v18 }
  0x19   :  { %3778 = vmatpush3.bf16.msra.mxu0 %v4400_v18  ;;  %3810 = vmatpush3.bf16.msra.mxu1 %v4400_v18 }
  0x1a   :  { %3780 = vmatprep.subr.bf16.mxu0 %v4412_v21  ;;  %3812 = vmatprep.subr.bf16.mxu1 %v4412_v21 }
  0x1d   :  { %3782 = vmatpush3.bf16.msra.mxu0 %v4412_v21  ;;  %3814 = vmatpush3.bf16.msra.mxu1 %v4412_v21 }
  0x1e   :  { %3784 = vmatprep.subr.bf16.mxu0 %v4424_v24  ;;  %3816 = vmatprep.subr.bf16.mxu1 %v4424_v24 }
  0x21   :  { %3786 = vmatpush3.bf16.msra.mxu0 %v4424_v24  ;;  %3818 = vmatpush3.bf16.msra.mxu1 %v4424_v24 }
  0x22   :  { %3820 = vmatprep.subr.bf16.mxu0 %v4345_v3  ;;  %3852 = vmatprep.subr.bf16.mxu1 %v4345_v3 }
  0x24   :  { %3180 = vmatmul.mubr.f32.vlgmr.msra.gmra.mrb[0].mxu0 %v4298_v5 }
  0x25   :  { %3182 = vmatprep.mubr.f32.mxu0 %v4298_v5  ;;  %3822 = vmatpush3.bf16.msra.mxu0 %v4345_v3 }
  0x26   :  { %3824 = vmatprep.subr.bf16.mxu0 %v4351_v6 }
  0x28   :  { %3183 = vmatmul.mubr.f32.gmra.mrb[2].mxu0 %v4298_v5 }
  0x29   :  { %3826 = vmatpush3.bf16.msra.mxu0 %v4351_v6 }
  0x2a   :  { %3828 = vmatprep.subr.bf16.mxu0 %v4364_v9 }
  0x2d   :  { %3830 = vmatpush3.bf16.msra.mxu0 %v4364_v9 }
  0x2e   :  { %3832 = vmatprep.subr.bf16.mxu0 %v4376_v12 }
  0x31   :  { %3834 = vmatpush3.bf16.msra.mxu0 %v4376_v12 }
  0x32   :  { %3836 = vmatprep.subr.bf16.mxu0 %v4388_v15 }
  0x35   :  { %3838 = vmatpush3.bf16.msra.mxu0 %v4388_v15 }
  0x36   :  { %3840 = vmatprep.subr.bf16.mxu0 %v4400_v18 }
  0x39   :  { %3842 = vmatpush3.bf16.msra.mxu0 %v4400_v18 }
  0x3a   :  { %3844 = vmatprep.subr.bf16.mxu0 %v4412_v21 }
  0x3d   :  { %3846 = vmatpush3.bf16.msra.mxu0 %v4412_v21 }
  0x3e   :  { %3848 = vmatprep.subr.bf16.mxu0 %v4424_v24 }
  0x41   :  { %3850 = vmatpush3.bf16.msra.mxu0 %v4424_v24 }
  0x42   :  { %3884 = vmatprep.subr.bf16.mxu0 %v4345_v3 }
  0xf7   :  { %v3181_v28 = vpop.f32.mrb[0].mxu0 }
  0xf8   :  { %v164_v30 = vsub.f32 0.0, %v3181_v28  ;;  %v140_v32 = vpop.f32.mrb[1].mxu0 }
  0xf9   :  { %v163_v33 = vsub.f32 0.0, %v140_v32 }
  0xfa   :  { %v169_v36 = vmul.f32 %v4468_v29, %v164_v30 }
  0xfb   :  { %v168_v38 = vmul.f32 %v4468_v29, %v163_v33  ;;  %v3184_v39 = vpop.f32.mrb[2].mxu0 }
  0xfc   :  { %v4485_v41 = vadd.f32 %v178_v31, %v169_v36  ;;  %v166_v42 = vsub.f32 0.0, %v3184_v39  ;;  %v150_v44 = vpop.f32.mrb[3].mxu0  ;;  %v326_v31 = vmul.f32 %v2590_v20, %v4460_v26 }
  0xfd   :  { %v4488_v45 = vadd.f32 %v177_v34, %v168_v38  ;;  %v165_v46 = vsub.f32 0.0, %v150_v44 }
  0xfe   :  { %v171_v49 = vmul.f32 %v4468_v29, %v166_v42  ;;  %v186_v50 = vmul.f32 %v4483_v40, %v4485_v41 }
  0xff   :  { %v170_v51 = vmul.f32 %v4468_v29, %v165_v46  ;;  %v185_v52 = vmul.f32 %v4483_v40, %v4488_v45 }
 0x100   :  { %v4502_v53 = vadd.f32 %v180_v43, %v171_v49  ;;  %v190_v54 = vsub.f32 %v186_v50, %v4494_v48 }
 0x101   :  { %v4505_v55 = vadd.f32 %v179_v47, %v170_v51  ;;  %v189_v56 = vsub.f32 %v185_v52, %v4494_v48 }
 0x102   :  { %vm194_vm0 = vcmp.gt.f32.partialorder %v190_v54, 0.0  ;;  %v188_v57 = vmul.f32 %v4483_v40, %v4502_v53 }
 0x103   :  { %vm193_vm1 = vcmp.gt.f32.partialorder %v189_v56, 0.0  ;;  %v2584_v58 = vsel %vm194_vm0, 1.0, %v4298_v5  ;;  %v187_v59 = vmul.f32 %v4483_v40, %v4505_v55 }
 0x104   :  { %v2583_v60 = vsel %vm193_vm1, 1.0, %v4298_v5  ;;  %3217 = vmatprep.mubr.msk.f32.mxu1 %vm193_vm1, %v4299_v61  ;;  %214 = vst [vmem:[%s5674_s5 + $0x8] sm:$0xff] %v2584_v58  ;;  %v192_v62 = vsub.f32 %v188_v57, %v4494_v48 }
 0x105   :  { %213 = vst [vmem:[%s5674_s5] sm:$0xff] %v2583_v60  ;;  %3218 = vmatmul.mubr.msk.f32.vlgmr.msra.gmra.mrb[0].mxu1 %vm194_vm0, %v4299_v61  ;;  %v2487_v63 = vadd.f32 %v2584_v58, %v2583_v60  ;;  %v191_v0 = vsub.f32 %v187_v59, %v4494_v48  ;;  %v2600_v58 = vld [vmem:[%s5670_s1 + $0x48] sm:$0xff]  ;;  %v2599_v59 = vld [vmem:[%s5670_s1 + $0x40] sm:$0xff] }
 0x106   :  { %vm196_vm2 = vcmp.gt.f32.partialorder %v192_v62, 0.0  ;;  %3854 = vmatpush3.bf16.msra.mxu1 %v4345_v3 }
 0x107   :  { %vm195_vm3 = vcmp.gt.f32.partialorder %v191_v0, 0.0  ;;  %v2586_v1 = vsel %vm196_vm2, 1.0, %v4298_v5  ;;  %3856 = vmatprep.subr.bf16.mxu1 %v4351_v6 }
 0x108   :  { %v2585_v2 = vsel %vm195_vm3, 1.0, %v4298_v5  ;;  %3220 = vmatprep.mubr.msk.f32.mxu1 %vm195_vm3, %v4299_v61  ;;  %216 = vst [vmem:[%s5674_s5 + $0x18] sm:$0xff] %v2586_v1 }
 0x109   :  { %215 = vst [vmem:[%s5674_s5 + $0x10] sm:$0xff] %v2585_v2  ;;  %v2488_v4 = vadd.f32 %v2585_v2, %v2487_v63  ;;  %3221 = vmatmul.mubr.msk.f32.gmra.mrb[2].mxu1 %vm196_vm2, %v4299_v61  ;;  %v471_v63 = vmul.f32 %v2600_v58, %v4460_v26  ;;  %v470_v2 = vmul.f32 %v2599_v59, %v4460_v26  ;;  %v2613_v58 = vld [vmem:[%s5670_s1 + $0x70] sm:$0xff] }
 0x10a   :  { %3858 = vmatpush3.bf16.msra.mxu1 %v4351_v6 }
 0x10b   :  { %v2489_v7 = vadd.f32 %v2586_v1, %v2488_v4  ;;  %3860 = vmatprep.subr.bf16.mxu1 %v4364_v9  ;;  %v2602_v4 = vld [vmem:[%s5670_s1 + $0x58] sm:$0xff] }
 0x10e   :  { %3862 = vmatpush3.bf16.msra.mxu1 %v4364_v9 }
 0x10f   :  { %3864 = vmatprep.subr.bf16.mxu1 %v4376_v12 }
 0x112   :  { %3866 = vmatpush3.bf16.msra.mxu1 %v4376_v12 }
 0x113   :  { %3868 = vmatprep.subr.bf16.mxu1 %v4388_v15 }
 0x116   :  { %3870 = vmatpush3.bf16.msra.mxu1 %v4388_v15 }
 0x117   :  { %3872 = vmatprep.subr.bf16.mxu1 %v4400_v18 }
 0x11a   :  { %3874 = vmatpush3.bf16.msra.mxu1 %v4400_v18 }
 0x11b   :  { %3876 = vmatprep.subr.bf16.mxu1 %v4412_v21 }
 0x11e   :  { %3878 = vmatpush3.bf16.msra.mxu1 %v4412_v21 }
 0x11f   :  { %3880 = vmatprep.subr.bf16.mxu1 %v4424_v24 }
 0x122   :  { %3882 = vmatpush3.bf16.msra.mxu1 %v4424_v24 }
 0x123   :  { %3916 = vmatprep.subr.bf16.mxu1 %v4345_v3 }
 0x1d8   :  { %v3219_v11 = vpop.f32.mrb[0].mxu1 }
 0x1d9   :  { %v311_v13 = vsub.f32 %v4485_v41, %v3219_v11  ;;  %v287_v16 = vpop.f32.mrb[1].mxu1 }
 0x1da   :  { %v310_v17 = vsub.f32 %v4488_v45, %v287_v16  ;;  %v473_v16 = vmul.f32 %v2602_v4, %v4460_v26 }
 0x1db   :  { %v315_v22 = vmul.f32 %v311_v13, %v4468_v29 }
 0x1dc   :  { %v314_v25 = vmul.f32 %v310_v17, %v4468_v29  ;;  %v3222_v27 = vpop.f32.mrb[2].mxu1 }
 0x1dd   :  { %v4568_v28 = vadd.f32 %v324_v14, %v315_v22  ;;  %v313_v30 = vsub.f32 %v4502_v53, %v3222_v27  ;;  %v297_v32 = vpop.f32.mrb[3].mxu1  ;;  %v472_v22 = vmul.f32 %v2601_v8, %v4460_v26 }
 0x1de   :  { %v4572_v33 = vadd.f32 %v323_v19, %v314_v25  ;;  %v312_v34 = vsub.f32 %v4505_v55, %v297_v32 }
 0x1df   :  { %v332_v36 = vmul.f32 %v4483_v40, %v4568_v28  ;;  %v317_v37 = vmul.f32 %v313_v30, %v4468_v29 }
 0x1e0   :  { %v316_v38 = vmul.f32 %v312_v34, %v4468_v29  ;;  %v331_v39 = vmul.f32 %v4483_v40, %v4572_v33 }
 0x1e1   :  { %v336_v41 = vsub.f32 %v332_v36, %v4494_v48  ;;  %v4583_v42 = vadd.f32 %v326_v31, %v317_v37 }
 0x1e2   :  { %v4585_v43 = vadd.f32 %v325_v35, %v316_v38  ;;  %v335_v44 = vsub.f32 %v331_v39, %v4494_v48 }
 0x1e3   :  { %vm340_vm4 = vcmp.gt.f32.partialorder %v336_v41, 0.0  ;;  %v334_v45 = vmul.f32 %v4483_v40, %v4583_v42 }
 0x1e4   :  { %vm339_vm5 = vcmp.gt.f32.partialorder %v335_v44, 0.0  ;;  %v2592_v46 = vsel %vm340_vm4, 1.0, %v4298_v5  ;;  %v333_v47 = vmul.f32 %v4483_v40, %v4585_v43 }
 0x1e5   :  { %v2591_v49 = vsel %vm339_vm5, 1.0, %v4298_v5  ;;  %3255 = vmatprep.mubr.msk.f32.mxu0 %vm339_vm5, %v4299_v61  ;;  %2596 = vst [vmem:[%s5674_s5 + $0x28] sm:$0xff] %v2592_v46  ;;  %v338_v50 = vsub.f32 %v334_v45, %v4494_v48 }
 0x1e6   :  { %2595 = vst [vmem:[%s5674_s5 + $0x20] sm:$0xff] %v2591_v49  ;;  %v2490_v51 = vadd.f32 %v2591_v49, %v2489_v7  ;;  %3256 = vmatmul.mubr.msk.f32.vlgmr.msra.gmra.mrb[4].mxu0 %vm340_vm4, %v4299_v61  ;;  %v337_v52 = vsub.f32 %v333_v47, %v4494_v48  ;;  %v2612_v47 = vld [vmem:[%s5670_s1 + $0x68] sm:$0xff]  ;;  %v2611_v49 = vld [vmem:[%s5670_s1 + $0x60] sm:$0xff] }
 0x1e7   :  { %vm342_vm6 = vcmp.gt.f32.partialorder %v338_v50, 0.0  ;;  %3886 = vmatpush3.bf16.msra.mxu0 %v4345_v3 }
 0x1e8   :  { %v2491_v53 = vadd.f32 %v2592_v46, %v2490_v51  ;;  %vm341_vm7 = vcmp.gt.f32.partialorder %v337_v52, 0.0  ;;  %v2594_v54 = vsel %vm342_vm6, 1.0, %v4298_v5  ;;  %3888 = vmatprep.subr.bf16.mxu0 %v4351_v6  ;;  %v618_v52 = vmul.f32 %v2612_v47, %v4460_v26  ;;  %v2625_v47 = vld [vmem:[%s5670_s1 + $0x90] sm:$0xff] }
 0x1e9   :  { %v2593_v55 = vsel %vm341_vm7, 1.0, %v4298_v5  ;;  %3258 = vmatprep.mubr.msk.f32.mxu0 %vm341_vm7, %v4299_v61  ;;  %2598 = vst [vmem:[%s5674_s5 + $0x38] sm:$0xff] %v2594_v54 }
 0x1ea   :  { %2597 = vst [vmem:[%s5674_s5 + $0x30] sm:$0xff] %v2593_v55  ;;  %v2492_v56 = vadd.f32 %v2593_v55, %v2491_v53  ;;  %3259 = vmatmul.mubr.msk.f32.gmra.mrb[6].mxu0 %vm342_vm6, %v4299_v61  ;;  %v617_v55 = vmul.f32 %v2611_v49, %v4460_v26 }
 0x1eb   :  { %3890 = vmatpush3.bf16.msra.mxu0 %v4351_v6 }
 0x1ec   :  { %v2493_v57 = vadd.f32 %v2594_v54, %v2492_v56  ;;  %3892 = vmatprep.subr.bf16.mxu0 %v4364_v9  ;;  %v2614_v56 = vld [vmem:[%s5670_s1 + $0x78] sm:$0xff] }
 0x1ef   :  { %3894 = vmatpush3.bf16.msra.mxu0 %v4364_v9 }
 0x1f0   :  { %3896 = vmatprep.subr.bf16.mxu0 %v4376_v12 }
 0x1f3   :  { %3898 = vmatpush3.bf16.msra.mxu0 %v4376_v12 }
 0x1f4   :  { %3900 = vmatprep.subr.bf16.mxu0 %v4388_v15 }
 0x1f7   :  { %3902 = vmatpush3.bf16.msra.mxu0 %v4388_v15 }
 0x1f8   :  { %3904 = vmatprep.subr.bf16.mxu0 %v4400_v18 }
 0x1fb   :  { %3906 = vmatpush3.bf16.msra.mxu0 %v4400_v18 }
 0x1fc   :  { %3908 = vmatprep.subr.bf16.mxu0 %v4412_v21 }
 0x1ff   :  { %3910 = vmatpush3.bf16.msra.mxu0 %v4412_v21 }
 0x200   :  { %3912 = vmatprep.subr.bf16.mxu0 %v4424_v24 }
 0x203   :  { %3914 = vmatpush3.bf16.msra.mxu0 %v4424_v24 }
 0x204   :  { %3948 = vmatprep.subr.bf16.mxu0 %v4345_v3 }
 0x2b9   :  { %v3257_v60 = vpop.f32.mrb[4].mxu0 }
 0x2ba   :  { %v458_v62 = vsub.f32 %v4568_v28, %v3257_v60  ;;  %v434_v0 = vpop.f32.mrb[5].mxu0 }
 0x2bb   :  { %v457_v1 = vsub.f32 %v4572_v33, %v434_v0  ;;  %v620_v0 = vmul.f32 %v2614_v56, %v4460_v26 }
 0x2bc   :  { %v462_v7 = vmul.f32 %v458_v62, %v4468_v29 }
 0x2bd   :  { %v461_v10 = vmul.f32 %v457_v1, %v4468_v29  ;;  %v3260_v11 = vpop.f32.mrb[6].mxu0 }
 0x2be   :  { %v4648_v13 = vadd.f32 %v471_v63, %v462_v7  ;;  %v460_v14 = vsub.f32 %v4583_v42, %v3260_v11  ;;  %v444_v17 = vpop.f32.mrb[7].mxu0  ;;  %v619_v7 = vmul.f32 %v2613_v58, %v4460_v26 }
 0x2bf   :  { %v4652_v19 = vadd.f32 %v470_v2, %v461_v10  ;;  %v459_v20 = vsub.f32 %v4585_v43, %v444_v17 }
 0x2c0   :  { %v479_v23 = vmul.f32 %v4483_v40, %v4648_v13  ;;  %v464_v25 = vmul.f32 %v460_v14, %v4468_v29 }
 0x2c1   :  { %v463_v27 = vmul.f32 %v459_v20, %v4468_v29  ;;  %v478_v28 = vmul.f32 %v4483_v40, %v4652_v19 }
 0x2c2   :  { %v483_v30 = vsub.f32 %v479_v23, %v4494_v48  ;;  %v4663_v31 = vadd.f32 %v473_v16, %v464_v25 }
 0x2c3   :  { %v4665_v32 = vadd.f32 %v472_v22, %v463_v27  ;;  %v482_v33 = vsub.f32 %v478_v28, %v4494_v48 }
 0x2c4   :  { %vm487_vm8 = vcmp.gt.f32.partialorder %v483_v30, 0.0  ;;  %v481_v34 = vmul.f32 %v4483_v40, %v4663_v31 }
 0x2c5   :  { %vm486_vm9 = vcmp.gt.f32.partialorder %v482_v33, 0.0  ;;  %v2604_v35 = vsel %vm487_vm8, 1.0, %v4298_v5  ;;  %v480_v36 = vmul.f32 %v4483_v40, %v4665_v32 }
 0x2c6   :  { %v2603_v37 = vsel %vm486_vm9, 1.0, %v4298_v5  ;;  %3293 = vmatprep.mubr.msk.f32.mxu1 %vm486_vm9, %v4299_v61  ;;  %2608 = vst [vmem:[%s5674_s5 + $0x48] sm:$0xff] %v2604_v35  ;;  %v485_v38 = vsub.f32 %v481_v34, %v4494_v48 }
 0x2c7   :  { %2607 = vst [vmem:[%s5674_s5 + $0x40] sm:$0xff] %v2603_v37  ;;  %v2494_v39 = vadd.f32 %v2603_v37, %v2493_v57  ;;  %3294 = vmatmul.mubr.msk.f32.vlgmr.msra.gmra.mrb[4].mxu1 %vm487_vm8, %v4299_v61  ;;  %v484_v41 = vsub.f32 %v480_v36, %v4494_v48  ;;  %v2624_v36 = vld [vmem:[%s5670_s1 + $0x88] sm:$0xff]  ;;  %v2623_v37 = vld [vmem:[%s5670_s1 + $0x80] sm:$0xff] }
 0x2c8   :  { %vm489_vm10 = vcmp.gt.f32.partialorder %v485_v38, 0.0  ;;  %3918 = vmatpush3.bf16.msra.mxu1 %v4345_v3 }
 0x2c9   :  { %vm488_vm11 = vcmp.gt.f32.partialorder %v484_v41, 0.0  ;;  %v2495_v42 = vadd.f32 %v2604_v35, %v2494_v39  ;;  %v2606_v43 = vsel %vm489_vm10, 1.0, %v4298_v5  ;;  %3920 = vmatprep.subr.bf16.mxu1 %v4351_v6  ;;  %v765_v41 = vmul.f32 %v2624_v36, %v4460_v26  ;;  %v2637_v36 = vld [vmem:[%s5670_s1 + $0xb0] sm:$0xff] }
 0x2ca   :  { %v2605_v44 = vsel %vm488_vm11, 1.0, %v4298_v5  ;;  %3296 = vmatprep.mubr.msk.f32.mxu1 %vm488_vm11, %v4299_v61  ;;  %2610 = vst [vmem:[%s5674_s5 + $0x58] sm:$0xff] %v2606_v43 }
 0x2cb   :  { %2609 = vst [vmem:[%s5674_s5 + $0x50] sm:$0xff] %v2605_v44  ;;  %v2496_v45 = vadd.f32 %v2605_v44, %v2495_v42  ;;  %3297 = vmatmul.mubr.msk.f32.gmra.mrb[6].mxu1 %vm489_vm10, %v4299_v61  ;;  %v764_v44 = vmul.f32 %v2623_v37, %v4460_v26 }
 0x2cc   :  { %3922 = vmatpush3.bf16.msra.mxu1 %v4351_v6 }
 0x2cd   :  { %v2497_v46 = vadd.f32 %v2606_v43, %v2496_v45  ;;  %3924 = vmatprep.subr.bf16.mxu1 %v4364_v9  ;;  %v2626_v45 = vld [vmem:[%s5670_s1 + $0x98] sm:$0xff] }
 0x2d0   :  { %3926 = vmatpush3.bf16.msra.mxu1 %v4364_v9 }
 0x2d1   :  { %3928 = vmatprep.subr.bf16.mxu1 %v4376_v12 }
 0x2d4   :  { %3930 = vmatpush3.bf16.msra.mxu1 %v4376_v12 }
 0x2d5   :  { %3932 = vmatprep.subr.bf16.mxu1 %v4388_v15 }
 0x2d8   :  { %3934 = vmatpush3.bf16.msra.mxu1 %v4388_v15 }
 0x2d9   :  { %3936 = vmatprep.subr.bf16.mxu1 %v4400_v18 }
 0x2dc   :  { %3938 = vmatpush3.bf16.msra.mxu1 %v4400_v18 }
 0x2dd   :  { %3940 = vmatprep.subr.bf16.mxu1 %v4412_v21 }
 0x2e0   :  { %3942 = vmatpush3.bf16.msra.mxu1 %v4412_v21 }
 0x2e1   :  { %3944 = vmatprep.subr.bf16.mxu1 %v4424_v24 }
 0x2e4   :  { %3946 = vmatpush3.bf16.msra.mxu1 %v4424_v24 }
 0x2e5   :  { %3980 = vmatprep.subr.bf16.mxu1 %v4345_v3 }
 0x39a   :  { %v3295_v50 = vpop.f32.mrb[4].mxu1 }
 0x39b   :  { %v605_v51 = vsub.f32 %v4648_v13, %v3295_v50  ;;  %v581_v53 = vpop.f32.mrb[5].mxu1 }
 0x39c   :  { %v604_v54 = vsub.f32 %v4652_v19, %v581_v53  ;;  %v767_v53 = vmul.f32 %v2626_v45, %v4460_v26 }
 0x39d   :  { %v609_v57 = vmul.f32 %v605_v51, %v4468_v29 }
 0x39e   :  { %v608_v59 = vmul.f32 %v604_v54, %v4468_v29  ;;  %v3298_v60 = vpop.f32.mrb[6].mxu1 }
 0x39f   :  { %v4728_v62 = vadd.f32 %v618_v52, %v609_v57  ;;  %v607_v63 = vsub.f32 %v4663_v31, %v3298_v60  ;;  %v591_v1 = vpop.f32.mrb[7].mxu1  ;;  %v766_v57 = vmul.f32 %v2625_v47, %v4460_v26 }
 0x3a0   :  { %v4732_v2 = vadd.f32 %v617_v55, %v608_v59  ;;  %v606_v4 = vsub.f32 %v4665_v32, %v591_v1 }
 0x3a1   :  { %v626_v8 = vmul.f32 %v4483_v40, %v4728_v62  ;;  %v611_v10 = vmul.f32 %v607_v63, %v4468_v29 }
 0x3a2   :  { %v610_v11 = vmul.f32 %v606_v4, %v4468_v29  ;;  %v625_v13 = vmul.f32 %v4483_v40, %v4732_v2 }
 0x3a3   :  { %v630_v14 = vsub.f32 %v626_v8, %v4494_v48  ;;  %v4743_v16 = vadd.f32 %v620_v0, %v611_v10 }
 0x3a4   :  { %v4745_v17 = vadd.f32 %v619_v7, %v610_v11  ;;  %v629_v19 = vsub.f32 %v625_v13, %v4494_v48 }
 0x3a5   :  { %vm634_vm12 = vcmp.gt.f32.partialorder %v630_v14, 0.0  ;;  %v628_v20 = vmul.f32 %v4483_v40, %v4743_v16 }
 0x3a6   :  { %vm633_vm13 = vcmp.gt.f32.partialorder %v629_v19, 0.0  ;;  %v2616_v22 = vsel %vm634_vm12, 1.0, %v4298_v5  ;;  %v627_v23 = vmul.f32 %v4483_v40, %v4745_v17 }
 0x3a7   :  { %v2615_v25 = vsel %vm633_vm13, 1.0, %v4298_v5  ;;  %3331 = vmatprep.mubr.msk.f32.mxu0 %vm633_vm13, %v4299_v61  ;;  %2620 = vst [vmem:[%s5674_s5 + $0x68] sm:$0xff] %v2616_v22  ;;  %v632_v27 = vsub.f32 %v628_v20, %v4494_v48 }
 0x3a8   :  { %2619 = vst [vmem:[%s5674_s5 + $0x60] sm:$0xff] %v2615_v25  ;;  %v2498_v28 = vadd.f32 %v2615_v25, %v2497_v46  ;;  %3332 = vmatmul.mubr.msk.f32.vlgmr.msra.gmra.mrb[8].mxu0 %vm634_vm12, %v4299_v61  ;;  %v631_v30 = vsub.f32 %v627_v23, %v4494_v48  ;;  %v2636_v23 = vld [vmem:[%s5670_s1 + $0xa8] sm:$0xff]  ;;  %v2635_v25 = vld [vmem:[%s5670_s1 + $0xa0] sm:$0xff] }
 0x3a9   :  { %vm636_vm14 = vcmp.gt.f32.partialorder %v632_v27, 0.0  ;;  %3950 = vmatpush3.bf16.msra.mxu0 %v4345_v3 }
 0x3aa   :  { %vm635_vm15 = vcmp.gt.f32.partialorder %v631_v30, 0.0  ;;  %v2499_v31 = vadd.f32 %v2616_v22, %v2498_v28  ;;  %v2618_v32 = vsel %vm636_vm14, 1.0, %v4298_v5  ;;  %3952 = vmatprep.subr.bf16.mxu0 %v4351_v6  ;;  %v912_v30 = vmul.f32 %v2636_v23, %v4460_v26  ;;  %v2649_v23 = vld [vmem:[%s5670_s1 + $0xd0] sm:$0xff] }
 0x3ab   :  { %v2617_v33 = vsel %vm635_vm15, 1.0, %v4298_v5  ;;  %3334 = vmatprep.mubr.msk.f32.mxu0 %vm635_vm15, %v4299_v61  ;;  %2622 = vst [vmem:[%s5674_s5 + $0x78] sm:$0xff] %v2618_v32 }
 0x3ac   :  { %2621 = vst [vmem:[%s5674_s5 + $0x70] sm:$0xff] %v2617_v33  ;;  %v2500_v34 = vadd.f32 %v2617_v33, %v2499_v31  ;;  %3335 = vmatmul.mubr.msk.f32.gmra.mrb[10].mxu0 %vm636_vm14, %v4299_v61  ;;  %v911_v33 = vmul.f32 %v2635_v25, %v4460_v26 }
 0x3ad   :  { %3954 = vmatpush3.bf16.msra.mxu0 %v4351_v6 }
 0x3ae   :  { %v2501_v35 = vadd.f32 %v2618_v32, %v2500_v34  ;;  %3956 = vmatprep.subr.bf16.mxu0 %v4364_v9  ;;  %v2638_v34 = vld [vmem:[%s5670_s1 + $0xb8] sm:$0xff] }
 0x3b1   :  { %3958 = vmatpush3.bf16.msra.mxu0 %v4364_v9 }
 0x3b2   :  { %3960 = vmatprep.subr.bf16.mxu0 %v4376_v12 }
 0x3b5   :  { %3962 = vmatpush3.bf16.msra.mxu0 %v4376_v12 }
 0x3b6   :  { %3964 = vmatprep.subr.bf16.mxu0 %v4388_v15 }
 0x3b9   :  { %3966 = vmatpush3.bf16.msra.mxu0 %v4388_v15 }
 0x3ba   :  { %3968 = vmatprep.subr.bf16.mxu0 %v4400_v18 }
 0x3bd   :  { %3970 = vmatpush3.bf16.msra.mxu0 %v4400_v18 }
 0x3be   :  { %3972 = vmatprep.subr.bf16.mxu0 %v4412_v21 }
 0x3c1   :  { %3974 = vmatpush3.bf16.msra.mxu0 %v4412_v21 }
 0x3c2   :  { %3976 = vmatprep.subr.bf16.mxu0 %v4424_v24 }
 0x3c5   :  { %3978 = vmatpush3.bf16.msra.mxu0 %v4424_v24 }
 0x3c6   :  { %4012 = vmatprep.subr.bf16.mxu0 %v4345_v3 }
 0x47b   :  { %v3333_v38 = vpop.f32.mrb[8].mxu0 }
 0x47c   :  { %v752_v39 = vsub.f32 %v4728_v62, %v3333_v38  ;;  %v728_v42 = vpop.f32.mrb[9].mxu0 }
 0x47d   :  { %v751_v43 = vsub.f32 %v4732_v2, %v728_v42  ;;  %v914_v42 = vmul.f32 %v2638_v34, %v4460_v26 }
 0x47e   :  { %v756_v46 = vmul.f32 %v752_v39, %v4468_v29 }
 0x47f   :  { %v755_v49 = vmul.f32 %v751_v43, %v4468_v29  ;;  %v3336_v50 = vpop.f32.mrb[10].mxu0 }
 0x480   :  { %v4808_v51 = vadd.f32 %v765_v41, %v756_v46  ;;  %v754_v52 = vsub.f32 %v4743_v16, %v3336_v50  ;;  %v738_v54 = vpop.f32.mrb[11].mxu0  ;;  %v913_v46 = vmul.f32 %v2637_v36, %v4460_v26 }
 0x481   :  { %v4812_v55 = vadd.f32 %v764_v44, %v755_v49  ;;  %v753_v56 = vsub.f32 %v4745_v17, %v738_v54 }
 0x482   :  { %v773_v58 = vmul.f32 %v4483_v40, %v4808_v51  ;;  %v758_v59 = vmul.f32 %v754_v52, %v4468_v29 }
 0x483   :  { %v757_v60 = vmul.f32 %v753_v56, %v4468_v29  ;;  %v772_v62 = vmul.f32 %v4483_v40, %v4812_v55 }
 0x484   :  { %v777_v63 = vsub.f32 %v773_v58, %v4494_v48  ;;  %v4823_v0 = vadd.f32 %v767_v53, %v758_v59 }
 0x485   :  { %v4825_v1 = vadd.f32 %v766_v57, %v757_v60  ;;  %v776_v2 = vsub.f32 %v772_v62, %v4494_v48 }
 0x486   :  { %vm781_vm0 = vcmp.gt.f32.partialorder %v777_v63, 0.0  ;;  %v775_v4 = vmul.f32 %v4483_v40, %v4823_v0 }
 0x487   :  { %vm780_vm1 = vcmp.gt.f32.partialorder %v776_v2, 0.0  ;;  %v2628_v7 = vsel %vm781_vm0, 1.0, %v4298_v5  ;;  %v774_v8 = vmul.f32 %v4483_v40, %v4825_v1 }
 0x488   :  { %v2627_v10 = vsel %vm780_vm1, 1.0, %v4298_v5  ;;  %3369 = vmatprep.mubr.msk.f32.mxu1 %vm780_vm1, %v4299_v61  ;;  %2632 = vst [vmem:[%s5674_s5 + $0x88] sm:$0xff] %v2628_v7  ;;  %v779_v11 = vsub.f32 %v775_v4, %v4494_v48 }
 0x489   :  { %2631 = vst [vmem:[%s5674_s5 + $0x80] sm:$0xff] %v2627_v10  ;;  %v2502_v13 = vadd.f32 %v2627_v10, %v2501_v35  ;;  %3370 = vmatmul.mubr.msk.f32.vlgmr.msra.gmra.mrb[8].mxu1 %vm781_vm0, %v4299_v61  ;;  %v778_v14 = vsub.f32 %v774_v8, %v4494_v48  ;;  %v2648_v8 = vld [vmem:[%s5670_s1 + $0xc8] sm:$0xff]  ;;  %v2647_v10 = vld [vmem:[%s5670_s1 + $0xc0] sm:$0xff] }
 0x48a   :  { %vm783_vm2 = vcmp.gt.f32.partialorder %v779_v11, 0.0  ;;  %3982 = vmatpush3.bf16.msra.mxu1 %v4345_v3 }
 0x48b   :  { %vm782_vm3 = vcmp.gt.f32.partialorder %v778_v14, 0.0  ;;  %v2503_v16 = vadd.f32 %v2628_v7, %v2502_v13  ;;  %v2630_v17 = vsel %vm783_vm2, 1.0, %v4298_v5  ;;  %3984 = vmatprep.subr.bf16.mxu1 %v4351_v6  ;;  %v1059_v14 = vmul.f32 %v2648_v8, %v4460_v26  ;;  %v2661_v8 = vld [vmem:[%s5670_s1 + $0xf0] sm:$0xff] }
 0x48c   :  { %v2629_v19 = vsel %vm782_vm3, 1.0, %v4298_v5  ;;  %3372 = vmatprep.mubr.msk.f32.mxu1 %vm782_vm3, %v4299_v61  ;;  %2634 = vst [vmem:[%s5674_s5 + $0x98] sm:$0xff] %v2630_v17 }
 0x48d   :  { %2633 = vst [vmem:[%s5674_s5 + $0x90] sm:$0xff] %v2629_v19  ;;  %v2504_v20 = vadd.f32 %v2629_v19, %v2503_v16  ;;  %3373 = vmatmul.mubr.msk.f32.gmra.mrb[10].mxu1 %vm783_vm2, %v4299_v61  ;;  %v1058_v19 = vmul.f32 %v2647_v10, %v4460_v26 }
 0x48e   :  { %3986 = vmatpush3.bf16.msra.mxu1 %v4351_v6 }
 0x48f   :  { %v2505_v22 = vadd.f32 %v2630_v17, %v2504_v20  ;;  %3988 = vmatprep.subr.bf16.mxu1 %v4364_v9  ;;  %v2650_v20 = vld [vmem:[%s5670_s1 + $0xd8] sm:$0xff] }
 0x492   :  { %3990 = vmatpush3.bf16.msra.mxu1 %v4364_v9 }
 0x493   :  { %3992 = vmatprep.subr.bf16.mxu1 %v4376_v12 }
 0x496   :  { %3994 = vmatpush3.bf16.msra.mxu1 %v4376_v12 }
 0x497   :  { %3996 = vmatprep.subr.bf16.mxu1 %v4388_v15 }
 0x49a   :  { %3998 = vmatpush3.bf16.msra.mxu1 %v4388_v15 }
 0x49b   :  { %4000 = vmatprep.subr.bf16.mxu1 %v4400_v18 }
 0x49e   :  { %4002 = vmatpush3.bf16.msra.mxu1 %v4400_v18 }
 0x49f   :  { %4004 = vmatprep.subr.bf16.mxu1 %v4412_v21 }
 0x4a2   :  { %4006 = vmatpush3.bf16.msra.mxu1 %v4412_v21 }
 0x4a3   :  { %4008 = vmatprep.subr.bf16.mxu1 %v4424_v24 }
 0x4a6   :  { %4010 = vmatpush3.bf16.msra.mxu1 %v4424_v24 }
 0x4a7   :  { %4044 = vmatprep.subr.bf16.mxu1 %v4345_v3 }
 0x55c   :  { %v3371_v27 = vpop.f32.mrb[8].mxu1 }
 0x55d   :  { %v899_v28 = vsub.f32 %v4808_v51, %v3371_v27  ;;  %v875_v31 = vpop.f32.mrb[9].mxu1 }
 0x55e   :  { %v898_v32 = vsub.f32 %v4812_v55, %v875_v31  ;;  %v1061_v31 = vmul.f32 %v2650_v20, %v4460_v26 }
 0x55f   :  { %v903_v35 = vmul.f32 %v899_v28, %v4468_v29 }
 0x560   :  { %v902_v37 = vmul.f32 %v898_v32, %v4468_v29  ;;  %v3374_v38 = vpop.f32.mrb[10].mxu1 }
 0x561   :  { %v4888_v39 = vadd.f32 %v912_v30, %v903_v35  ;;  %v901_v41 = vsub.f32 %v4823_v0, %v3374_v38  ;;  %v885_v43 = vpop.f32.mrb[11].mxu1  ;;  %v1060_v35 = vmul.f32 %v2649_v23, %v4460_v26 }
 0x562   :  { %v4892_v44 = vadd.f32 %v911_v33, %v902_v37  ;;  %v900_v45 = vsub.f32 %v4825_v1, %v885_v43 }
 0x563   :  { %v920_v47 = vmul.f32 %v4483_v40, %v4888_v39  ;;  %v905_v49 = vmul.f32 %v901_v41, %v4468_v29 }
 0x564   :  { %v904_v50 = vmul.f32 %v900_v45, %v4468_v29  ;;  %v919_v51 = vmul.f32 %v4483_v40, %v4892_v44 }
 0x565   :  { %v924_v52 = vsub.f32 %v920_v47, %v4494_v48  ;;  %v4903_v53 = vadd.f32 %v914_v42, %v905_v49 }
 0x566   :  { %v4905_v54 = vadd.f32 %v913_v46, %v904_v50  ;;  %v923_v55 = vsub.f32 %v919_v51, %v4494_v48 }
 0x567   :  { %vm928_vm4 = vcmp.gt.f32.partialorder %v924_v52, 0.0  ;;  %v922_v56 = vmul.f32 %v4483_v40, %v4903_v53 }
 0x568   :  { %vm927_vm5 = vcmp.gt.f32.partialorder %v923_v55, 0.0  ;;  %v2640_v57 = vsel %vm928_vm4, 1.0, %v4298_v5  ;;  %v921_v58 = vmul.f32 %v4483_v40, %v4905_v54 }
 0x569   :  { %v2639_v59 = vsel %vm927_vm5, 1.0, %v4298_v5  ;;  %3407 = vmatprep.mubr.msk.f32.mxu0 %vm927_vm5, %v4299_v61  ;;  %2644 = vst [vmem:[%s5674_s5 + $0xa8] sm:$0xff] %v2640_v57  ;;  %v926_v60 = vsub.f32 %v922_v56, %v4494_v48 }
 0x56a   :  { %2643 = vst [vmem:[%s5674_s5 + $0xa0] sm:$0xff] %v2639_v59  ;;  %v2506_v62 = vadd.f32 %v2639_v59, %v2505_v22  ;;  %3408 = vmatmul.mubr.msk.f32.vlgmr.msra.gmra.mrb[12].mxu0 %vm928_vm4, %v4299_v61  ;;  %v925_v63 = vsub.f32 %v921_v58, %v4494_v48  ;;  %v2660_v58 = vld [vmem:[%s5670_s1 + $0xe8] sm:$0xff]  ;;  %v2659_v59 = vld [vmem:[%s5670_s1 + $0xe0] sm:$0xff] }
 0x56b   :  { %vm930_vm6 = vcmp.gt.f32.partialorder %v926_v60, 0.0  ;;  %4014 = vmatpush3.bf16.msra.mxu0 %v4345_v3 }
 0x56c   :  { %vm929_vm7 = vcmp.gt.f32.partialorder %v925_v63, 0.0  ;;  %v2507_v0 = vadd.f32 %v2640_v57, %v2506_v62  ;;  %v2642_v1 = vsel %vm930_vm6, 1.0, %v4298_v5  ;;  %4016 = vmatprep.subr.bf16.mxu0 %v4351_v6  ;;  %v1206_v63 = vmul.f32 %v2660_v58, %v4460_v26 }
 0x56d   :  { %v2641_v2 = vsel %vm929_vm7, 1.0, %v4298_v5  ;;  %3410 = vmatprep.mubr.msk.f32.mxu0 %vm929_vm7, %v4299_v61  ;;  %2646 = vst [vmem:[%s5674_s5 + $0xb8] sm:$0xff] %v2642_v1 }
 0x56e   :  { %2645 = vst [vmem:[%s5674_s5 + $0xb0] sm:$0xff] %v2641_v2  ;;  %v2508_v4 = vadd.f32 %v2641_v2, %v2507_v0  ;;  %3411 = vmatmul.mubr.msk.f32.gmra.mrb[14].mxu0 %vm930_vm6, %v4299_v61  ;;  %v1205_v2 = vmul.f32 %v2659_v59, %v4460_v26 }
 0x56f   :  { %4018 = vmatpush3.bf16.msra.mxu0 %v4351_v6 }
 0x570   :  { %v2509_v7 = vadd.f32 %v2642_v1, %v2508_v4  ;;  %4020 = vmatprep.subr.bf16.mxu0 %v4364_v9  ;;  %v2662_v4 = vld [vmem:[%s5670_s1 + $0xf8] sm:$0xff] }
 0x573   :  { %4022 = vmatpush3.bf16.msra.mxu0 %v4364_v9 }
 0x574   :  { %4024 = vmatprep.subr.bf16.mxu0 %v4376_v12 }
 0x577   :  { %4026 = vmatpush3.bf16.msra.mxu0 %v4376_v12 }
 0x578   :  { %4028 = vmatprep.subr.bf16.mxu0 %v4388_v15 }
 0x57b   :  { %4030 = vmatpush3.bf16.msra.mxu0 %v4388_v15 }
 0x57c   :  { %4032 = vmatprep.subr.bf16.mxu0 %v4400_v18 }
 0x57f   :  { %4034 = vmatpush3.bf16.msra.mxu0 %v4400_v18 }
 0x580   :  { %4036 = vmatprep.subr.bf16.mxu0 %v4412_v21 }
 0x583   :  { %4038 = vmatpush3.bf16.msra.mxu0 %v4412_v21 }
 0x584   :  { %4040 = vmatprep.subr.bf16.mxu0 %v4424_v24 }
 0x587   :  { %4042 = vmatpush3.bf16.msra.mxu0 %v4424_v24 }
 0x588   :  { %4076 = vmatprep.subr.bf16.mxu0 %v4345_v3 }
 0x63d   :  { %v3409_v11 = vpop.f32.mrb[12].mxu0 }
 0x63e   :  { %v1046_v13 = vsub.f32 %v4888_v39, %v3409_v11  ;;  %v1022_v16 = vpop.f32.mrb[13].mxu0 }
 0x63f   :  { %v1045_v17 = vsub.f32 %v4892_v44, %v1022_v16  ;;  %v1208_v16 = vmul.f32 %v2662_v4, %v4460_v26  ;;  %v5139_v4 = vld [vmem:[%s5672_s3] ss:$0 sm:$0xff] }
 0x640   :  { %v1050_v22 = vmul.f32 %v1046_v13, %v4468_v29 }
 0x641   :  { %v1049_v25 = vmul.f32 %v1045_v17, %v4468_v29  ;;  %v3412_v27 = vpop.f32.mrb[14].mxu0 }
 0x642   :  { %v4968_v28 = vadd.f32 %v1059_v14, %v1050_v22  ;;  %v1048_v30 = vsub.f32 %v4903_v53, %v3412_v27  ;;  %v1032_v32 = vpop.f32.mrb[15].mxu0  ;;  %v1207_v22 = vmul.f32 %v2661_v8, %v4460_v26 }
 0x643   :  { %v4972_v33 = vadd.f32 %v1058_v19, %v1049_v25  ;;  %v1047_v34 = vsub.f32 %v4905_v54, %v1032_v32 }
 0x644   :  { %v1067_v36 = vmul.f32 %v4483_v40, %v4968_v28  ;;  %v1052_v37 = vmul.f32 %v1048_v30, %v4468_v29 }
 0x645   :  { %v1051_v38 = vmul.f32 %v1047_v34, %v4468_v29  ;;  %v1066_v39 = vmul.f32 %v4483_v40, %v4972_v33 }
 0x646   :  { %v1071_v41 = vsub.f32 %v1067_v36, %v4494_v48  ;;  %v4983_v42 = vadd.f32 %v1061_v31, %v1052_v37 }
 0x647   :  { %v4985_v43 = vadd.f32 %v1060_v35, %v1051_v38  ;;  %v1070_v44 = vsub.f32 %v1066_v39, %v4494_v48 }
 0x648   :  { %vm1075_vm8 = vcmp.gt.f32.partialorder %v1071_v41, 0.0  ;;  %v1069_v45 = vmul.f32 %v4483_v40, %v4983_v42 }
 0x649   :  { %vm1074_vm9 = vcmp.gt.f32.partialorder %v1070_v44, 0.0  ;;  %v2652_v46 = vsel %vm1075_vm8, 1.0, %v4298_v5  ;;  %v1068_v47 = vmul.f32 %v4483_v40, %v4985_v43 }
 0x64a   :  { %v2651_v49 = vsel %vm1074_vm9, 1.0, %v4298_v5  ;;  %3445 = vmatprep.mubr.msk.f32.mxu1 %vm1074_vm9, %v4299_v61  ;;  %2656 = vst [vmem:[%s5674_s5 + $0xc8] sm:$0xff] %v2652_v46  ;;  %v1073_v50 = vsub.f32 %v1069_v45, %v4494_v48  ;;  %v2672_v45 = vld [vmem:[%s5670_s1 + $0x108] sm:$0xff] }
 0x64b   :  { %2655 = vst [vmem:[%s5674_s5 + $0xc0] sm:$0xff] %v2651_v49  ;;  %v2510_v51 = vadd.f32 %v2651_v49, %v2509_v7  ;;  %3446 = vmatmul.mubr.msk.f32.vlgmr.msra.gmra.mrb[12].mxu1 %vm1075_vm8, %v4299_v61  ;;  %v1072_v52 = vsub.f32 %v1068_v47, %v4494_v48 }
 0x64c   :  { %vm1077_vm10 = vcmp.gt.f32.partialorder %v1073_v50, 0.0  ;;  %4046 = vmatpush3.bf16.msra.mxu1 %v4345_v3  ;;  %v1353_v50 = vmul.f32 %v2672_v45, %v4460_v26  ;;  %v2685_v45 = vld [vmem:[%s5670_s1 + $0x130] sm:$0xff] }
 0x64d   :  { %vm1076_vm11 = vcmp.gt.f32.partialorder %v1072_v52, 0.0  ;;  %v2511_v53 = vadd.f32 %v2652_v46, %v2510_v51  ;;  %v2654_v54 = vsel %vm1077_vm10, 1.0, %v4298_v5  ;;  %4048 = vmatprep.subr.bf16.mxu1 %v4351_v6  ;;  %v2671_v46 = vld [vmem:[%s5670_s1 + $0x100] sm:$0xff] }
 0x64e   :  { %v2653_v55 = vsel %vm1076_vm11, 1.0, %v4298_v5  ;;  %3448 = vmatprep.mubr.msk.f32.mxu1 %vm1076_vm11, %v4299_v61  ;;  %2658 = vst [vmem:[%s5674_s5 + $0xd8] sm:$0xff] %v2654_v54 }
 0x64f   :  { %2657 = vst [vmem:[%s5674_s5 + $0xd0] sm:$0xff] %v2653_v55  ;;  %v2512_v56 = vadd.f32 %v2653_v55, %v2511_v53  ;;  %3449 = vmatmul.mubr.msk.f32.gmra.mrb[14].mxu1 %vm1077_vm10, %v4299_v61  ;;  %v1352_v53 = vmul.f32 %v2671_v46, %v4460_v26 }
 0x650   :  { %4050 = vmatpush3.bf16.msra.mxu1 %v4351_v6 }
 0x651   :  { %v2513_v57 = vadd.f32 %v2654_v54, %v2512_v56  ;;  %4052 = vmatprep.subr.bf16.mxu1 %v4364_v9  ;;  %v2674_v54 = vld [vmem:[%s5670_s1 + $0x118] sm:$0xff]  ;;  %v2673_v56 = vld [vmem:[%s5670_s1 + $0x110] sm:$0xff] }
 0x654   :  { %4054 = vmatpush3.bf16.msra.mxu1 %v4364_v9 }
 0x655   :  { %4056 = vmatprep.subr.bf16.mxu1 %v4376_v12 }
 0x658   :  { %4058 = vmatpush3.bf16.msra.mxu1 %v4376_v12 }
 0x659   :  { %4060 = vmatprep.subr.bf16.mxu1 %v4388_v15 }
 0x65c   :  { %4062 = vmatpush3.bf16.msra.mxu1 %v4388_v15 }
 0x65d   :  { %4064 = vmatprep.subr.bf16.mxu1 %v4400_v18 }
 0x660   :  { %4066 = vmatpush3.bf16.msra.mxu1 %v4400_v18 }
 0x661   :  { %4068 = vmatprep.subr.bf16.mxu1 %v4412_v21 }
 0x664   :  { %4070 = vmatpush3.bf16.msra.mxu1 %v4412_v21 }
 0x665   :  { %4072 = vmatprep.subr.bf16.mxu1 %v4424_v24 }
 0x668   :  { %4074 = vmatpush3.bf16.msra.mxu1 %v4424_v24 }
 0x669   :  { %4108 = vmatprep.subr.bf16.mxu1 %v4345_v3 }
 0x71e   :  { %v3447_v60 = vpop.f32.mrb[12].mxu1 }
 0x71f   :  { %v1193_v62 = vsub.f32 %v4968_v28, %v3447_v60  ;;  %v1169_v0 = vpop.f32.mrb[13].mxu1 }
 0x720   :  { %v1192_v1 = vsub.f32 %v4972_v33, %v1169_v0 }
 0x721   :  { %v1197_v7 = vmul.f32 %v1193_v62, %v4468_v29  ;;  %v1355_v62 = vmul.f32 %v2674_v54, %v4460_v26 }
 0x722   :  { %v1196_v10 = vmul.f32 %v1192_v1, %v4468_v29  ;;  %v3450_v11 = vpop.f32.mrb[14].mxu1 }
 0x723   :  { %v5048_v13 = vadd.f32 %v1206_v63, %v1197_v7  ;;  %v1195_v14 = vsub.f32 %v4983_v42, %v3450_v11  ;;  %v1179_v17 = vpop.f32.mrb[15].mxu1 }
 0x724   :  { %v5052_v19 = vadd.f32 %v1205_v2, %v1196_v10  ;;  %v1194_v20 = vsub.f32 %v4985_v43, %v1179_v17  ;;  %v1354_v2 = vmul.f32 %v2673_v56, %v4460_v26 }
 0x725   :  { %v1214_v23 = vmul.f32 %v4483_v40, %v5048_v13  ;;  %v1199_v25 = vmul.f32 %v1195_v14, %v4468_v29 }
 0x726   :  { %v1198_v27 = vmul.f32 %v1194_v20, %v4468_v29  ;;  %v1213_v28 = vmul.f32 %v4483_v40, %v5052_v19 }
 0x727   :  { %v1218_v30 = vsub.f32 %v1214_v23, %v4494_v48  ;;  %v5063_v31 = vadd.f32 %v1208_v16, %v1199_v25 }
 0x728   :  { %v5065_v32 = vadd.f32 %v1207_v22, %v1198_v27  ;;  %v1217_v33 = vsub.f32 %v1213_v28, %v4494_v48 }
 0x729   :  { %vm1222_vm12 = vcmp.gt.f32.partialorder %v1218_v30, 0.0  ;;  %v1216_v34 = vmul.f32 %v4483_v40, %v5063_v31 }
 0x72a   :  { %vm1221_vm13 = vcmp.gt.f32.partialorder %v1217_v33, 0.0  ;;  %v2664_v35 = vsel %vm1222_vm12, 1.0, %v4298_v5  ;;  %v1215_v36 = vmul.f32 %v4483_v40, %v5065_v32 }
 0x72b   :  { %v2663_v37 = vsel %vm1221_vm13, 1.0, %v4298_v5  ;;  %3483 = vmatprep.mubr.msk.f32.mxu0 %vm1221_vm13, %v4299_v61  ;;  %2668 = vst [vmem:[%s5674_s5 + $0xe8] sm:$0xff] %v2664_v35  ;;  %v1220_v38 = vsub.f32 %v1216_v34, %v4494_v48 }
 0x72c   :  { %2667 = vst [vmem:[%s5674_s5 + $0xe0] sm:$0xff] %v2663_v37  ;;  %v2514_v39 = vadd.f32 %v2663_v37, %v2513_v57  ;;  %3484 = vmatmul.mubr.msk.f32.vlgmr.msra.gmra.mrb[16].mxu0 %vm1222_vm12, %v4299_v61  ;;  %v1219_v41 = vsub.f32 %v1215_v36, %v4494_v48  ;;  %v2684_v36 = vld [vmem:[%s5670_s1 + $0x128] sm:$0xff]  ;;  %v2683_v37 = vld [vmem:[%s5670_s1 + $0x120] sm:$0xff] }
 0x72d   :  { %vm1224_vm14 = vcmp.gt.f32.partialorder %v1220_v38, 0.0  ;;  %4078 = vmatpush3.bf16.msra.mxu0 %v4345_v3 }
 0x72e   :  { %vm1223_vm15 = vcmp.gt.f32.partialorder %v1219_v41, 0.0  ;;  %v2515_v40 = vadd.f32 %v2664_v35, %v2514_v39  ;;  %v2666_v42 = vsel %vm1224_vm14, 1.0, %v4298_v5  ;;  %4080 = vmatprep.subr.bf16.mxu0 %v4351_v6  ;;  %v1500_v41 = vmul.f32 %v2684_v36, %v4460_v26  ;;  %v2697_v36 = vld [vmem:[%s5670_s1 + $0x150] sm:$0xff] }
 0x72f   :  { %v2665_v43 = vsel %vm1223_vm15, 1.0, %v4298_v5  ;;  %3486 = vmatprep.mubr.msk.f32.mxu0 %vm1223_vm15, %v4299_v61  ;;  %2670 = vst [vmem:[%s5674_s5 + $0xf8] sm:$0xff] %v2666_v42 }
 0x730   :  { %2669 = vst [vmem:[%s5674_s5 + $0xf0] sm:$0xff] %v2665_v43  ;;  %v2516_v48 = vadd.f32 %v2665_v43, %v2515_v40  ;;  %3487 = vmatmul.mubr.msk.f32.gmra.mrb[18].mxu0 %vm1224_vm14, %v4299_v61  ;;  %v1499_v43 = vmul.f32 %v2683_v37, %v4460_v26 }
 0x731   :  { %4082 = vmatpush3.bf16.msra.mxu0 %v4351_v6 }
 0x732   :  { %v2517_v44 = vadd.f32 %v2666_v42, %v2516_v48  ;;  %4084 = vmatprep.subr.bf16.mxu0 %v4364_v9  ;;  %v2686_v48 = vld [vmem:[%s5670_s1 + $0x138] sm:$0xff] }
 0x735   :  { %4086 = vmatpush3.bf16.msra.mxu0 %v4364_v9 }
 0x736   :  { %4088 = vmatprep.subr.bf16.mxu0 %v4376_v12 }
 0x739   :  { %4090 = vmatpush3.bf16.msra.mxu0 %v4376_v12 }
 0x73a   :  { %4092 = vmatprep.subr.bf16.mxu0 %v4388_v15 }
 0x73d   :  { %4094 = vmatpush3.bf16.msra.mxu0 %v4388_v15 }
 0x73e   :  { %4096 = vmatprep.subr.bf16.mxu0 %v4400_v18 }
 0x741   :  { %4098 = vmatpush3.bf16.msra.mxu0 %v4400_v18 }
 0x742   :  { %4100 = vmatprep.subr.bf16.mxu0 %v4412_v21 }
 0x745   :  { %4102 = vmatpush3.bf16.msra.mxu0 %v4412_v21 }
 0x746   :  { %4104 = vmatprep.subr.bf16.mxu0 %v4424_v24 }
 0x749   :  { %4106 = vmatpush3.bf16.msra.mxu0 %v4424_v24 }
 0x74a   :  { %4140 = vmatprep.subr.bf16.mxu0 %v4345_v3 }
 0x7ff   :  { %v3485_v47 = vpop.f32.mrb[16].mxu0 }
 0x800   :  { %v1340_v49 = vsub.f32 %v5048_v13, %v3485_v47  ;;  %v1316_v51 = vpop.f32.mrb[17].mxu0  ;;  %v5150_v13 = vld [vmem:[%s5673_s4] ss:$0 sm:$0xff] }
 0x801   :  { %v1339_v52 = vsub.f32 %v5052_v19, %v1316_v51  ;;  %v1502_v51 = vmul.f32 %v2686_v48, %v4460_v26 }
 0x802   :  { %v1344_v55 = vmul.f32 %v1340_v49, %v4468_v29 }
 0x803   :  { %v1343_v57 = vmul.f32 %v1339_v52, %v4468_v29  ;;  %v3488_v58 = vpop.f32.mrb[18].mxu0 }
 0x804   :  { %v5128_v59 = vadd.f32 %v1353_v50, %v1344_v55  ;;  %v1342_v60 = vsub.f32 %v5063_v31, %v3488_v58  ;;  %v1326_v63 = vpop.f32.mrb[19].mxu0  ;;  %v1501_v55 = vmul.f32 %v2685_v45, %v4460_v26 }
 0x805   :  { %v5132_v0 = vadd.f32 %v1352_v53, %v1343_v57  ;;  %v1341_v1 = vsub.f32 %v5065_v32, %v1326_v63 }
 0x806   :  { %v1361_v7 = vmul.f32 %v5139_v4, %v5128_v59  ;;  %v1346_v8 = vmul.f32 %v1342_v60, %v4468_v29 }
 0x807   :  { %v1345_v10 = vmul.f32 %v1341_v1, %v4468_v29  ;;  %v1360_v11 = vmul.f32 %v5139_v4, %v5132_v0 }
 0x808   :  { %v1365_v14 = vsub.f32 %v1361_v7, %v5150_v13  ;;  %v5153_v16 = vadd.f32 %v1355_v62, %v1346_v8 }
 0x809   :  { %v5155_v17 = vadd.f32 %v1354_v2, %v1345_v10  ;;  %v1364_v19 = vsub.f32 %v1360_v11, %v5150_v13 }
 0x80a   :  { %vm1369_vm0 = vcmp.gt.f32.partialorder %v1365_v14, 0.0  ;;  %v1363_v20 = vmul.f32 %v5139_v4, %v5153_v16 }
 0x80b   :  { %vm1368_vm1 = vcmp.gt.f32.partialorder %v1364_v19, 0.0  ;;  %v2676_v22 = vsel %vm1369_vm0, 1.0, %v4298_v5  ;;  %v1362_v23 = vmul.f32 %v5139_v4, %v5155_v17 }
 0x80c   :  { %v2675_v25 = vsel %vm1368_vm1, 1.0, %v4298_v5  ;;  %3521 = vmatprep.mubr.msk.f32.mxu1 %vm1368_vm1, %v4299_v61  ;;  %2680 = vst [vmem:[%s5674_s5 + $0x108] sm:$0xff] %v2676_v22  ;;  %v1367_v27 = vsub.f32 %v1363_v20, %v5150_v13 }
 0x80d   :  { %2679 = vst [vmem:[%s5674_s5 + $0x100] sm:$0xff] %v2675_v25  ;;  %v2518_v28 = vadd.f32 %v2675_v25, %v2517_v44  ;;  %3522 = vmatmul.mubr.msk.f32.vlgmr.msra.gmra.mrb[16].mxu1 %vm1369_vm0, %v4299_v61  ;;  %v1366_v30 = vsub.f32 %v1362_v23, %v5150_v13  ;;  %v2696_v23 = vld [vmem:[%s5670_s1 + $0x148] sm:$0xff]  ;;  %v2695_v25 = vld [vmem:[%s5670_s1 + $0x140] sm:$0xff] }
 0x80e   :  { %vm1371_vm2 = vcmp.gt.f32.partialorder %v1367_v27, 0.0  ;;  %4110 = vmatpush3.bf16.msra.mxu1 %v4345_v3 }
 0x80f   :  { %vm1370_vm3 = vcmp.gt.f32.partialorder %v1366_v30, 0.0  ;;  %v2519_v31 = vadd.f32 %v2676_v22, %v2518_v28  ;;  %v2678_v32 = vsel %vm1371_vm2, 1.0, %v4298_v5  ;;  %4112 = vmatprep.subr.bf16.mxu1 %v4351_v6  ;;  %v1647_v30 = vmul.f32 %v2696_v23, %v4460_v26  ;;  %v2709_v23 = vld [vmem:[%s5670_s1 + $0x170] sm:$0xff] }
 0x810   :  { %v2677_v33 = vsel %vm1370_vm3, 1.0, %v4298_v5  ;;  %3524 = vmatprep.mubr.msk.f32.mxu1 %vm1370_vm3, %v4299_v61  ;;  %2682 = vst [vmem:[%s5674_s5 + $0x118] sm:$0xff] %v2678_v32 }
 0x811   :  { %2681 = vst [vmem:[%s5674_s5 + $0x110] sm:$0xff] %v2677_v33  ;;  %v2520_v34 = vadd.f32 %v2677_v33, %v2519_v31  ;;  %3525 = vmatmul.mubr.msk.f32.gmra.mrb[18].mxu1 %vm1371_vm2, %v4299_v61  ;;  %v1646_v33 = vmul.f32 %v2695_v25, %v4460_v26 }
 0x812   :  { %4114 = vmatpush3.bf16.msra.mxu1 %v4351_v6 }
 0x813   :  { %v2521_v35 = vadd.f32 %v2678_v32, %v2520_v34  ;;  %4116 = vmatprep.subr.bf16.mxu1 %v4364_v9  ;;  %v2698_v34 = vld [vmem:[%s5670_s1 + $0x158] sm:$0xff] }
 0x816   :  { %4118 = vmatpush3.bf16.msra.mxu1 %v4364_v9 }
 0x817   :  { %4120 = vmatprep.subr.bf16.mxu1 %v4376_v12 }
 0x81a   :  { %4122 = vmatpush3.bf16.msra.mxu1 %v4376_v12 }
 0x81b   :  { %4124 = vmatprep.subr.bf16.mxu1 %v4388_v15 }
 0x81e   :  { %4126 = vmatpush3.bf16.msra.mxu1 %v4388_v15 }
 0x81f   :  { %4128 = vmatprep.subr.bf16.mxu1 %v4400_v18 }
 0x822   :  { %4130 = vmatpush3.bf16.msra.mxu1 %v4400_v18 }
 0x823   :  { %4132 = vmatprep.subr.bf16.mxu1 %v4412_v21 }
 0x826   :  { %4134 = vmatpush3.bf16.msra.mxu1 %v4412_v21 }
 0x827   :  { %4136 = vmatprep.subr.bf16.mxu1 %v4424_v24 }
 0x82a   :  { %4138 = vmatpush3.bf16.msra.mxu1 %v4424_v24 }
 0x82b   :  { %4172 = vmatprep.subr.bf16.mxu1 %v4345_v3 }
 0x8e0   :  { %v3523_v38 = vpop.f32.mrb[16].mxu1 }
 0x8e1   :  { %v1487_v39 = vsub.f32 %v5128_v59, %v3523_v38  ;;  %v1463_v40 = vpop.f32.mrb[17].mxu1 }
 0x8e2   :  { %v1486_v42 = vsub.f32 %v5132_v0, %v1463_v40  ;;  %v1649_v40 = vmul.f32 %v2698_v34, %v4460_v26 }
 0x8e3   :  { %v1491_v44 = vmul.f32 %v1487_v39, %v4468_v29 }
 0x8e4   :  { %v1490_v46 = vmul.f32 %v1486_v42, %v4468_v29  ;;  %v3526_v47 = vpop.f32.mrb[18].mxu1 }
 0x8e5   :  { %v5218_v49 = vadd.f32 %v1500_v41, %v1491_v44  ;;  %v1489_v50 = vsub.f32 %v5153_v16, %v3526_v47  ;;  %v1473_v52 = vpop.f32.mrb[19].mxu1  ;;  %v1648_v44 = vmul.f32 %v2697_v36, %v4460_v26 }
 0x8e6   :  { %v5222_v53 = vadd.f32 %v1499_v43, %v1490_v46  ;;  %v1488_v54 = vsub.f32 %v5155_v17, %v1473_v52 }
 0x8e7   :  { %v1508_v56 = vmul.f32 %v5139_v4, %v5218_v49  ;;  %v1493_v57 = vmul.f32 %v1489_v50, %v4468_v29 }
 0x8e8   :  { %v1492_v58 = vmul.f32 %v1488_v54, %v4468_v29  ;;  %v1507_v59 = vmul.f32 %v5139_v4, %v5222_v53 }
 0x8e9   :  { %v1512_v60 = vsub.f32 %v1508_v56, %v5150_v13  ;;  %v5233_v62 = vadd.f32 %v1502_v51, %v1493_v57 }
 0x8ea   :  { %v5235_v63 = vadd.f32 %v1501_v55, %v1492_v58  ;;  %v1511_v0 = vsub.f32 %v1507_v59, %v5150_v13 }
 0x8eb   :  { %vm1516_vm4 = vcmp.gt.f32.partialorder %v1512_v60, 0.0  ;;  %v1510_v1 = vmul.f32 %v5139_v4, %v5233_v62 }
 0x8ec   :  { %vm1515_vm5 = vcmp.gt.f32.partialorder %v1511_v0, 0.0  ;;  %v2688_v2 = vsel %vm1516_vm4, 1.0, %v4298_v5  ;;  %v1509_v7 = vmul.f32 %v5139_v4, %v5235_v63 }
 0x8ed   :  { %v2687_v8 = vsel %vm1515_vm5, 1.0, %v4298_v5  ;;  %3559 = vmatprep.mubr.msk.f32.mxu0 %vm1515_vm5, %v4299_v61  ;;  %2692 = vst [vmem:[%s5674_s5 + $0x128] sm:$0xff] %v2688_v2  ;;  %v1514_v10 = vsub.f32 %v1510_v1, %v5150_v13 }
 0x8ee   :  { %2691 = vst [vmem:[%s5674_s5 + $0x120] sm:$0xff] %v2687_v8  ;;  %v2522_v11 = vadd.f32 %v2687_v8, %v2521_v35  ;;  %3560 = vmatmul.mubr.msk.f32.vlgmr.msra.gmra.mrb[20].mxu0 %vm1516_vm4, %v4299_v61  ;;  %v1513_v14 = vsub.f32 %v1509_v7, %v5150_v13  ;;  %v2708_v7 = vld [vmem:[%s5670_s1 + $0x168] sm:$0xff]  ;;  %v2707_v8 = vld [vmem:[%s5670_s1 + $0x160] sm:$0xff] }
 0x8ef   :  { %vm1518_vm6 = vcmp.gt.f32.partialorder %v1514_v10, 0.0  ;;  %4142 = vmatpush3.bf16.msra.mxu0 %v4345_v3 }
 0x8f0   :  { %vm1517_vm7 = vcmp.gt.f32.partialorder %v1513_v14, 0.0  ;;  %v2523_v16 = vadd.f32 %v2688_v2, %v2522_v11  ;;  %v2690_v17 = vsel %vm1518_vm6, 1.0, %v4298_v5  ;;  %4144 = vmatprep.subr.bf16.mxu0 %v4351_v6  ;;  %v1794_v14 = vmul.f32 %v2708_v7, %v4460_v26  ;;  %v2721_v7 = vld [vmem:[%s5670_s1 + $0x190] sm:$0xff] }
 0x8f1   :  { %v2689_v19 = vsel %vm1517_vm7, 1.0, %v4298_v5  ;;  %3562 = vmatprep.mubr.msk.f32.mxu0 %vm1517_vm7, %v4299_v61  ;;  %2694 = vst [vmem:[%s5674_s5 + $0x138] sm:$0xff] %v2690_v17 }
 0x8f2   :  { %2693 = vst [vmem:[%s5674_s5 + $0x130] sm:$0xff] %v2689_v19  ;;  %v2524_v20 = vadd.f32 %v2689_v19, %v2523_v16  ;;  %3563 = vmatmul.mubr.msk.f32.gmra.mrb[22].mxu0 %vm1518_vm6, %v4299_v61  ;;  %v1793_v19 = vmul.f32 %v2707_v8, %v4460_v26 }
 0x8f3   :  { %4146 = vmatpush3.bf16.msra.mxu0 %v4351_v6 }
 0x8f4   :  { %v2525_v22 = vadd.f32 %v2690_v17, %v2524_v20  ;;  %4148 = vmatprep.subr.bf16.mxu0 %v4364_v9  ;;  %v2710_v20 = vld [vmem:[%s5670_s1 + $0x178] sm:$0xff] }
 0x8f7   :  { %4150 = vmatpush3.bf16.msra.mxu0 %v4364_v9 }
 0x8f8   :  { %4152 = vmatprep.subr.bf16.mxu0 %v4376_v12 }
 0x8fb   :  { %4154 = vmatpush3.bf16.msra.mxu0 %v4376_v12 }
 0x8fc   :  { %4156 = vmatprep.subr.bf16.mxu0 %v4388_v15 }
 0x8ff   :  { %4158 = vmatpush3.bf16.msra.mxu0 %v4388_v15 }
 0x900   :  { %4160 = vmatprep.subr.bf16.mxu0 %v4400_v18 }
 0x903   :  { %4162 = vmatpush3.bf16.msra.mxu0 %v4400_v18 }
 0x904   :  { %4164 = vmatprep.subr.bf16.mxu0 %v4412_v21 }
 0x907   :  { %4166 = vmatpush3.bf16.msra.mxu0 %v4412_v21 }
 0x908   :  { %4168 = vmatprep.subr.bf16.mxu0 %v4424_v24 }
 0x90b   :  { %4170 = vmatpush3.bf16.msra.mxu0 %v4424_v24 }
 0x90c   :  { %4204 = vmatprep.subr.bf16.mxu0 %v4345_v3 }
 0x9c1   :  { %v3561_v27 = vpop.f32.mrb[20].mxu0 }
 0x9c2   :  { %v1634_v28 = vsub.f32 %v5218_v49, %v3561_v27  ;;  %v1610_v31 = vpop.f32.mrb[21].mxu0 }
 0x9c3   :  { %v1633_v32 = vsub.f32 %v5222_v53, %v1610_v31  ;;  %v1796_v31 = vmul.f32 %v2710_v20, %v4460_v26 }
 0x9c4   :  { %v1638_v35 = vmul.f32 %v1634_v28, %v4468_v29 }
 0x9c5   :  { %v1637_v37 = vmul.f32 %v1633_v32, %v4468_v29  ;;  %v3564_v38 = vpop.f32.mrb[22].mxu0 }
 0x9c6   :  { %v5298_v39 = vadd.f32 %v1647_v30, %v1638_v35  ;;  %v1636_v41 = vsub.f32 %v5233_v62, %v3564_v38  ;;  %v1620_v42 = vpop.f32.mrb[23].mxu0  ;;  %v1795_v35 = vmul.f32 %v2709_v23, %v4460_v26 }
 0x9c7   :  { %v5302_v43 = vadd.f32 %v1646_v33, %v1637_v37  ;;  %v1635_v48 = vsub.f32 %v5235_v63, %v1620_v42 }
 0x9c8   :  { %v1655_v45 = vmul.f32 %v5139_v4, %v5298_v39  ;;  %v1640_v46 = vmul.f32 %v1636_v41, %v4468_v29 }
 0x9c9   :  { %v1639_v47 = vmul.f32 %v1635_v48, %v4468_v29  ;;  %v1654_v49 = vmul.f32 %v5139_v4, %v5302_v43 }
 0x9ca   :  { %v1659_v50 = vsub.f32 %v1655_v45, %v5150_v13  ;;  %v5313_v51 = vadd.f32 %v1649_v40, %v1640_v46 }
 0x9cb   :  { %v5315_v52 = vadd.f32 %v1648_v44, %v1639_v47  ;;  %v1658_v53 = vsub.f32 %v1654_v49, %v5150_v13 }
 0x9cc   :  { %vm1663_vm8 = vcmp.gt.f32.partialorder %v1659_v50, 0.0  ;;  %v1657_v54 = vmul.f32 %v5139_v4, %v5313_v51 }
 0x9cd   :  { %vm1662_vm9 = vcmp.gt.f32.partialorder %v1658_v53, 0.0  ;;  %v2700_v55 = vsel %vm1663_vm8, 1.0, %v4298_v5  ;;  %v1656_v56 = vmul.f32 %v5139_v4, %v5315_v52 }
 0x9ce   :  { %v2699_v57 = vsel %vm1662_vm9, 1.0, %v4298_v5  ;;  %3597 = vmatprep.mubr.msk.f32.mxu1 %vm1662_vm9, %v4299_v61  ;;  %2704 = vst [vmem:[%s5674_s5 + $0x148] sm:$0xff] %v2700_v55  ;;  %v1661_v58 = vsub.f32 %v1657_v54, %v5150_v13 }
 0x9cf   :  { %2703 = vst [vmem:[%s5674_s5 + $0x140] sm:$0xff] %v2699_v57  ;;  %v2526_v59 = vadd.f32 %v2699_v57, %v2525_v22  ;;  %3598 = vmatmul.mubr.msk.f32.vlgmr.msra.gmra.mrb[20].mxu1 %vm1663_vm8, %v4299_v61  ;;  %v1660_v60 = vsub.f32 %v1656_v56, %v5150_v13  ;;  %v2720_v56 = vld [vmem:[%s5670_s1 + $0x188] sm:$0xff]  ;;  %v2719_v57 = vld [vmem:[%s5670_s1 + $0x180] sm:$0xff] }
 0x9d0   :  { %vm1665_vm10 = vcmp.gt.f32.partialorder %v1661_v58, 0.0  ;;  %4174 = vmatpush3.bf16.msra.mxu1 %v4345_v3 }
 0x9d1   :  { %vm1664_vm11 = vcmp.gt.f32.partialorder %v1660_v60, 0.0  ;;  %v2527_v62 = vadd.f32 %v2700_v55, %v2526_v59  ;;  %v2702_v63 = vsel %vm1665_vm10, 1.0, %v4298_v5  ;;  %4176 = vmatprep.subr.bf16.mxu1 %v4351_v6  ;;  %v1941_v60 = vmul.f32 %v2720_v56, %v4460_v26 }
 0x9d2   :  { %v2701_v0 = vsel %vm1664_vm11, 1.0, %v4298_v5  ;;  %3600 = vmatprep.mubr.msk.f32.mxu1 %vm1664_vm11, %v4299_v61  ;;  %2706 = vst [vmem:[%s5674_s5 + $0x158] sm:$0xff] %v2702_v63 }
 0x9d3   :  { %2705 = vst [vmem:[%s5674_s5 + $0x150] sm:$0xff] %v2701_v0  ;;  %v2528_v1 = vadd.f32 %v2701_v0, %v2527_v62  ;;  %3601 = vmatmul.mubr.msk.f32.gmra.mrb[22].mxu1 %vm1665_vm10, %v4299_v61  ;;  %v1940_v0 = vmul.f32 %v2719_v57, %v4460_v26 }
 0x9d4   :  { %4178 = vmatpush3.bf16.msra.mxu1 %v4351_v6 }
 0x9d5   :  { %v2529_v2 = vadd.f32 %v2702_v63, %v2528_v1  ;;  %4180 = vmatprep.subr.bf16.mxu1 %v4364_v9  ;;  %v2722_v1 = vld [vmem:[%s5670_s1 + $0x198] sm:$0xff] }
 0x9d8   :  { %4182 = vmatpush3.bf16.msra.mxu1 %v4364_v9 }
 0x9d9   :  { %4184 = vmatprep.subr.bf16.mxu1 %v4376_v12 }
 0x9dc   :  { %4186 = vmatpush3.bf16.msra.mxu1 %v4376_v12 }
 0x9dd   :  { %4188 = vmatprep.subr.bf16.mxu1 %v4388_v15 }
 0x9e0   :  { %4190 = vmatpush3.bf16.msra.mxu1 %v4388_v15 }
 0x9e1   :  { %4192 = vmatprep.subr.bf16.mxu1 %v4400_v18 }
 0x9e4   :  { %4194 = vmatpush3.bf16.msra.mxu1 %v4400_v18 }
 0x9e5   :  { %4196 = vmatprep.subr.bf16.mxu1 %v4412_v21 }
 0x9e8   :  { %4198 = vmatpush3.bf16.msra.mxu1 %v4412_v21 }
 0x9e9   :  { %4200 = vmatprep.subr.bf16.mxu1 %v4424_v24 }
 0x9ec   :  { %4202 = vmatpush3.bf16.msra.mxu1 %v4424_v24 }
 0x9ed   :  { %4236 = vmatprep.subr.bf16.mxu1 %v4345_v3 }
 0xaa2   :  { %v3599_v10 = vpop.f32.mrb[20].mxu1 }
 0xaa3   :  { %v1781_v11 = vsub.f32 %v5298_v39, %v3599_v10  ;;  %v1757_v16 = vpop.f32.mrb[21].mxu1 }
 0xaa4   :  { %v1780_v17 = vsub.f32 %v5302_v43, %v1757_v16  ;;  %v1943_v16 = vmul.f32 %v2722_v1, %v4460_v26 }
 0xaa5   :  { %v1785_v22 = vmul.f32 %v1781_v11, %v4468_v29 }
 0xaa6   :  { %v1784_v25 = vmul.f32 %v1780_v17, %v4468_v29  ;;  %v3602_v27 = vpop.f32.mrb[22].mxu1 }
 0xaa7   :  { %v5378_v28 = vadd.f32 %v1794_v14, %v1785_v22  ;;  %v1783_v30 = vsub.f32 %v5313_v51, %v3602_v27  ;;  %v1767_v32 = vpop.f32.mrb[23].mxu1  ;;  %v1942_v22 = vmul.f32 %v2721_v7, %v4460_v26 }
 0xaa8   :  { %v1797_v33 = vadd.f32 %v1793_v19, %v1784_v25  ;;  %v1782_v34 = vsub.f32 %v5315_v52, %v1767_v32 }
 0xaa9   :  { %v1802_v36 = vmul.f32 %v5139_v4, %v5378_v28  ;;  %v1787_v37 = vmul.f32 %v1783_v30, %v4468_v29 }
 0xaaa   :  { %v1786_v38 = vmul.f32 %v1782_v34, %v4468_v29  ;;  %v1801_v39 = vmul.f32 %v5139_v4, %v1797_v33 }
 0xaab   :  { %v1806_v41 = vsub.f32 %v1802_v36, %v5150_v13  ;;  %v5390_v40 = vadd.f32 %v1796_v31, %v1787_v37 }
 0xaac   :  { %v5392_v42 = vadd.f32 %v1795_v35, %v1786_v38  ;;  %v1805_v43 = vsub.f32 %v1801_v39, %v5150_v13 }
 0xaad   :  { %vm1810_vm12 = vcmp.gt.f32.partialorder %v1806_v41, 0.0  ;;  %v1804_v48 = vmul.f32 %v5139_v4, %v5390_v40 }
 0xaae   :  { %vm1809_vm13 = vcmp.gt.f32.partialorder %v1805_v43, 0.0  ;;  %v2712_v44 = vsel %vm1810_vm12, 1.0, %v4298_v5  ;;  %v1803_v45 = vmul.f32 %v5139_v4, %v5392_v42 }
 0xaaf   :  { %v2711_v46 = vsel %vm1809_vm13, 1.0, %v4298_v5  ;;  %3635 = vmatprep.mubr.msk.f32.mxu0 %vm1809_vm13, %v4299_v61  ;;  %2716 = vst [vmem:[%s5674_s5 + $0x168] sm:$0xff] %v2712_v44  ;;  %v1808_v47 = vsub.f32 %v1804_v48, %v5150_v13 }
 0xab0   :  { %2715 = vst [vmem:[%s5674_s5 + $0x160] sm:$0xff] %v2711_v46  ;;  %v2530_v49 = vadd.f32 %v2711_v46, %v2529_v2  ;;  %3636 = vmatmul.mubr.msk.f32.vlgmr.msra.gmra.mrb[24].mxu0 %vm1810_vm12, %v4299_v61  ;;  %v1807_v50 = vsub.f32 %v1803_v45, %v5150_v13 }
 0xab1   :  { %vm1812_vm14 = vcmp.gt.f32.partialorder %v1808_v47, 0.0  ;;  %4206 = vmatpush3.bf16.msra.mxu0 %v4345_v3  ;;  %v2733_v47 = vld [vmem:[%s5670_s1 + $0x1b0] sm:$0xff] }
 0xab2   :  { %vm1811_vm15 = vcmp.gt.f32.partialorder %v1807_v50, 0.0  ;;  %v2714_v51 = vsel %vm1812_vm14, 1.0, %v4298_v5  ;;  %4208 = vmatprep.subr.bf16.mxu0 %v4351_v6  ;;  %v2531_v52 = vadd.f32 %v2712_v44, %v2530_v49  ;;  %v2089_v57 = vmul.f32 %v2733_v47, %v4460_v26 }
 0xab3   :  { %v2713_v53 = vsel %vm1811_vm15, 1.0, %v4298_v5  ;;  %3638 = vmatprep.mubr.msk.f32.mxu0 %vm1811_vm15, %v4299_v61  ;;  %2718 = vst [vmem:[%s5674_s5 + $0x178] sm:$0xff] %v2714_v51 }
 0xab4   :  { %2717 = vst [vmem:[%s5674_s5 + $0x170] sm:$0xff] %v2713_v53  ;;  %3639 = vmatmul.mubr.msk.f32.gmra.mrb[26].mxu0 %vm1812_vm14, %v4299_v61  ;;  %v2532_v54 = vadd.f32 %v2713_v53, %v2531_v52 }
 0xab5   :  { %4210 = vmatpush3.bf16.msra.mxu0 %v4351_v6 }
 0xab6   :  { %4212 = vmatprep.subr.bf16.mxu0 %v4364_v9  ;;  %v2533_v55 = vadd.f32 %v2714_v51, %v2532_v54 }
 0xab9   :  { %4214 = vmatpush3.bf16.msra.mxu0 %v4364_v9 }
 0xaba   :  { %4216 = vmatprep.subr.bf16.mxu0 %v4376_v12 }
 0xabd   :  { %4218 = vmatpush3.bf16.msra.mxu0 %v4376_v12 }
 0xabe   :  { %4220 = vmatprep.subr.bf16.mxu0 %v4388_v15 }
 0xac1   :  { %4222 = vmatpush3.bf16.msra.mxu0 %v4388_v15 }
 0xac2   :  { %4224 = vmatprep.subr.bf16.mxu0 %v4400_v18 }
 0xac5   :  { %4226 = vmatpush3.bf16.msra.mxu0 %v4400_v18 }
 0xac6   :  { %4228 = vmatprep.subr.bf16.mxu0 %v4412_v21 }
 0xac9   :  { %4230 = vmatpush3.bf16.msra.mxu0 %v4412_v21 }
 0xaca   :  { %4232 = vmatprep.subr.bf16.mxu0 %v4424_v24 }
 0xacd   :  { %4234 = vmatpush3.bf16.msra.mxu0 %v4424_v24 }
 0xb83   :  { %v3637_v58 = vpop.f32.mrb[24].mxu0 }
 0xb84   :  { %v1928_v59 = vsub.f32 %v5378_v28, %v3637_v58  ;;  %v1904_v62 = vpop.f32.mrb[25].mxu0 }
 0xb85   :  { %v1927_v63 = vsub.f32 %v1797_v33, %v1904_v62 }
 0xb86   :  { %v1932_v2 = vmul.f32 %v1928_v59, %v4468_v29 }
 0xb87   :  { %v1931_v8 = vmul.f32 %v1927_v63, %v4468_v29  ;;  %v3640_v10 = vpop.f32.mrb[26].mxu0 }
 0xb88   :  { %v5453_v11 = vadd.f32 %v1941_v60, %v1932_v2  ;;  %v1930_v14 = vsub.f32 %v5390_v40, %v3640_v10  ;;  %v1914_v17 = vpop.f32.mrb[27].mxu0 }
 0xb89   :  { %v1944_v19 = vadd.f32 %v1940_v0, %v1931_v8  ;;  %v1929_v20 = vsub.f32 %v5392_v42, %v1914_v17 }
 0xb8a   :  { %v1949_v23 = vmul.f32 %v5139_v4, %v5453_v11  ;;  %v1934_v25 = vmul.f32 %v1930_v14, %v4468_v29 }
 0xb8b   :  { %v1933_v27 = vmul.f32 %v1929_v20, %v4468_v29  ;;  %v1948_v28 = vmul.f32 %v5139_v4, %v1944_v19 }
 0xb8c   :  { %v1953_v30 = vsub.f32 %v1949_v23, %v5150_v13  ;;  %v5465_v31 = vadd.f32 %v1943_v16, %v1934_v25 }
 0xb8d   :  { %v5467_v32 = vadd.f32 %v1942_v22, %v1933_v27  ;;  %v1952_v33 = vsub.f32 %v1948_v28, %v5150_v13  ;;  %v2744_v27 = vld [vmem:[%s5670_s1 + $0x1c8] sm:$0xff]  ;;  %v2743_v28 = vld [vmem:[%s5670_s1 + $0x1c0] sm:$0xff] }
 0xb8e   :  { %vm1957_vm0 = vcmp.gt.f32.partialorder %v1953_v30, 0.0  ;;  %v1951_v34 = vmul.f32 %v5139_v4, %v5465_v31 }
 0xb8f   :  { %vm1956_vm1 = vcmp.gt.f32.partialorder %v1952_v33, 0.0  ;;  %v2724_v35 = vsel %vm1957_vm0, 1.0, %v4298_v5  ;;  %v1950_v36 = vmul.f32 %v5139_v4, %v5467_v32 }
 0xb90   :  { %v2723_v37 = vsel %vm1956_vm1, 1.0, %v4298_v5  ;;  %3673 = vmatprep.mubr.msk.f32.mxu1 %vm1956_vm1, %v4299_v61  ;;  %2728 = vst [vmem:[%s5674_s5 + $0x188] sm:$0xff] %v2724_v35  ;;  %v1955_v38 = vsub.f32 %v1951_v34, %v5150_v13 }
 0xb91   :  { %2727 = vst [vmem:[%s5674_s5 + $0x180] sm:$0xff] %v2723_v37  ;;  %3674 = vmatmul.mubr.msk.f32.vlgmr.msra.gmra.mrb[24].mxu1 %vm1957_vm0, %v4299_v61  ;;  %v1954_v39 = vsub.f32 %v1950_v36, %v5150_v13  ;;  %v2534_v41 = vadd.f32 %v2723_v37, %v2533_v55  ;;  %v2746_v36 = vld [vmem:[%s5670_s1 + $0x1d8] sm:$0xff]  ;;  %vm36_vm0 = vcmask 0  }
 0xb92   :  { %vm1959_vm2 = vcmp.gt.f32.partialorder %v1955_v38, 0.0  ;;  %4238 = vmatpush3.bf16.msra.mxu1 %v4345_v3  ;;  %v2745_v38 = vld [vmem:[%s5670_s1 + $0x1d0] sm:$0xff]  ;;  %37 = vst.msk [vmem:[#allocation5] sm:$0x1] %vm36_vm0, %v4298_v5 }
 0xb93   :  { %vm1958_vm3 = vcmp.gt.f32.partialorder %v1954_v39, 0.0  ;;  %v2726_v40 = vsel %vm1959_vm2, 1.0, %v4298_v5  ;;  %4240 = vmatprep.subr.bf16.mxu1 %v4351_v6  ;;  %v2535_v42 = vadd.f32 %v2724_v35, %v2534_v41  ;;  %v2234_v35 = vmul.f32 %v2743_v28, %v4460_v26 }
 0xb94   :  { %v2725_v43 = vsel %vm1958_vm3, 1.0, %v4298_v5  ;;  %3676 = vmatprep.mubr.msk.f32.mxu1 %vm1958_vm3, %v4299_v61  ;;  %2730 = vst [vmem:[%s5674_s5 + $0x198] sm:$0xff] %v2726_v40 }
 0xb95   :  { %2729 = vst [vmem:[%s5674_s5 + $0x190] sm:$0xff] %v2725_v43  ;;  %3677 = vmatmul.mubr.msk.f32.gmra.mrb[26].mxu1 %vm1959_vm2, %v4299_v61  ;;  %v2536_v3 = vadd.f32 %v2725_v43, %v2535_v42  ;;  %v2237_v43 = vmul.f32 %v2746_v36, %v4460_v26 }
 0xb96   :  { %4242 = vmatpush3.bf16.msra.mxu1 %v4351_v6  ;;  %v2732_v6 = vld [vmem:[%s5670_s1 + $0x1a8] sm:$0xff] }
 0xb97   :  { %4244 = vmatprep.subr.bf16.mxu1 %v4364_v9  ;;  %v2537_v48 = vadd.f32 %v2726_v40, %v2536_v3 }
 0xb9a   :  { %4246 = vmatpush3.bf16.msra.mxu1 %v4364_v9  ;;  %v2731_v9 = vld [vmem:[%s5670_s1 + $0x1a0] sm:$0xff] }
 0xb9b   :  { %4248 = vmatprep.subr.bf16.mxu1 %v4376_v12 }
 0xb9e   :  { %4250 = vmatpush3.bf16.msra.mxu1 %v4376_v12 }
 0xb9f   :  { %4252 = vmatprep.subr.bf16.mxu1 %v4388_v15 }
 0xba2   :  { %4254 = vmatpush3.bf16.msra.mxu1 %v4388_v15 }
 0xba3   :  { %4256 = vmatprep.subr.bf16.mxu1 %v4400_v18 }
 0xba6   :  { %4258 = vmatpush3.bf16.msra.mxu1 %v4400_v18  ;;  %v2088_v18 = vmul.f32 %v2732_v6, %v4460_v26 }
 0xba7   :  { %4260 = vmatprep.subr.bf16.mxu1 %v4412_v21 }
 0xbaa   :  { %4262 = vmatpush3.bf16.msra.mxu1 %v4412_v21  ;;  %v2087_v21 = vmul.f32 %v2731_v9, %v4460_v26  ;;  %v2236_v9 = vmul.f32 %v2745_v38, %v4460_v26 }
 0xbab   :  { %4264 = vmatprep.subr.bf16.mxu1 %v4424_v24 }
 0xbae   :  { %4266 = vmatpush3.bf16.msra.mxu1 %v4424_v24  ;;  %v2734_v24 = vld [vmem:[%s5670_s1 + $0x1b8] sm:$0xff] }
 0xbaf   :  { %v2090_v53 = vmul.f32 %v2734_v24, %v4460_v26 }
 0xc64   :  { %v3675_v12 = vpop.f32.mrb[24].mxu1 }
 0xc65   :  { %v2075_v15 = vsub.f32 %v5453_v11, %v3675_v12  ;;  %v2051_v44 = vpop.f32.mrb[25].mxu1 }
 0xc66   :  { %v2074_v45 = vsub.f32 %v1944_v19, %v2051_v44 }
 0xc67   :  { %v2079_v46 = vmul.f32 %v2075_v15, %v4468_v29 }
 0xc68   :  { %v2078_v49 = vmul.f32 %v2074_v45, %v4468_v29  ;;  %v3678_v50 = vpop.f32.mrb[26].mxu1 }
 0xc69   :  { %v2092_v51 = vadd.f32 %v2088_v18, %v2079_v46  ;;  %v2077_v52 = vsub.f32 %v5465_v31, %v3678_v50  ;;  %v2061_v54 = vpop.f32.mrb[27].mxu1 }
 0xc6a   :  { %v2091_v55 = vadd.f32 %v2087_v21, %v2078_v49  ;;  %v2076_v56 = vsub.f32 %v5467_v32, %v2061_v54  ;;  %v2235_v32 = vmul.f32 %v2744_v27, %v4460_v26 }
 0xc6b   :  { %v2096_v58 = vmul.f32 %v5139_v4, %v2092_v51  ;;  %v2081_v59 = vmul.f32 %v2077_v52, %v4468_v29 }
 0xc6c   :  { %v2080_v60 = vmul.f32 %v2076_v56, %v4468_v29  ;;  %v2095_v62 = vmul.f32 %v5139_v4, %v2091_v55 }
 0xc6d   :  { %v2100_v63 = vsub.f32 %v2096_v58, %v5150_v13  ;;  %v2094_v0 = vadd.f32 %v2090_v53, %v2081_v59 }
 0xc6e   :  { %v2093_v1 = vadd.f32 %v2089_v57, %v2080_v60  ;;  %v2099_v2 = vsub.f32 %v2095_v62, %v5150_v13  ;;  %v2756_v60 = vld [vmem:[%s5670_s1 + $0x1e8] sm:$0xff]  ;;  %v2755_v62 = vld [vmem:[%s5670_s1 + $0x1e0] sm:$0xff] }
 0xc6f   :  { %vm2104_vm4 = vcmp.gt.f32.partialorder %v2100_v63, 0.0  ;;  %v2098_v7 = vmul.f32 %v5139_v4, %v2094_v0 }
 0xc70   :  { %vm2103_vm5 = vcmp.gt.f32.partialorder %v2099_v2, 0.0  ;;  %v2736_v8 = vsel %vm2104_vm4, 1.0, %v4298_v5  ;;  %v2097_v10 = vmul.f32 %v5139_v4, %v2093_v1 }
 0xc71   :  { %v2735_v11 = vsel %vm2103_vm5, 1.0, %v4298_v5  ;;  %3711 = vmatprep.mubr.msk.f32.mxu0 %vm2103_vm5, %v4299_v61  ;;  %2740 = vst [vmem:[%s5674_s5 + $0x1a8] sm:$0xff] %v2736_v8  ;;  %v2102_v14 = vsub.f32 %v2098_v7, %v5150_v13 }
 0xc72   :  { %2739 = vst [vmem:[%s5674_s5 + $0x1a0] sm:$0xff] %v2735_v11  ;;  %3712 = vmatmul.mubr.msk.f32.vlgmr.msra.gmra.mrb[28].mxu0 %vm2104_vm4, %v4299_v61  ;;  %v2101_v16 = vsub.f32 %v2097_v10, %v5150_v13  ;;  %v2538_v17 = vadd.f32 %v2735_v11, %v2537_v48  ;;  %v2757_v11 = vld [vmem:[%s5670_s1 + $0x1f0] sm:$0xff] }
 0xc73   :  { %vm2106_vm6 = vcmp.gt.f32.partialorder %v2102_v14, 0.0  ;;  %v2383_v27 = vmul.f32 %v2757_v11, %v4460_v26 }
 0xc74   :  { %vm2105_vm7 = vcmp.gt.f32.partialorder %v2101_v16, 0.0  ;;  %v2738_v19 = vsel %vm2106_vm6, 1.0, %v4298_v5  ;;  %v2539_v20 = vadd.f32 %v2736_v8, %v2538_v17  ;;  %v2381_v8 = vmul.f32 %v2755_v62, %v4460_v26 }
 0xc75   :  { %v2737_v22 = vsel %vm2105_vm7, 1.0, %v4298_v5  ;;  %3714 = vmatprep.mubr.msk.f32.mxu0 %vm2105_vm7, %v4299_v61  ;;  %2742 = vst [vmem:[%s5674_s5 + $0x1b8] sm:$0xff] %v2738_v19 }
 0xc76   :  { %2741 = vst [vmem:[%s5674_s5 + $0x1b0] sm:$0xff] %v2737_v22  ;;  %3715 = vmatmul.mubr.msk.f32.gmra.mrb[30].mxu0 %vm2106_vm6, %v4299_v61  ;;  %v2540_v23 = vadd.f32 %v2737_v22, %v2539_v20 }
 0xc78   :  { %v2541_v25 = vadd.f32 %v2738_v19, %v2540_v23 }
 0xd45   :  { %v3713_v30 = vpop.f32.mrb[28].mxu0 }
 0xd46   :  { %v2222_v31 = vsub.f32 %v2092_v51, %v3713_v30  ;;  %v2198_v33 = vpop.f32.mrb[29].mxu0 }
 0xd47   :  { %v2221_v34 = vsub.f32 %v2091_v55, %v2198_v33 }
 0xd48   :  { %v2226_v37 = vmul.f32 %v2222_v31, %v4468_v29 }
 0xd49   :  { %v2225_v39 = vmul.f32 %v2221_v34, %v4468_v29  ;;  %v3716_v41 = vpop.f32.mrb[30].mxu0 }
 0xd4a   :  { %v2239_v40 = vadd.f32 %v2235_v32, %v2226_v37  ;;  %v2224_v42 = vsub.f32 %v2094_v0, %v3716_v41  ;;  %v2208_v3 = vpop.f32.mrb[31].mxu0 }
 0xd4b   :  { %v2238_v48 = vadd.f32 %v2234_v35, %v2225_v39  ;;  %v2223_v6 = vsub.f32 %v2093_v1, %v2208_v3  ;;  %v2382_v1 = vmul.f32 %v2756_v60, %v4460_v26 }
 0xd4c   :  { %v2243_v12 = vmul.f32 %v5139_v4, %v2239_v40  ;;  %v2228_v15 = vmul.f32 %v2224_v42, %v4468_v29 }
 0xd4d   :  { %v2227_v18 = vmul.f32 %v2223_v6, %v4468_v29  ;;  %v2242_v44 = vmul.f32 %v5139_v4, %v2238_v48 }
 0xd4e   :  { %v2247_v45 = vsub.f32 %v2243_v12, %v5150_v13  ;;  %v2241_v21 = vadd.f32 %v2237_v43, %v2228_v15 }
 0xd4f   :  { %v2240_v24 = vadd.f32 %v2236_v9, %v2227_v18  ;;  %v2246_v46 = vsub.f32 %v2242_v44, %v5150_v13 }
 0xd50   :  { %vm2251_vm8 = vcmp.gt.f32.partialorder %v2247_v45, 0.0  ;;  %v2245_v47 = vmul.f32 %v5139_v4, %v2241_v21  ;;  %v2422_v45 = vld [vmem:[#allocation5] sm:$0x1] }
 0xd51   :  { %vm2250_vm9 = vcmp.gt.f32.partialorder %v2246_v46, 0.0  ;;  %v2748_v49 = vsel %vm2251_vm8, 1.0, %v4298_v5  ;;  %v2244_v50 = vmul.f32 %v5139_v4, %v2240_v24 }
 0xd52   :  { %v2747_v51 = vsel %vm2250_vm9, 1.0, %v4298_v5  ;;  %3749 = vmatprep.mubr.msk.f32.mxu1 %vm2250_vm9, %v4299_v61  ;;  %2752 = vst [vmem:[%s5674_s5 + $0x1c8] sm:$0xff] %v2748_v49  ;;  %v2249_v52 = vsub.f32 %v2245_v47, %v5150_v13 }
 0xd53   :  { %2751 = vst [vmem:[%s5674_s5 + $0x1c0] sm:$0xff] %v2747_v51  ;;  %3750 = vmatmul.mubr.msk.f32.vlgmr.msra.gmra.mrb[28].mxu1 %vm2251_vm8, %v4299_v61  ;;  %v2248_v53 = vsub.f32 %v2244_v50, %v5150_v13  ;;  %v2542_v54 = vadd.f32 %v2747_v51, %v2541_v25 }
 0xd54   :  { %vm2253_vm10 = vcmp.gt.f32.partialorder %v2249_v52, 0.0 }
 0xd55   :  { %vm2252_vm11 = vcmp.gt.f32.partialorder %v2248_v53, 0.0  ;;  %v2750_v55 = vsel %vm2253_vm10, 1.0, %v4298_v5  ;;  %v2543_v56 = vadd.f32 %v2748_v49, %v2542_v54 }
 0xd56   :  { %v2749_v57 = vsel %vm2252_vm11, 1.0, %v4298_v5  ;;  %3752 = vmatprep.mubr.msk.f32.mxu1 %vm2252_vm11, %v4299_v61  ;;  %2754 = vst [vmem:[%s5674_s5 + $0x1d8] sm:$0xff] %v2750_v55 }
 0xd57   :  { %2753 = vst [vmem:[%s5674_s5 + $0x1d0] sm:$0xff] %v2749_v57  ;;  %3753 = vmatmul.mubr.msk.f32.gmra.mrb[30].mxu1 %vm2253_vm10, %v4299_v61  ;;  %v2544_v58 = vadd.f32 %v2749_v57, %v2543_v56  ;;  %v2758_v61 = vld [vmem:[%s5670_s1 + $0x1f8] sm:$0xff] }
 0xd58   :  { %v2384_v20 = vmul.f32 %v2758_v61, %v4460_v26 }
 0xd59   :  { %v2545_v59 = vadd.f32 %v2750_v55, %v2544_v58 }
 0xe26   :  { %v3751_v63 = vpop.f32.mrb[28].mxu1 }
 0xe27   :  { %v2369_v0 = vsub.f32 %v2239_v40, %v3751_v63  ;;  %v2345_v2 = vpop.f32.mrb[29].mxu1 }
 0xe28   :  { %v2368_v7 = vsub.f32 %v2238_v48, %v2345_v2 }
 0xe29   :  { %v2373_v10 = vmul.f32 %v2369_v0, %v4468_v29 }
 0xe2a   :  { %v2372_v14 = vmul.f32 %v2368_v7, %v4468_v29  ;;  %v3754_v16 = vpop.f32.mrb[30].mxu1 }
 0xe2b   :  { %v2386_v17 = vadd.f32 %v2382_v1, %v2373_v10  ;;  %v2371_v19 = vsub.f32 %v2241_v21, %v3754_v16  ;;  %v2355_v22 = vpop.f32.mrb[31].mxu1 }
 0xe2c   :  { %v2385_v23 = vadd.f32 %v2381_v8, %v2372_v14  ;;  %v2370_v25 = vsub.f32 %v2240_v24, %v2355_v22 }
 0xe2d   :  { %v2390_v28 = vmul.f32 %v5139_v4, %v2386_v17  ;;  %v2375_v30 = vmul.f32 %v2371_v19, %v4468_v29 }
 0xe2e   :  { %v2389_v31 = vmul.f32 %v5139_v4, %v2385_v23  ;;  %v2374_v32 = vmul.f32 %v2370_v25, %v4468_v29 }
 0xe2f   :  { %v2394_v33 = vsub.f32 %v2390_v28, %v5150_v13  ;;  %v2388_v34 = vadd.f32 %v2384_v20, %v2375_v30 }
 0xe30   :  { %v2393_v35 = vsub.f32 %v2389_v31, %v5150_v13  ;;  %v2387_v36 = vadd.f32 %v2383_v27, %v2374_v32 }
 0xe31   :  { %vm2398_vm12 = vcmp.gt.f32.partialorder %v2394_v33, 0.0  ;;  %v2392_v37 = vmul.f32 %v5139_v4, %v2388_v34 }
 0xe32   :  { %v2760_v38 = vsel %vm2398_vm12, 1.0, %v4298_v5  ;;  %vm2397_vm13 = vcmp.gt.f32.partialorder %v2393_v35, 0.0  ;;  %v2391_v26 = vmul.f32 %v5139_v4, %v2387_v36 }
 0xe33   :  { %2764 = vst [vmem:[%s5674_s5 + $0x1e8] sm:$0xff] %v2760_v38  ;;  %v2759_v29 = vsel %vm2397_vm13, 1.0, %v4298_v5  ;;  %v2396_v39 = vsub.f32 %v2392_v37, %v5150_v13 }
 0xe34   :  { %2763 = vst [vmem:[%s5674_s5 + $0x1e0] sm:$0xff] %v2759_v29  ;;  %v2395_v41 = vsub.f32 %v2391_v26, %v5150_v13  ;;  %v2546_v40 = vadd.f32 %v2759_v29, %v2545_v59 }
 0xe35   :  { %vm2400_vm14 = vcmp.gt.f32.partialorder %v2396_v39, 0.0 }
 0xe36   :  { %v2762_v42 = vsel %vm2400_vm14, 1.0, %v4298_v5  ;;  %vm2399_vm15 = vcmp.gt.f32.partialorder %v2395_v41, 0.0  ;;  %v2547_v4 = vadd.f32 %v2760_v38, %v2546_v40 }
 0xe37   :  { %2766 = vst [vmem:[%s5674_s5 + $0x1f8] sm:$0xff] %v2762_v42  ;;  %v2761_v43 = vsel %vm2399_vm15, 1.0, %v4298_v5 }
 0xe38   :  { %2765 = vst [vmem:[%s5674_s5 + $0x1f0] sm:$0xff] %v2761_v43  ;;  %v2548_v3 = vadd.f32 %v2761_v43, %v2547_v4  ;;  %s4274_s5 = scalar_lea.vmem %s2572_s28, 16 }
 0xe39   :  { %p4275_p0 = scmp.ne.s32.totalorder %s2572_s28, %s4274_s5  ;;  %p4280_p2 = scmp.lt.s32.totalorder %s4278_s29, %s4274_s5 }
 0xe3a   :  { %v2549_v48 = vadd.f32 %v2762_v42, %v2548_v3 }
 0xe3b   :  { %p4281_p3 = por %p4280_p2, %p4279_p1 }
 0xe3c   :  { %2550 = vadd.xlane.f32.xlu0 %v2549_v48 }
 0xe3d   :  { %p4282_p4 = pnand %p4281_p3, %p4275_p0 }
 0xec9   :  { %v2551_v13 = vpop.xlane.xlu0 %2550 }
 0xeca   :  { %v2552_v6 = vrot.slane %v2551_v13, 4 }
 0xecc   :  { %v2553_v9 = vadd.f32 %v2552_v6, %v2551_v13 }
 0xece   :  { %v2554_v12 = vrot.slane %v2553_v9, 2 }
 0xed0   :  { %v2555_v15 = vadd.f32 %v2554_v12, %v2553_v9 }
 0xed2   :  { %v2556_v18 = vrot.slane %v2555_v15, 1 }
 0xed4   :  { %v2557_v44 = vadd.f32 %v2556_v18, %v2555_v15 }
 0xed6   :  { %4267 = vpush %v2557_v44 }
 0xf07   :  { %s4268_s2 = spop %4267 }
 0xf08   :  { %v2559_v21 = vstv %s4268_s2 }
 0xf09   :  { %v2560_v24 = vadd.f32 %v2559_v21, %v2422_v45 }
 0xf0b   :  { %2562 = vst.msk [vmem:[#allocation5] sm:$0x1] %vm36_vm0, %v2560_v24 }
 0xf0c   :  { %4285 = shalt.err (!%p4282_p4)
}
 0xf0d   :  { %s4286_s8 = scalar_lea.hbm %s5675_s6, 16 }
 0xf0e   :  { %p4287_p5 = scmp.ne.s32.totalorder %s5675_s6, %s4286_s8  ;;  %p4290_p6 = scmp.lt.u32.totalorder %s4286_s8, %s5675_s6 }
 0xf10   :  { %p4292_p7 = pnand %p4290_p6, %p4287_p5 }
 0xf12   :  { %4295 = shalt.err (!%p4292_p7)
}
 0xf13   :  { %2574 = dma.vmem_to_hbm [thread:$0]  %s2572_s28, 16, %s5675_s6, [#allocation6]  }
 0xf14   :  { %4296 = dma.done.wait [#allocation6], 16  }
 0xf15   :  { %4297 = vsyncadd [#allocation6], 4294967280 }
 0xf16   :  { %2580 = vsyncpa [#allocation6], 1 }

</bundles_post_ra>
